<compile_context>
chip_gen: v7x
topology: tpu7x:2x2x1
jax: 0.10.0
libtpu: 0.0.40
codegen_flags: <defaults>
</compile_context>

<pallas_src>
import functools
import math

import jax
import jax.numpy as jnp
import numpy as np
from jax import lax
from jax.experimental import pallas as pl
from jax.experimental.pallas import tpu as pltpu


def _att_encoder_layer_kernel(H,
                              xkv_ref, mbias_ref,
                              ln1a_ref, ln1b_ref,
                              wq_ref, bq_ref, wk_ref, bk_ref,
                              wv_ref, bv_ref, wo_ref, bo_ref,
                              ln2a_ref, ln2b_ref,
                              w1_ref, b1_ref, w2_ref, b2_ref,
                              out_ref,
                              k_scr, v_scr):
    S, D = xkv_ref.shape
    TQ = out_ref.shape[0]
    NCF, _, CF = w1_ref.shape
    dk = D // H
    eps = jnp.float32(1e-6)
    bf16 = jnp.bfloat16

    def layernorm(v, a, b):
        mean = jnp.mean(v, axis=-1, keepdims=True)
        # torch .std() uses Bessel's correction (N-1); eps is added to std.
        var = jnp.sum((v - mean) ** 2, axis=-1, keepdims=True) * jnp.float32(1.0 / (D - 1))
        std = jnp.sqrt(var)
        return a * (v - mean) / (std + eps) + b

    # ---- K / V for the full sequence: built once per batch element, stored
    # head-major (K pre-transposed) so per-tile attention matmuls are canonical. ----
    @pl.when(pl.program_id(1) == 0)
    def _():
        xn_kv = layernorm(xkv_ref[...].astype(jnp.float32), ln1a_ref[...], ln1b_ref[...])
        xn_kv_b = xn_kv.astype(bf16)
        k = jnp.dot(xn_kv_b, wk_ref[...], preferred_element_type=jnp.float32) + bk_ref[...]
        v = jnp.dot(xn_kv_b, wv_ref[...], preferred_element_type=jnp.float32) + bv_ref[...]
        k_t = k.T                                            # [D, S] f32, one transpose per batch
        for h in range(H):                                   # static head loop (once per batch)
            lo = h * dk
            k_scr[h] = k_t[lo:lo + dk, :].astype(bf16)       # [dk, S]
            v_scr[h] = v[:, lo:lo + dk].astype(bf16)         # [S, dk]

    # ---- sublayer 0: pre-norm multi-head self-attention + residual ----
    q_start = pl.multiple_of(pl.program_id(1) * TQ, TQ)
    x = xkv_ref[pl.ds(q_start, TQ), :].astype(jnp.float32)   # query rows (no separate input)
    xn = layernorm(x, ln1a_ref[...], ln1b_ref[...])
    # 1/sqrt(dk) is folded into Wq / bq on the host -> no per-score scale here.
    q = jnp.dot(xn.astype(bf16), wq_ref[...],
                preferred_element_type=jnp.float32) + bq_ref[...]
    q = q.astype(bf16)

    bias = mbias_ref[...]                                    # [1, S] additive mask (host-built)

    heads = []
    for h in range(H):                                       # static loop over heads
        lo = h * dk
        scores = jnp.dot(q[:, lo:lo + dk], k_scr[h],
                         preferred_element_type=jnp.float32)  # [TQ, S]
        scores = scores + bias
        m = jnp.max(scores, axis=-1, keepdims=True)
        p = jnp.exp(scores - m)
        l = jnp.sum(p, axis=-1, keepdims=True)
        head = jnp.dot(p.astype(bf16), v_scr[h],
                       preferred_element_type=jnp.float32)    # [TQ, dk]
        head = head * pl.reciprocal(l, approx=True)           # fold softmax 1/l after PV (EUP)
        heads.append(head.astype(bf16))
    attn = jnp.concatenate(heads, axis=-1)                    # [TQ, D] bf16
    # Single D-deep output projection (full MXU fill) instead of per-head dk-deep dots.
    proj = jnp.dot(attn, wo_ref[...], preferred_element_type=jnp.float32) + bo_ref[...]
    # TODO(synk): nn.Dropout is identity here (eval-mode semantics).
    x1 = x + proj

    # ---- sublayer 1: pre-norm position-wise FFN (ReLU) + residual, chunked over d_ff ----
    xn2 = layernorm(x1, ln2a_ref[...], ln2b_ref[...]).astype(bf16)

    def ffn_chunk(ci, acc):
        h1 = jnp.dot(xn2, w1_ref[ci], preferred_element_type=jnp.float32) + b1_ref[ci]
        h1 = jnp.maximum(h1, 0.0).astype(bf16)
        return acc + jnp.dot(h1, w2_ref[ci], preferred_element_type=jnp.float32)

    if NCF == 1:
        ffn = ffn_chunk(0, jnp.zeros((TQ, D), jnp.float32))
    else:
        # fori_loop (not an unrolled Python loop) bounds live ranges across d_ff chunks.
        ffn = lax.fori_loop(0, NCF, ffn_chunk, jnp.zeros((TQ, D), jnp.float32), unroll=2)
    out_ref[...] = (x1 + ffn + b2_ref[...]).astype(out_ref.dtype)


def _vmem_capacity_bytes():
    try:
        info = pltpu.get_tpu_info()
        cap = getattr(info, "vmem_capacity_bytes", None)
        if cap:
            return int(cap)
    except Exception:
        pass
    return None


def _build_call(B, S, D, NCF, CF, TQ, NQ, num_heads, dtype, vmem_limit, single_buffer):
    bf16 = jnp.bfloat16
    dk = D // num_heads
    # Single-buffer inputs whose block index never changes across the inner (query)
    # axis: pure VMEM saving, no extra DMA ever happens for the weight tables.
    kw = {"pipeline_mode": pl.Buffered(1)} if single_buffer else {}

    def const_spec(shape):
        n = len(shape)
        return pl.BlockSpec(shape, lambda b, q: (0,) * n, **kw)

    in_specs = [
        pl.BlockSpec((None, S, D), lambda b, q: (b, 0, 0), **kw),   # x (full sequence)
        pl.BlockSpec((None, 1, S), lambda b, q: (b, 0, 0), **kw),   # additive mask bias
        const_spec((1, D)), const_spec((1, D)),                     # ln1 a, b
        const_spec((D, D)), const_spec((1, D)),                     # Wq^T (scaled), bq (scaled)
        const_spec((D, D)), const_spec((1, D)),                     # Wk^T, bk
        const_spec((D, D)), const_spec((1, D)),                     # Wv^T, bv
        const_spec((D, D)), const_spec((1, D)),                     # Wo^T, bo
        const_spec((1, D)), const_spec((1, D)),                     # ln2 a, b
        const_spec((NCF, D, CF)), const_spec((NCF, 1, CF)),         # W1^T chunks, b1 chunks
        const_spec((NCF, CF, D)), const_spec((1, D)),               # W2^T chunks, b2
    ]

    return pl.pallas_call(
        functools.partial(_att_encoder_layer_kernel, num_heads),
        out_shape=jax.ShapeDtypeStruct((B, S, D), dtype),
        grid_spec=pltpu.PrefetchScalarGridSpec(
            num_scalar_prefetch=0,
            grid=(B, NQ),
            in_specs=in_specs,
            out_specs=pl.BlockSpec((None, TQ, D), lambda b, q: (b, q, 0)),
            scratch_shapes=[pltpu.VMEM((num_heads, dk, S), bf16),   # K^T per head (per batch)
                            pltpu.VMEM((num_heads, S, dk), bf16)],  # V per head (per batch)
        ),
        compiler_params=pltpu.CompilerParams(
            # K/V scratch is carried across query tiles: the inner axis must stay
            # "arbitrary" (sequential, q == 0 visited first for each batch element).
            dimension_semantics=("parallel", "arbitrary"),
            vmem_limit_bytes=vmem_limit),
    )


def att_encoder_layer(x, mask, params, *, num_heads):
    """x: [B, S, D] float32, mask: [B, 1, S] float32 (1 = keep key, 0 = mask)."""
    B, S, D = x.shape
    d_ff = params["w1"].shape[0]
    dk = D // num_heads
    bf16 = jnp.bfloat16

    # Per-generation VMEM budget: leave headroom below physical capacity
    # (v7x: 64 MiB -> ~54 MiB cap; v5e/v6e: 128 MiB -> ~108 MiB cap).
    cap = _vmem_capacity_bytes()
    if cap is None:
        cap = 64 * 1024 * 1024                      # conservative if the query fails
    vmem_limit = int(cap * 0.85)
    small_vmem = cap <= 64 * 1024 * 1024

    # Query tile: bound the [TQ, S] scores / [TQ, CF] FFN working set; smaller on
    # 64 MiB-VMEM parts (v7x), larger where 128 MiB is available.
    max_tq = 128 if small_vmem else 256
    TQ = S
    for cand in (max_tq, 128):
        if cand <= S and S % cand == 0:
            TQ = cand
            break
    NQ = S // TQ

    # d_ff chunking (leading-axis chunks -> clean dynamic ref indexing in-kernel).
    if d_ff % 1024 == 0 and not small_vmem:
        CF = 1024
    elif d_ff % 512 == 0:
        CF = 512
    else:
        CF = d_ff
    NCF = d_ff // CF

    scale = 1.0 / math.sqrt(dk)
    # Pre-transpose weights to [in, out], fold 1/sqrt(dk) into Wq / bq, and cast
    # matmul operands to bf16 on the host (f32 accumulation in-kernel).
    wq_t = (params["wq"].T * scale).astype(bf16)
    bq_s = params["bq"] * scale
    wk_t = params["wk"].T.astype(bf16)
    wv_t = params["wv"].T.astype(bf16)
    wo_t = params["wo"].T.astype(bf16)
    w1_t = params["w1"].T.astype(bf16)                       # [D, d_ff]
    w2_t = params["w2"].T.astype(bf16)                       # [d_ff, D]
    w1_c = w1_t.reshape(D, NCF, CF).transpose(1, 0, 2)       # [NCF, D, CF]
    b1_c = params["b1"].reshape(NCF, 1, CF)                  # [NCF, 1, CF]
    w2_c = w2_t.reshape(NCF, CF, D)                          # [NCF, CF, D]

    # Additive mask bias built on the host; the kernel only adds it.
    mbias = jnp.where(mask == 0.0, jnp.float32(-1e9), jnp.float32(0.0))

    args = (x, mbias,
            params["ln1_a"], params["ln1_b"],
            wq_t, bq_s, wk_t, params["bk"],
            wv_t, params["bv"], wo_t, params["bo"],
            params["ln2_a"], params["ln2_b"],
            w1_c, b1_c, w2_c, params["b2"])

    # Prefer single-buffered constant-index inputs (halves their VMEM residency);
    # fall back to default double-buffering if this Pallas build rejects it.
    last_err = None
    for single_buffer in (True, False):
        try:
            call = _build_call(B, S, D, NCF, CF, TQ, NQ, num_heads,
                               x.dtype, vmem_limit, single_buffer)
            return jax.block_until_ready(call(*args))
        except Exception as e:          # noqa: BLE001 - retry once without Buffered(1)
            last_err = e
    raise last_err


def reference(x, mask, params, *, num_heads):
    """Pure-JAX f32 reference mirroring the PyTorch forward (eval mode)."""
    B, S, D = x.shape
    eps = 1e-6

    def layernorm(v, a, b):
        mean = jnp.mean(v, axis=-1, keepdims=True)
        var = jnp.sum((v - mean) ** 2, axis=-1, keepdims=True) / (D - 1)
        std = jnp.sqrt(var)
        return a[0] * (v - mean) / (std + eps) + b[0]

    def linear(v, w, b):
        return jnp.einsum("bsd,ed->bse", v, w) + b[0]

    xn = layernorm(x, params["ln1_a"], params["ln1_b"])
    q = linear(xn, params["wq"], params["bq"])
    k = linear(xn, params["wk"], params["bk"])
    v = linear(xn, params["wv"], params["bv"])
    dk = D // num_heads
    qh = q.reshape(B, S, num_heads, dk).transpose(0, 2, 1, 3)
    kh = k.reshape(B, S, num_heads, dk).transpose(0, 2, 1, 3)
    vh = v.reshape(B, S, num_heads, dk).transpose(0, 2, 1, 3)
    scores = jnp.einsum("bhqd,bhkd->bhqk", qh, kh) / np.sqrt(dk)
    scores = jnp.where(mask[:, None, :, :] == 0.0, -1e9, scores)
    p = jax.nn.softmax(scores, axis=-1)
    attn = jnp.einsum("bhqk,bhkd->bhqd", p, vh).transpose(0, 2, 1, 3).reshape(B, S, D)
    attn = linear(attn, params["wo"], params["bo"])
    x1 = x + attn
    xn2 = layernorm(x1, params["ln2_a"], params["ln2_b"])
    h1 = jax.nn.relu(linear(xn2, params["w1"], params["b1"]))
    ffn = linear(h1, params["w2"], params["b2"])
    return x1 + ffn


def init_params(key, D, d_ff):
    ks = jax.random.split(key, 6)
    s = 0.02
    return {
        "ln1_a": jnp.ones((1, D), jnp.float32),
        "ln1_b": jnp.zeros((1, D), jnp.float32),
        "wq": s * jax.random.normal(ks[0], (D, D), jnp.float32),
        "bq": jnp.zeros((1, D), jnp.float32),
        "wk": s * jax.random.normal(ks[1], (D, D), jnp.float32),
        "bk": jnp.zeros((1, D), jnp.float32),
        "wv": s * jax.random.normal(ks[2], (D, D), jnp.float32),
        "bv": jnp.zeros((1, D), jnp.float32),
        "wo": s * jax.random.normal(ks[3], (D, D), jnp.float32),
        "bo": jnp.zeros((1, D), jnp.float32),
        "ln2_a": jnp.ones((1, D), jnp.float32),
        "ln2_b": jnp.zeros((1, D), jnp.float32),
        "w1": s * jax.random.normal(ks[4], (d_ff, D), jnp.float32),
        "b1": jnp.zeros((1, d_ff), jnp.float32),
        "w2": s * jax.random.normal(ks[5], (D, d_ff), jnp.float32),
        "b2": jnp.zeros((1, D), jnp.float32),
    }


if __name__ == "__main__":
    B, S, D, H, d_ff = 2, 8, 32, 4, 64
    key = jax.random.PRNGKey(0)
    kx, kp = jax.random.split(key)
    x = jax.random.normal(kx, (B, S, D), jnp.float32)
    mask = jnp.ones((B, 1, S), jnp.float32)
    mask = mask.at[1, 0, 6:].set(0.0)   # pad the last two key positions of batch 1
    params = init_params(kp, D, d_ff)

    out = att_encoder_layer(x, mask, params, num_heads=H)
    out = jax.block_until_ready(out)

    ref = reference(x, mask, params, num_heads=H)
    # bf16 matmul operands (f32 accumulation) -> looser tolerance than the f32 ref.
    np.testing.assert_allclose(np.asarray(out), np.asarray(ref), rtol=2e-2, atol=2e-2)
    print("KERNEL_OK")
</pallas_src>

<mosaic_0001>
module attributes {stable_mosaic.version = 11 : i64} {
  func.func @_att_encoder_layer_kernel(%arg0: i32, %arg1: i32, %arg2: memref<1x8x32xf32, #tpu.memory_space<vmem>>, %arg3: memref<1x1x8xf32, #tpu.memory_space<vmem>>, %arg4: memref<1x32xf32, #tpu.memory_space<vmem>>, %arg5: memref<1x32xf32, #tpu.memory_space<vmem>>, %arg6: memref<32x32xbf16, #tpu.memory_space<vmem>>, %arg7: memref<1x32xf32, #tpu.memory_space<vmem>>, %arg8: memref<32x32xbf16, #tpu.memory_space<vmem>>, %arg9: memref<1x32xf32, #tpu.memory_space<vmem>>, %arg10: memref<32x32xbf16, #tpu.memory_space<vmem>>, %arg11: memref<1x32xf32, #tpu.memory_space<vmem>>, %arg12: memref<32x32xbf16, #tpu.memory_space<vmem>>, %arg13: memref<1x32xf32, #tpu.memory_space<vmem>>, %arg14: memref<1x32xf32, #tpu.memory_space<vmem>>, %arg15: memref<1x32xf32, #tpu.memory_space<vmem>>, %arg16: memref<1x32x64xbf16, #tpu.memory_space<vmem>>, %arg17: memref<1x1x64xf32, #tpu.memory_space<vmem>>, %arg18: memref<1x64x32xbf16, #tpu.memory_space<vmem>>, %arg19: memref<1x32xf32, #tpu.memory_space<vmem>>, %arg20: memref<1x8x32xf32, #tpu.memory_space<vmem>>, %arg21: memref<4x8x8xbf16, #tpu.memory_space<vmem>>, %arg22: memref<4x8x8xbf16, #tpu.memory_space<vmem>>) attributes {dimension_semantics = [#tpu.dimension_semantics<parallel>, #tpu.dimension_semantics<arbitrary>], iteration_bounds = array<i64: 2, 1>, scalar_prefetch = 0 : i64, scratch_operands = 2 : i64, tpu.core_type = #tpu.core_type<tc>, window_params = [{pipeline_mode = #tpu.pipeline_mode<synchronous>, transform_indices = @transform_0, window_bounds = array<i64: 1, 8, 32>}, {pipeline_mode = #tpu.pipeline_mode<synchronous>, transform_indices = @transform_1, window_bounds = array<i64: 1, 1, 8>}, {pipeline_mode = #tpu.pipeline_mode<synchronous>, transform_indices = @transform_2, window_bounds = array<i64: 1, 32>}, {pipeline_mode = #tpu.pipeline_mode<synchronous>, transform_indices = @transform_3, window_bounds = array<i64: 1, 32>}, {pipeline_mode = #tpu.pipeline_mode<synchronous>, transform_indices = @transform_4, window_bounds = array<i64: 32, 32>}, {pipeline_mode = #tpu.pipeline_mode<synchronous>, transform_indices = @transform_5, window_bounds = array<i64: 1, 32>}, {pipeline_mode = #tpu.pipeline_mode<synchronous>, transform_indices = @transform_6, window_bounds = array<i64: 32, 32>}, {pipeline_mode = #tpu.pipeline_mode<synchronous>, transform_indices = @transform_7, window_bounds = array<i64: 1, 32>}, {pipeline_mode = #tpu.pipeline_mode<synchronous>, transform_indices = @transform_8, window_bounds = array<i64: 32, 32>}, {pipeline_mode = #tpu.pipeline_mode<synchronous>, transform_indices = @transform_9, window_bounds = array<i64: 1, 32>}, {pipeline_mode = #tpu.pipeline_mode<synchronous>, transform_indices = @transform_10, window_bounds = array<i64: 32, 32>}, {pipeline_mode = #tpu.pipeline_mode<synchronous>, transform_indices = @transform_11, window_bounds = array<i64: 1, 32>}, {pipeline_mode = #tpu.pipeline_mode<synchronous>, transform_indices = @transform_12, window_bounds = array<i64: 1, 32>}, {pipeline_mode = #tpu.pipeline_mode<synchronous>, transform_indices = @transform_13, window_bounds = array<i64: 1, 32>}, {pipeline_mode = #tpu.pipeline_mode<synchronous>, transform_indices = @transform_14, window_bounds = array<i64: 1, 32, 64>}, {pipeline_mode = #tpu.pipeline_mode<synchronous>, transform_indices = @transform_15, window_bounds = array<i64: 1, 1, 64>}, {pipeline_mode = #tpu.pipeline_mode<synchronous>, transform_indices = @transform_16, window_bounds = array<i64: 1, 64, 32>}, {pipeline_mode = #tpu.pipeline_mode<synchronous>, transform_indices = @transform_17, window_bounds = array<i64: 1, 32>}, {transform_indices = @transform_18, window_bounds = array<i64: 1, 8, 32>}]} {
    %c0_i32 = arith.constant 0 : i32
    %0 = arith.cmpi eq, %arg1, %c0_i32 : i32
    %1 = arith.extui %0 : i1 to i32
    %cst = arith.constant 9.99999997E-7 : f32
    %c0_i32_0 = arith.constant 0 : i32
    %2 = arith.cmpi ne, %1, %c0_i32_0 : i32
    scf.if %2 {
      %c0_88 = arith.constant 0 : index
      %c0_89 = arith.constant 0 : index
      %c0_90 = arith.constant 0 : index
      %179 = vector.load %arg2[%c0_88, %c0_89, %c0_90] : memref<1x8x32xf32, #tpu.memory_space<vmem>>, vector<1x8x32xf32>
      %180 = vector.shape_cast %179 : vector<1x8x32xf32> to vector<8x32xf32>
      %c0_91 = arith.constant 0 : index
      %c0_92 = arith.constant 0 : index
      %181 = vector.load %arg4[%c0_91, %c0_92] : memref<1x32xf32, #tpu.memory_space<vmem>>, vector<1x32xf32>
      %c0_93 = arith.constant 0 : index
      %c0_94 = arith.constant 0 : index
      %182 = vector.load %arg5[%c0_93, %c0_94] : memref<1x32xf32, #tpu.memory_space<vmem>>, vector<1x32xf32>
      %cst_95 = arith.constant dense<0.000000e+00> : vector<8xf32>
      %183 = vector.multi_reduction <add>, %180, %cst_95 [1] : vector<8x32xf32> to vector<8xf32>
      %184 = vector.shape_cast %183 : vector<8xf32> to vector<8x1xf32>
      %cst_96 = arith.constant 3.200000e+01 : f32
      %185 = vector.broadcast %cst_96 : f32 to vector<8x1xf32>
      %186 = arith.divf %184, %185 : vector<8x1xf32>
      %187 = vector.broadcast %186 : vector<8x1xf32> to vector<8x32xf32>
      %188 = arith.subf %180, %187 : vector<8x32xf32>
      %189 = arith.mulf %188, %188 : vector<8x32xf32>
      %cst_97 = arith.constant dense<0.000000e+00> : vector<8xf32>
      %190 = vector.multi_reduction <add>, %189, %cst_97 [1] : vector<8x32xf32> to vector<8xf32>
      %191 = vector.shape_cast %190 : vector<8xf32> to vector<8x1xf32>
      %cst_98 = arith.constant 0.0322580636 : f32
      %192 = vector.broadcast %cst_98 : f32 to vector<8x1xf32>
      %193 = arith.mulf %191, %192 : vector<8x1xf32>
      %194 = math.sqrt %193 : vector<8x1xf32>
      %195 = vector.broadcast %186 : vector<8x1xf32> to vector<8x32xf32>
      %196 = arith.subf %180, %195 : vector<8x32xf32>
      %197 = vector.broadcast %181 : vector<1x32xf32> to vector<8x32xf32>
      %198 = arith.mulf %197, %196 : vector<8x32xf32>
      %199 = vector.broadcast %cst : f32 to vector<8x1xf32>
      %200 = arith.addf %194, %199 : vector<8x1xf32>
      %201 = vector.broadcast %200 : vector<8x1xf32> to vector<8x32xf32>
      %202 = arith.divf %198, %201 : vector<8x32xf32>
      %203 = vector.broadcast %182 : vector<1x32xf32> to vector<8x32xf32>
      %204 = arith.addf %202, %203 : vector<8x32xf32>
      %205 = arith.truncf %204 : vector<8x32xf32> to vector<8x32xbf16>
      %c0_99 = arith.constant 0 : index
      %c0_100 = arith.constant 0 : index
      %206 = vector.load %arg8[%c0_99, %c0_100] : memref<32x32xbf16, #tpu.memory_space<vmem>>, vector<32x32xbf16>
      %cst_101 = arith.constant dense<0.000000e+00> : vector<8x32xf32>
      %207 = tpu.matmul %205, %206, %cst_101 {dimension_numbers = #tpu.dot_dimension_numbers<[1], [0], [0], [1], [0, 0, 1, 1], [], []>} : vector<8x32xbf16>, vector<32x32xbf16>, vector<8x32xf32> -> vector<8x32xf32>
      %c0_102 = arith.constant 0 : index
      %c0_103 = arith.constant 0 : index
      %208 = vector.load %arg9[%c0_102, %c0_103] : memref<1x32xf32, #tpu.memory_space<vmem>>, vector<1x32xf32>
      %209 = vector.broadcast %208 : vector<1x32xf32> to vector<8x32xf32>
      %210 = arith.addf %207, %209 : vector<8x32xf32>
      %c0_104 = arith.constant 0 : index
      %c0_105 = arith.constant 0 : index
      %211 = vector.load %arg10[%c0_104, %c0_105] : memref<32x32xbf16, #tpu.memory_space<vmem>>, vector<32x32xbf16>
      %cst_106 = arith.constant dense<0.000000e+00> : vector<8x32xf32>
      %212 = tpu.matmul %205, %211, %cst_106 {dimension_numbers = #tpu.dot_dimension_numbers<[1], [0], [0], [1], [0, 0, 1, 1], [], []>} : vector<8x32xbf16>, vector<32x32xbf16>, vector<8x32xf32> -> vector<8x32xf32>
      %c0_107 = arith.constant 0 : index
      %c0_108 = arith.constant 0 : index
      %213 = vector.load %arg11[%c0_107, %c0_108] : memref<1x32xf32, #tpu.memory_space<vmem>>, vector<1x32xf32>
      %214 = vector.broadcast %213 : vector<1x32xf32> to vector<8x32xf32>
      %215 = arith.addf %212, %214 : vector<8x32xf32>
      %216 = tpu.transpose %210, [1, 0] : vector<8x32xf32> -> vector<32x8xf32>
      %217 = vector.extract_strided_slice %216 {offsets = [0, 0], sizes = [8, 8], strides = [1, 1]} : vector<32x8xf32> to vector<8x8xf32>
      %218 = arith.truncf %217 : vector<8x8xf32> to vector<8x8xbf16>
      %c0_109 = arith.constant 0 : index
      %c0_110 = arith.constant 0 : index
      %c0_111 = arith.constant 0 : index
      %219 = vector.load %arg21[%c0_109, %c0_110, %c0_111] : memref<4x8x8xbf16, #tpu.memory_space<vmem>>, vector<1x8x8xbf16>
      %220 = vector.shape_cast %219 : vector<1x8x8xbf16> to vector<8x8xbf16>
      %221 = vector.shape_cast %218 : vector<8x8xbf16> to vector<1x8x8xbf16>
      tpu.vector_store %arg21[%c0_109, %c0_110, %c0_111], %221 {strides = array<i32>} : memref<4x8x8xbf16, #tpu.memory_space<vmem>>, vector<1x8x8xbf16>,
      %222 = vector.extract_strided_slice %215 {offsets = [0, 0], sizes = [8, 8], strides = [1, 1]} : vector<8x32xf32> to vector<8x8xf32>
      %223 = arith.truncf %222 : vector<8x8xf32> to vector<8x8xbf16>
      %c0_112 = arith.constant 0 : index
      %c0_113 = arith.constant 0 : index
      %c0_114 = arith.constant 0 : index
      %224 = vector.load %arg22[%c0_112, %c0_113, %c0_114] : memref<4x8x8xbf16, #tpu.memory_space<vmem>>, vector<1x8x8xbf16>
      %225 = vector.shape_cast %224 : vector<1x8x8xbf16> to vector<8x8xbf16>
      %226 = vector.shape_cast %223 : vector<8x8xbf16> to vector<1x8x8xbf16>
      tpu.vector_store %arg22[%c0_112, %c0_113, %c0_114], %226 {strides = array<i32>} : memref<4x8x8xbf16, #tpu.memory_space<vmem>>, vector<1x8x8xbf16>,
      %227 = vector.extract_strided_slice %216 {offsets = [8, 0], sizes = [8, 8], strides = [1, 1]} : vector<32x8xf32> to vector<8x8xf32>
      %228 = arith.truncf %227 : vector<8x8xf32> to vector<8x8xbf16>
      %c1_115 = arith.constant 1 : index
      %c0_116 = arith.constant 0 : index
      %c0_117 = arith.constant 0 : index
      %229 = vector.load %arg21[%c1_115, %c0_116, %c0_117] : memref<4x8x8xbf16, #tpu.memory_space<vmem>>, vector<1x8x8xbf16>
      %230 = vector.shape_cast %229 : vector<1x8x8xbf16> to vector<8x8xbf16>
      %231 = vector.shape_cast %228 : vector<8x8xbf16> to vector<1x8x8xbf16>
      tpu.vector_store %arg21[%c1_115, %c0_116, %c0_117], %231 {strides = array<i32>} : memref<4x8x8xbf16, #tpu.memory_space<vmem>>, vector<1x8x8xbf16>,
      %232 = vector.extract_strided_slice %215 {offsets = [0, 8], sizes = [8, 8], strides = [1, 1]} : vector<8x32xf32> to vector<8x8xf32>
      %233 = arith.truncf %232 : vector<8x8xf32> to vector<8x8xbf16>
      %c1_118 = arith.constant 1 : index
      %c0_119 = arith.constant 0 : index
      %c0_120 = arith.constant 0 : index
      %234 = vector.load %arg22[%c1_118, %c0_119, %c0_120] : memref<4x8x8xbf16, #tpu.memory_space<vmem>>, vector<1x8x8xbf16>
      %235 = vector.shape_cast %234 : vector<1x8x8xbf16> to vector<8x8xbf16>
      %236 = vector.shape_cast %233 : vector<8x8xbf16> to vector<1x8x8xbf16>
      tpu.vector_store %arg22[%c1_118, %c0_119, %c0_120], %236 {strides = array<i32>} : memref<4x8x8xbf16, #tpu.memory_space<vmem>>, vector<1x8x8xbf16>,
      %237 = vector.extract_strided_slice %216 {offsets = [16, 0], sizes = [8, 8], strides = [1, 1]} : vector<32x8xf32> to vector<8x8xf32>
      %238 = arith.truncf %237 : vector<8x8xf32> to vector<8x8xbf16>
      %c2_121 = arith.constant 2 : index
      %c0_122 = arith.constant 0 : index
      %c0_123 = arith.constant 0 : index
      %239 = vector.load %arg21[%c2_121, %c0_122, %c0_123] : memref<4x8x8xbf16, #tpu.memory_space<vmem>>, vector<1x8x8xbf16>
      %240 = vector.shape_cast %239 : vector<1x8x8xbf16> to vector<8x8xbf16>
      %241 = vector.shape_cast %238 : vector<8x8xbf16> to vector<1x8x8xbf16>
      tpu.vector_store %arg21[%c2_121, %c0_122, %c0_123], %241 {strides = array<i32>} : memref<4x8x8xbf16, #tpu.memory_space<vmem>>, vector<1x8x8xbf16>,
      %242 = vector.extract_strided_slice %215 {offsets = [0, 16], sizes = [8, 8], strides = [1, 1]} : vector<8x32xf32> to vector<8x8xf32>
      %243 = arith.truncf %242 : vector<8x8xf32> to vector<8x8xbf16>
      %c2_124 = arith.constant 2 : index
      %c0_125 = arith.constant 0 : index
      %c0_126 = arith.constant 0 : index
      %244 = vector.load %arg22[%c2_124, %c0_125, %c0_126] : memref<4x8x8xbf16, #tpu.memory_space<vmem>>, vector<1x8x8xbf16>
      %245 = vector.shape_cast %244 : vector<1x8x8xbf16> to vector<8x8xbf16>
      %246 = vector.shape_cast %243 : vector<8x8xbf16> to vector<1x8x8xbf16>
      tpu.vector_store %arg22[%c2_124, %c0_125, %c0_126], %246 {strides = array<i32>} : memref<4x8x8xbf16, #tpu.memory_space<vmem>>, vector<1x8x8xbf16>,
      %247 = vector.extract_strided_slice %216 {offsets = [24, 0], sizes = [8, 8], strides = [1, 1]} : vector<32x8xf32> to vector<8x8xf32>
      %248 = arith.truncf %247 : vector<8x8xf32> to vector<8x8xbf16>
      %c3_127 = arith.constant 3 : index
      %c0_128 = arith.constant 0 : index
      %c0_129 = arith.constant 0 : index
      %249 = vector.load %arg21[%c3_127, %c0_128, %c0_129] : memref<4x8x8xbf16, #tpu.memory_space<vmem>>, vector<1x8x8xbf16>
      %250 = vector.shape_cast %249 : vector<1x8x8xbf16> to vector<8x8xbf16>
      %251 = vector.shape_cast %248 : vector<8x8xbf16> to vector<1x8x8xbf16>
      tpu.vector_store %arg21[%c3_127, %c0_128, %c0_129], %251 {strides = array<i32>} : memref<4x8x8xbf16, #tpu.memory_space<vmem>>, vector<1x8x8xbf16>,
      %252 = vector.extract_strided_slice %215 {offsets = [0, 24], sizes = [8, 8], strides = [1, 1]} : vector<8x32xf32> to vector<8x8xf32>
      %253 = arith.truncf %252 : vector<8x8xf32> to vector<8x8xbf16>
      %c3_130 = arith.constant 3 : index
      %c0_131 = arith.constant 0 : index
      %c0_132 = arith.constant 0 : index
      %254 = vector.load %arg22[%c3_130, %c0_131, %c0_132] : memref<4x8x8xbf16, #tpu.memory_space<vmem>>, vector<1x8x8xbf16>
      %255 = vector.shape_cast %254 : vector<1x8x8xbf16> to vector<8x8xbf16>
      %256 = vector.shape_cast %253 : vector<8x8xbf16> to vector<1x8x8xbf16>
      tpu.vector_store %arg22[%c3_130, %c0_131, %c0_132], %256 {strides = array<i32>} : memref<4x8x8xbf16, #tpu.memory_space<vmem>>, vector<1x8x8xbf16>,
    } else {
    }
    %c8_i32 = arith.constant 8 : i32
    %3 = arith.muli %arg1, %c8_i32 : i32
    %4 = tpu.assume_multiple %3, 8 : i32
    %c0 = arith.constant 0 : index
    %5 = arith.index_cast %4 : i32 to index
    %c0_1 = arith.constant 0 : index
    %6 = vector.load %arg2[%c0, %5, %c0_1] : memref<1x8x32xf32, #tpu.memory_space<vmem>>, vector<1x8x32xf32>
    %7 = vector.shape_cast %6 : vector<1x8x32xf32> to vector<8x32xf32>
    %c0_2 = arith.constant 0 : index
    %c0_3 = arith.constant 0 : index
    %8 = vector.load %arg4[%c0_2, %c0_3] : memref<1x32xf32, #tpu.memory_space<vmem>>, vector<1x32xf32>
    %c0_4 = arith.constant 0 : index
    %c0_5 = arith.constant 0 : index
    %9 = vector.load %arg5[%c0_4, %c0_5] : memref<1x32xf32, #tpu.memory_space<vmem>>, vector<1x32xf32>
    %cst_6 = arith.constant dense<0.000000e+00> : vector<8xf32>
    %10 = vector.multi_reduction <add>, %7, %cst_6 [1] : vector<8x32xf32> to vector<8xf32>
    %11 = vector.shape_cast %10 : vector<8xf32> to vector<8x1xf32>
    %cst_7 = arith.constant 3.200000e+01 : f32
    %12 = vector.broadcast %cst_7 : f32 to vector<8x1xf32>
    %13 = arith.divf %11, %12 : vector<8x1xf32>
    %14 = vector.broadcast %13 : vector<8x1xf32> to vector<8x32xf32>
    %15 = arith.subf %7, %14 : vector<8x32xf32>
    %16 = arith.mulf %15, %15 : vector<8x32xf32>
    %cst_8 = arith.constant dense<0.000000e+00> : vector<8xf32>
    %17 = vector.multi_reduction <add>, %16, %cst_8 [1] : vector<8x32xf32> to vector<8xf32>
    %18 = vector.shape_cast %17 : vector<8xf32> to vector<8x1xf32>
    %cst_9 = arith.constant 0.0322580636 : f32
    %19 = vector.broadcast %cst_9 : f32 to vector<8x1xf32>
    %20 = arith.mulf %18, %19 : vector<8x1xf32>
    %21 = math.sqrt %20 : vector<8x1xf32>
    %22 = vector.broadcast %13 : vector<8x1xf32> to vector<8x32xf32>
    %23 = arith.subf %7, %22 : vector<8x32xf32>
    %24 = vector.broadcast %8 : vector<1x32xf32> to vector<8x32xf32>
    %25 = arith.mulf %24, %23 : vector<8x32xf32>
    %cst_10 = arith.constant 9.99999997E-7 : f32
    %26 = vector.broadcast %cst_10 : f32 to vector<8x1xf32>
    %27 = arith.addf %21, %26 : vector<8x1xf32>
    %28 = vector.broadcast %27 : vector<8x1xf32> to vector<8x32xf32>
    %29 = arith.divf %25, %28 : vector<8x32xf32>
    %30 = vector.broadcast %9 : vector<1x32xf32> to vector<8x32xf32>
    %31 = arith.addf %29, %30 : vector<8x32xf32>
    %32 = arith.truncf %31 : vector<8x32xf32> to vector<8x32xbf16>
    %c0_11 = arith.constant 0 : index
    %c0_12 = arith.constant 0 : index
    %33 = vector.load %arg6[%c0_11, %c0_12] : memref<32x32xbf16, #tpu.memory_space<vmem>>, vector<32x32xbf16>
    %cst_13 = arith.constant dense<0.000000e+00> : vector<8x32xf32>
    %34 = tpu.matmul %32, %33, %cst_13 {dimension_numbers = #tpu.dot_dimension_numbers<[1], [0], [0], [1], [0, 0, 1, 1], [], []>} : vector<8x32xbf16>, vector<32x32xbf16>, vector<8x32xf32> -> vector<8x32xf32>
    %c0_14 = arith.constant 0 : index
    %c0_15 = arith.constant 0 : index
    %35 = vector.load %arg7[%c0_14, %c0_15] : memref<1x32xf32, #tpu.memory_space<vmem>>, vector<1x32xf32>
    %36 = vector.broadcast %35 : vector<1x32xf32> to vector<8x32xf32>
    %37 = arith.addf %34, %36 : vector<8x32xf32>
    %38 = arith.truncf %37 : vector<8x32xf32> to vector<8x32xbf16>
    %c0_16 = arith.constant 0 : index
    %c0_17 = arith.constant 0 : index
    %c0_18 = arith.constant 0 : index
    %39 = vector.load %arg3[%c0_16, %c0_17, %c0_18] : memref<1x1x8xf32, #tpu.memory_space<vmem>>, vector<1x1x8xf32>
    %40 = vector.shape_cast %39 : vector<1x1x8xf32> to vector<1x8xf32>
    %41 = vector.extract_strided_slice %38 {offsets = [0, 0], sizes = [8, 8], strides = [1, 1]} : vector<8x32xbf16> to vector<8x8xbf16>
    %c0_19 = arith.constant 0 : index
    %c0_20 = arith.constant 0 : index
    %c0_21 = arith.constant 0 : index
    %42 = vector.load %arg21[%c0_19, %c0_20, %c0_21] : memref<4x8x8xbf16, #tpu.memory_space<vmem>>, vector<1x8x8xbf16>
    %43 = vector.shape_cast %42 : vector<1x8x8xbf16> to vector<8x8xbf16>
    %cst_22 = arith.constant dense<0.000000e+00> : vector<8x8xf32>
    %44 = tpu.matmul %41, %43, %cst_22 {dimension_numbers = #tpu.dot_dimension_numbers<[1], [0], [0], [1], [0, 0, 1, 1], [], []>} : vector<8x8xbf16>, vector<8x8xbf16>, vector<8x8xf32> -> vector<8x8xf32>
    %45 = vector.broadcast %40 : vector<1x8xf32> to vector<8x8xf32>
    %46 = arith.addf %44, %45 : vector<8x8xf32>
    %cst_23 = arith.constant dense<0xFF800000> : vector<8xf32>
    %47 = vector.multi_reduction <maximumf>, %46, %cst_23 [1] : vector<8x8xf32> to vector<8xf32>
    %48 = vector.shape_cast %47 : vector<8xf32> to vector<8x1xf32>
    %49 = vector.broadcast %48 : vector<8x1xf32> to vector<8x8xf32>
    %50 = arith.subf %46, %49 : vector<8x8xf32>
    %51 = math.exp %50 : vector<8x8xf32>
    %cst_24 = arith.constant dense<0.000000e+00> : vector<8xf32>
    %52 = vector.multi_reduction <add>, %51, %cst_24 [1] : vector<8x8xf32> to vector<8xf32>
    %53 = vector.shape_cast %52 : vector<8xf32> to vector<8x1xf32>
    %54 = arith.truncf %51 : vector<8x8xf32> to vector<8x8xbf16>
    %c0_25 = arith.constant 0 : index
    %c0_26 = arith.constant 0 : index
    %c0_27 = arith.constant 0 : index
    %55 = vector.load %arg22[%c0_25, %c0_26, %c0_27] : memref<4x8x8xbf16, #tpu.memory_space<vmem>>, vector<1x8x8xbf16>
    %56 = vector.shape_cast %55 : vector<1x8x8xbf16> to vector<8x8xbf16>
    %cst_28 = arith.constant dense<0.000000e+00> : vector<8x8xf32>
    %57 = tpu.matmul %54, %56, %cst_28 {dimension_numbers = #tpu.dot_dimension_numbers<[1], [0], [0], [1], [0, 0, 1, 1], [], []>} : vector<8x8xbf16>, vector<8x8xbf16>, vector<8x8xf32> -> vector<8x8xf32>
    %58 = tpu.reciprocal %53 {approx = true} : vector<8x1xf32> -> vector<8x1xf32>
    %59 = vector.broadcast %58 : vector<8x1xf32> to vector<8x8xf32>
    %60 = arith.mulf %57, %59 : vector<8x8xf32>
    %61 = arith.truncf %60 : vector<8x8xf32> to vector<8x8xbf16>
    %62 = vector.extract_strided_slice %38 {offsets = [0, 8], sizes = [8, 8], strides = [1, 1]} : vector<8x32xbf16> to vector<8x8xbf16>
    %c1 = arith.constant 1 : index
    %c0_29 = arith.constant 0 : index
    %c0_30 = arith.constant 0 : index
    %63 = vector.load %arg21[%c1, %c0_29, %c0_30] : memref<4x8x8xbf16, #tpu.memory_space<vmem>>, vector<1x8x8xbf16>
    %64 = vector.shape_cast %63 : vector<1x8x8xbf16> to vector<8x8xbf16>
    %cst_31 = arith.constant dense<0.000000e+00> : vector<8x8xf32>
    %65 = tpu.matmul %62, %64, %cst_31 {dimension_numbers = #tpu.dot_dimension_numbers<[1], [0], [0], [1], [0, 0, 1, 1], [], []>} : vector<8x8xbf16>, vector<8x8xbf16>, vector<8x8xf32> -> vector<8x8xf32>
    %66 = vector.broadcast %40 : vector<1x8xf32> to vector<8x8xf32>
    %67 = arith.addf %65, %66 : vector<8x8xf32>
    %cst_32 = arith.constant dense<0xFF800000> : vector<8xf32>
    %68 = vector.multi_reduction <maximumf>, %67, %cst_32 [1] : vector<8x8xf32> to vector<8xf32>
    %69 = vector.shape_cast %68 : vector<8xf32> to vector<8x1xf32>
    %70 = vector.broadcast %69 : vector<8x1xf32> to vector<8x8xf32>
    %71 = arith.subf %67, %70 : vector<8x8xf32>
    %72 = math.exp %71 : vector<8x8xf32>
    %cst_33 = arith.constant dense<0.000000e+00> : vector<8xf32>
    %73 = vector.multi_reduction <add>, %72, %cst_33 [1] : vector<8x8xf32> to vector<8xf32>
    %74 = vector.shape_cast %73 : vector<8xf32> to vector<8x1xf32>
    %75 = arith.truncf %72 : vector<8x8xf32> to vector<8x8xbf16>
    %c1_34 = arith.constant 1 : index
    %c0_35 = arith.constant 0 : index
    %c0_36 = arith.constant 0 : index
    %76 = vector.load %arg22[%c1_34, %c0_35, %c0_36] : memref<4x8x8xbf16, #tpu.memory_space<vmem>>, vector<1x8x8xbf16>
    %77 = vector.shape_cast %76 : vector<1x8x8xbf16> to vector<8x8xbf16>
    %cst_37 = arith.constant dense<0.000000e+00> : vector<8x8xf32>
    %78 = tpu.matmul %75, %77, %cst_37 {dimension_numbers = #tpu.dot_dimension_numbers<[1], [0], [0], [1], [0, 0, 1, 1], [], []>} : vector<8x8xbf16>, vector<8x8xbf16>, vector<8x8xf32> -> vector<8x8xf32>
    %79 = tpu.reciprocal %74 {approx = true} : vector<8x1xf32> -> vector<8x1xf32>
    %80 = vector.broadcast %79 : vector<8x1xf32> to vector<8x8xf32>
    %81 = arith.mulf %78, %80 : vector<8x8xf32>
    %82 = arith.truncf %81 : vector<8x8xf32> to vector<8x8xbf16>
    %83 = vector.extract_strided_slice %38 {offsets = [0, 16], sizes = [8, 8], strides = [1, 1]} : vector<8x32xbf16> to vector<8x8xbf16>
    %c2 = arith.constant 2 : index
    %c0_38 = arith.constant 0 : index
    %c0_39 = arith.constant 0 : index
    %84 = vector.load %arg21[%c2, %c0_38, %c0_39] : memref<4x8x8xbf16, #tpu.memory_space<vmem>>, vector<1x8x8xbf16>
    %85 = vector.shape_cast %84 : vector<1x8x8xbf16> to vector<8x8xbf16>
    %cst_40 = arith.constant dense<0.000000e+00> : vector<8x8xf32>
    %86 = tpu.matmul %83, %85, %cst_40 {dimension_numbers = #tpu.dot_dimension_numbers<[1], [0], [0], [1], [0, 0, 1, 1], [], []>} : vector<8x8xbf16>, vector<8x8xbf16>, vector<8x8xf32> -> vector<8x8xf32>
    %87 = vector.broadcast %40 : vector<1x8xf32> to vector<8x8xf32>
    %88 = arith.addf %86, %87 : vector<8x8xf32>
    %cst_41 = arith.constant dense<0xFF800000> : vector<8xf32>
    %89 = vector.multi_reduction <maximumf>, %88, %cst_41 [1] : vector<8x8xf32> to vector<8xf32>
    %90 = vector.shape_cast %89 : vector<8xf32> to vector<8x1xf32>
    %91 = vector.broadcast %90 : vector<8x1xf32> to vector<8x8xf32>
    %92 = arith.subf %88, %91 : vector<8x8xf32>
    %93 = math.exp %92 : vector<8x8xf32>
    %cst_42 = arith.constant dense<0.000000e+00> : vector<8xf32>
    %94 = vector.multi_reduction <add>, %93, %cst_42 [1] : vector<8x8xf32> to vector<8xf32>
    %95 = vector.shape_cast %94 : vector<8xf32> to vector<8x1xf32>
    %96 = arith.truncf %93 : vector<8x8xf32> to vector<8x8xbf16>
    %c2_43 = arith.constant 2 : index
    %c0_44 = arith.constant 0 : index
    %c0_45 = arith.constant 0 : index
    %97 = vector.load %arg22[%c2_43, %c0_44, %c0_45] : memref<4x8x8xbf16, #tpu.memory_space<vmem>>, vector<1x8x8xbf16>
    %98 = vector.shape_cast %97 : vector<1x8x8xbf16> to vector<8x8xbf16>
    %cst_46 = arith.constant dense<0.000000e+00> : vector<8x8xf32>
    %99 = tpu.matmul %96, %98, %cst_46 {dimension_numbers = #tpu.dot_dimension_numbers<[1], [0], [0], [1], [0, 0, 1, 1], [], []>} : vector<8x8xbf16>, vector<8x8xbf16>, vector<8x8xf32> -> vector<8x8xf32>
    %100 = tpu.reciprocal %95 {approx = true} : vector<8x1xf32> -> vector<8x1xf32>
    %101 = vector.broadcast %100 : vector<8x1xf32> to vector<8x8xf32>
    %102 = arith.mulf %99, %101 : vector<8x8xf32>
    %103 = arith.truncf %102 : vector<8x8xf32> to vector<8x8xbf16>
    %104 = vector.extract_strided_slice %38 {offsets = [0, 24], sizes = [8, 8], strides = [1, 1]} : vector<8x32xbf16> to vector<8x8xbf16>
    %c3 = arith.constant 3 : index
    %c0_47 = arith.constant 0 : index
    %c0_48 = arith.constant 0 : index
    %105 = vector.load %arg21[%c3, %c0_47, %c0_48] : memref<4x8x8xbf16, #tpu.memory_space<vmem>>, vector<1x8x8xbf16>
    %106 = vector.shape_cast %105 : vector<1x8x8xbf16> to vector<8x8xbf16>
    %cst_49 = arith.constant dense<0.000000e+00> : vector<8x8xf32>
    %107 = tpu.matmul %104, %106, %cst_49 {dimension_numbers = #tpu.dot_dimension_numbers<[1], [0], [0], [1], [0, 0, 1, 1], [], []>} : vector<8x8xbf16>, vector<8x8xbf16>, vector<8x8xf32> -> vector<8x8xf32>
    %108 = vector.broadcast %40 : vector<1x8xf32> to vector<8x8xf32>
    %109 = arith.addf %107, %108 : vector<8x8xf32>
    %cst_50 = arith.constant dense<0xFF800000> : vector<8xf32>
    %110 = vector.multi_reduction <maximumf>, %109, %cst_50 [1] : vector<8x8xf32> to vector<8xf32>
    %111 = vector.shape_cast %110 : vector<8xf32> to vector<8x1xf32>
    %112 = vector.broadcast %111 : vector<8x1xf32> to vector<8x8xf32>
    %113 = arith.subf %109, %112 : vector<8x8xf32>
    %114 = math.exp %113 : vector<8x8xf32>
    %cst_51 = arith.constant dense<0.000000e+00> : vector<8xf32>
    %115 = vector.multi_reduction <add>, %114, %cst_51 [1] : vector<8x8xf32> to vector<8xf32>
    %116 = vector.shape_cast %115 : vector<8xf32> to vector<8x1xf32>
    %117 = arith.truncf %114 : vector<8x8xf32> to vector<8x8xbf16>
    %c3_52 = arith.constant 3 : index
    %c0_53 = arith.constant 0 : index
    %c0_54 = arith.constant 0 : index
    %118 = vector.load %arg22[%c3_52, %c0_53, %c0_54] : memref<4x8x8xbf16, #tpu.memory_space<vmem>>, vector<1x8x8xbf16>
    %119 = vector.shape_cast %118 : vector<1x8x8xbf16> to vector<8x8xbf16>
    %cst_55 = arith.constant dense<0.000000e+00> : vector<8x8xf32>
    %120 = tpu.matmul %117, %119, %cst_55 {dimension_numbers = #tpu.dot_dimension_numbers<[1], [0], [0], [1], [0, 0, 1, 1], [], []>} : vector<8x8xbf16>, vector<8x8xbf16>, vector<8x8xf32> -> vector<8x8xf32>
    %121 = tpu.reciprocal %116 {approx = true} : vector<8x1xf32> -> vector<8x1xf32>
    %122 = vector.broadcast %121 : vector<8x1xf32> to vector<8x8xf32>
    %123 = arith.mulf %120, %122 : vector<8x8xf32>
    %124 = arith.truncf %123 : vector<8x8xf32> to vector<8x8xbf16>
    %125 = tpu.concatenate %61, %82, %103, %124 in 1 : vector<8x8xbf16>, vector<8x8xbf16>, vector<8x8xbf16>, vector<8x8xbf16> -> vector<8x32xbf16>
    %c0_56 = arith.constant 0 : index
    %c0_57 = arith.constant 0 : index
    %126 = vector.load %arg12[%c0_56, %c0_57] : memref<32x32xbf16, #tpu.memory_space<vmem>>, vector<32x32xbf16>
    %cst_58 = arith.constant dense<0.000000e+00> : vector<8x32xf32>
    %127 = tpu.matmul %125, %126, %cst_58 {dimension_numbers = #tpu.dot_dimension_numbers<[1], [0], [0], [1], [0, 0, 1, 1], [], []>} : vector<8x32xbf16>, vector<32x32xbf16>, vector<8x32xf32> -> vector<8x32xf32>
    %c0_59 = arith.constant 0 : index
    %c0_60 = arith.constant 0 : index
    %128 = vector.load %arg13[%c0_59, %c0_60] : memref<1x32xf32, #tpu.memory_space<vmem>>, vector<1x32xf32>
    %129 = vector.broadcast %128 : vector<1x32xf32> to vector<8x32xf32>
    %130 = arith.addf %127, %129 : vector<8x32xf32>
    %131 = arith.addf %7, %130 : vector<8x32xf32>
    %c0_61 = arith.constant 0 : index
    %c0_62 = arith.constant 0 : index
    %132 = vector.load %arg14[%c0_61, %c0_62] : memref<1x32xf32, #tpu.memory_space<vmem>>, vector<1x32xf32>
    %c0_63 = arith.constant 0 : index
    %c0_64 = arith.constant 0 : index
    %133 = vector.load %arg15[%c0_63, %c0_64] : memref<1x32xf32, #tpu.memory_space<vmem>>, vector<1x32xf32>
    %cst_65 = arith.constant dense<0.000000e+00> : vector<8xf32>
    %134 = vector.multi_reduction <add>, %131, %cst_65 [1] : vector<8x32xf32> to vector<8xf32>
    %135 = vector.shape_cast %134 : vector<8xf32> to vector<8x1xf32>
    %cst_66 = arith.constant 3.200000e+01 : f32
    %136 = vector.broadcast %cst_66 : f32 to vector<8x1xf32>
    %137 = arith.divf %135, %136 : vector<8x1xf32>
    %138 = vector.broadcast %137 : vector<8x1xf32> to vector<8x32xf32>
    %139 = arith.subf %131, %138 : vector<8x32xf32>
    %140 = arith.mulf %139, %139 : vector<8x32xf32>
    %cst_67 = arith.constant dense<0.000000e+00> : vector<8xf32>
    %141 = vector.multi_reduction <add>, %140, %cst_67 [1] : vector<8x32xf32> to vector<8xf32>
    %142 = vector.shape_cast %141 : vector<8xf32> to vector<8x1xf32>
    %cst_68 = arith.constant 0.0322580636 : f32
    %143 = vector.broadcast %cst_68 : f32 to vector<8x1xf32>
    %144 = arith.mulf %142, %143 : vector<8x1xf32>
    %145 = math.sqrt %144 : vector<8x1xf32>
    %146 = vector.broadcast %137 : vector<8x1xf32> to vector<8x32xf32>
    %147 = arith.subf %131, %146 : vector<8x32xf32>
    %148 = vector.broadcast %132 : vector<1x32xf32> to vector<8x32xf32>
    %149 = arith.mulf %148, %147 : vector<8x32xf32>
    %cst_69 = arith.constant 9.99999997E-7 : f32
    %150 = vector.broadcast %cst_69 : f32 to vector<8x1xf32>
    %151 = arith.addf %145, %150 : vector<8x1xf32>
    %152 = vector.broadcast %151 : vector<8x1xf32> to vector<8x32xf32>
    %153 = arith.divf %149, %152 : vector<8x32xf32>
    %154 = vector.broadcast %133 : vector<1x32xf32> to vector<8x32xf32>
    %155 = arith.addf %153, %154 : vector<8x32xf32>
    %156 = arith.truncf %155 : vector<8x32xf32> to vector<8x32xbf16>
    %cst_70 = arith.constant 0.000000e+00 : f32
    %157 = vector.broadcast %cst_70 : f32 to vector<8x32xf32>
    %c0_71 = arith.constant 0 : index
    %c0_72 = arith.constant 0 : index
    %c0_73 = arith.constant 0 : index
    %158 = vector.load %arg16[%c0_71, %c0_72, %c0_73] : memref<1x32x64xbf16, #tpu.memory_space<vmem>>, vector<1x32x64xbf16>
    %159 = vector.shape_cast %158 : vector<1x32x64xbf16> to vector<32x64xbf16>
    %cst_74 = arith.constant dense<0.000000e+00> : vector<8x64xf32>
    %160 = tpu.matmul %156, %159, %cst_74 {dimension_numbers = #tpu.dot_dimension_numbers<[1], [0], [0], [1], [0, 0, 1, 1], [], []>} : vector<8x32xbf16>, vector<32x64xbf16>, vector<8x64xf32> -> vector<8x64xf32>
    %c0_75 = arith.constant 0 : index
    %c0_76 = arith.constant 0 : index
    %c0_77 = arith.constant 0 : index
    %161 = vector.load %arg17[%c0_75, %c0_76, %c0_77] : memref<1x1x64xf32, #tpu.memory_space<vmem>>, vector<1x1x64xf32>
    %162 = vector.shape_cast %161 : vector<1x1x64xf32> to vector<1x64xf32>
    %163 = vector.broadcast %162 : vector<1x64xf32> to vector<8x64xf32>
    %164 = arith.addf %160, %163 : vector<8x64xf32>
    %cst_78 = arith.constant 0.000000e+00 : f32
    %165 = vector.broadcast %cst_78 : f32 to vector<8x64xf32>
    %166 = arith.maximumf %164, %165 : vector<8x64xf32>
    %167 = arith.truncf %166 : vector<8x64xf32> to vector<8x64xbf16>
    %c0_79 = arith.constant 0 : index
    %c0_80 = arith.constant 0 : index
    %c0_81 = arith.constant 0 : index
    %168 = vector.load %arg18[%c0_79, %c0_80, %c0_81] : memref<1x64x32xbf16, #tpu.memory_space<vmem>>, vector<1x64x32xbf16>
    %169 = vector.shape_cast %168 : vector<1x64x32xbf16> to vector<64x32xbf16>
    %cst_82 = arith.constant dense<0.000000e+00> : vector<8x32xf32>
    %170 = tpu.matmul %167, %169, %cst_82 {dimension_numbers = #tpu.dot_dimension_numbers<[1], [0], [0], [1], [0, 0, 1, 1], [], []>} : vector<8x64xbf16>, vector<64x32xbf16>, vector<8x32xf32> -> vector<8x32xf32>
    %171 = arith.addf %157, %170 : vector<8x32xf32>
    %172 = arith.addf %131, %171 : vector<8x32xf32>
    %c0_83 = arith.constant 0 : index
    %c0_84 = arith.constant 0 : index
    %173 = vector.load %arg19[%c0_83, %c0_84] : memref<1x32xf32, #tpu.memory_space<vmem>>, vector<1x32xf32>
    %174 = vector.broadcast %173 : vector<1x32xf32> to vector<8x32xf32>
    %175 = arith.addf %172, %174 : vector<8x32xf32>
    %c0_85 = arith.constant 0 : index
    %c0_86 = arith.constant 0 : index
    %c0_87 = arith.constant 0 : index
    %176 = vector.load %arg20[%c0_85, %c0_86, %c0_87] : memref<1x8x32xf32, #tpu.memory_space<vmem>>, vector<1x8x32xf32>
    %177 = vector.shape_cast %176 : vector<1x8x32xf32> to vector<8x32xf32>
    %178 = vector.shape_cast %175 : vector<8x32xf32> to vector<1x8x32xf32>
    tpu.vector_store %arg20[%c0_85, %c0_86, %c0_87], %178 {strides = array<i32>} : memref<1x8x32xf32, #tpu.memory_space<vmem>>, vector<1x8x32xf32>,
    return
  }
  func.func @transform_0(%arg0: i32, %arg1: i32) -> (i32, i32, i32) {
    %c0_i32 = arith.constant 0 : i32
    %c0_i32_0 = arith.constant 0 : i32
    %c0_i32_1 = arith.constant 0 : i32
    return %arg0, %c0_i32, %c0_i32_0 : i32, i32, i32
  }
  func.func @transform_1(%arg0: i32, %arg1: i32) -> (i32, i32, i32) {
    %c0_i32 = arith.constant 0 : i32
    %c0_i32_0 = arith.constant 0 : i32
    %c0_i32_1 = arith.constant 0 : i32
    return %arg0, %c0_i32, %c0_i32_0 : i32, i32, i32
  }
  func.func @transform_2(%arg0: i32, %arg1: i32) -> (i32, i32) {
    %c0_i32 = arith.constant 0 : i32
    %c0_i32_0 = arith.constant 0 : i32
    %c0_i32_1 = arith.constant 0 : i32
    return %c0_i32, %c0_i32_0 : i32, i32
  }
  func.func @transform_3(%arg0: i32, %arg1: i32) -> (i32, i32) {
    %c0_i32 = arith.constant 0 : i32
    %c0_i32_0 = arith.constant 0 : i32
    %c0_i32_1 = arith.constant 0 : i32
    return %c0_i32, %c0_i32_0 : i32, i32
  }
  func.func @transform_4(%arg0: i32, %arg1: i32) -> (i32, i32) {
    %c0_i32 = arith.constant 0 : i32
    %c0_i32_0 = arith.constant 0 : i32
    %c0_i32_1 = arith.constant 0 : i32
    return %c0_i32, %c0_i32_0 : i32, i32
  }
  func.func @transform_5(%arg0: i32, %arg1: i32) -> (i32, i32) {
    %c0_i32 = arith.constant 0 : i32
    %c0_i32_0 = arith.constant 0 : i32
    %c0_i32_1 = arith.constant 0 : i32
    return %c0_i32, %c0_i32_0 : i32, i32
  }
  func.func @transform_6(%arg0: i32, %arg1: i32) -> (i32, i32) {
    %c0_i32 = arith.constant 0 : i32
    %c0_i32_0 = arith.constant 0 : i32
    %c0_i32_1 = arith.constant 0 : i32
    return %c0_i32, %c0_i32_0 : i32, i32
  }
  func.func @transform_7(%arg0: i32, %arg1: i32) -> (i32, i32) {
    %c0_i32 = arith.constant 0 : i32
    %c0_i32_0 = arith.constant 0 : i32
    %c0_i32_1 = arith.constant 0 : i32
    return %c0_i32, %c0_i32_0 : i32, i32
  }
  func.func @transform_8(%arg0: i32, %arg1: i32) -> (i32, i32) {
    %c0_i32 = arith.constant 0 : i32
    %c0_i32_0 = arith.constant 0 : i32
    %c0_i32_1 = arith.constant 0 : i32
    return %c0_i32, %c0_i32_0 : i32, i32
  }
  func.func @transform_9(%arg0: i32, %arg1: i32) -> (i32, i32) {
    %c0_i32 = arith.constant 0 : i32
    %c0_i32_0 = arith.constant 0 : i32
    %c0_i32_1 = arith.constant 0 : i32
    return %c0_i32, %c0_i32_0 : i32, i32
  }
  func.func @transform_10(%arg0: i32, %arg1: i32) -> (i32, i32) {
    %c0_i32 = arith.constant 0 : i32
    %c0_i32_0 = arith.constant 0 : i32
    %c0_i32_1 = arith.constant 0 : i32
    return %c0_i32, %c0_i32_0 : i32, i32
  }
  func.func @transform_11(%arg0: i32, %arg1: i32) -> (i32, i32) {
    %c0_i32 = arith.constant 0 : i32
    %c0_i32_0 = arith.constant 0 : i32
    %c0_i32_1 = arith.constant 0 : i32
    return %c0_i32, %c0_i32_0 : i32, i32
  }
  func.func @transform_12(%arg0: i32, %arg1: i32) -> (i32, i32) {
    %c0_i32 = arith.constant 0 : i32
    %c0_i32_0 = arith.constant 0 : i32
    %c0_i32_1 = arith.constant 0 : i32
    return %c0_i32, %c0_i32_0 : i32, i32
  }
  func.func @transform_13(%arg0: i32, %arg1: i32) -> (i32, i32) {
    %c0_i32 = arith.constant 0 : i32
    %c0_i32_0 = arith.constant 0 : i32
    %c0_i32_1 = arith.constant 0 : i32
    return %c0_i32, %c0_i32_0 : i32, i32
  }
  func.func @transform_14(%arg0: i32, %arg1: i32) -> (i32, i32, i32) {
    %c0_i32 = arith.constant 0 : i32
    %c0_i32_0 = arith.constant 0 : i32
    %c0_i32_1 = arith.constant 0 : i32
    %c0_i32_2 = arith.constant 0 : i32
    return %c0_i32, %c0_i32_0, %c0_i32_1 : i32, i32, i32
  }
  func.func @transform_15(%arg0: i32, %arg1: i32) -> (i32, i32, i32) {
    %c0_i32 = arith.constant 0 : i32
    %c0_i32_0 = arith.constant 0 : i32
    %c0_i32_1 = arith.constant 0 : i32
    %c0_i32_2 = arith.constant 0 : i32
    return %c0_i32, %c0_i32_0, %c0_i32_1 : i32, i32, i32
  }
  func.func @transform_16(%arg0: i32, %arg1: i32) -> (i32, i32, i32) {
    %c0_i32 = arith.constant 0 : i32
    %c0_i32_0 = arith.constant 0 : i32
    %c0_i32_1 = arith.constant 0 : i32
    %c0_i32_2 = arith.constant 0 : i32
    return %c0_i32, %c0_i32_0, %c0_i32_1 : i32, i32, i32
  }
  func.func @transform_17(%arg0: i32, %arg1: i32) -> (i32, i32) {
    %c0_i32 = arith.constant 0 : i32
    %c0_i32_0 = arith.constant 0 : i32
    %c0_i32_1 = arith.constant 0 : i32
    return %c0_i32, %c0_i32_0 : i32, i32
  }
  func.func @transform_18(%arg0: i32, %arg1: i32) -> (i32, i32, i32) {
    %c0_i32 = arith.constant 0 : i32
    %c0_i32_0 = arith.constant 0 : i32
    return %arg0, %arg1, %c0_i32 : i32, i32, i32
  }
}

module attributes {stable_mosaic.version = 11 : i64} {
  func.func @_att_encoder_layer_kernel(%arg0: i32, %arg1: i32, %arg2: memref<1x8x32xf32, #tpu.memory_space<vmem>>, %arg3: memref<1x1x8xf32, #tpu.memory_space<vmem>>, %arg4: memref<1x32xf32, #tpu.memory_space<vmem>>, %arg5: memref<1x32xf32, #tpu.memory_space<vmem>>, %arg6: memref<32x32xbf16, #tpu.memory_space<vmem>>, %arg7: memref<1x32xf32, #tpu.memory_space<vmem>>, %arg8: memref<32x32xbf16, #tpu.memory_space<vmem>>, %arg9: memref<1x32xf32, #tpu.memory_space<vmem>>, %arg10: memref<32x32xbf16, #tpu.memory_space<vmem>>, %arg11: memref<1x32xf32, #tpu.memory_space<vmem>>, %arg12: memref<32x32xbf16, #tpu.memory_space<vmem>>, %arg13: memref<1x32xf32, #tpu.memory_space<vmem>>, %arg14: memref<1x32xf32, #tpu.memory_space<vmem>>, %arg15: memref<1x32xf32, #tpu.memory_space<vmem>>, %arg16: memref<1x32x64xbf16, #tpu.memory_space<vmem>>, %arg17: memref<1x1x64xf32, #tpu.memory_space<vmem>>, %arg18: memref<1x64x32xbf16, #tpu.memory_space<vmem>>, %arg19: memref<1x32xf32, #tpu.memory_space<vmem>>, %arg20: memref<1x8x32xf32, #tpu.memory_space<vmem>>, %arg21: memref<4x8x8xbf16, #tpu.memory_space<vmem>>, %arg22: memref<4x8x8xbf16, #tpu.memory_space<vmem>>) attributes {dimension_semantics = [#tpu.dimension_semantics<parallel>, #tpu.dimension_semantics<arbitrary>], iteration_bounds = array<i64: 2, 1>, scalar_prefetch = 0 : i64, scratch_operands = 2 : i64, tpu.core_type = #tpu.core_type<tc>, window_params = [{transform_indices = @transform_0, window_bounds = array<i64: 1, 8, 32>}, {transform_indices = @transform_1, window_bounds = array<i64: 1, 1, 8>}, {pipeline_mode = #tpu.pipeline_mode<synchronous>, transform_indices = @transform_2, window_bounds = array<i64: 1, 32>}, {pipeline_mode = #tpu.pipeline_mode<synchronous>, transform_indices = @transform_3, window_bounds = array<i64: 1, 32>}, {pipeline_mode = #tpu.pipeline_mode<synchronous>, transform_indices = @transform_4, window_bounds = array<i64: 32, 32>}, {pipeline_mode = #tpu.pipeline_mode<synchronous>, transform_indices = @transform_5, window_bounds = array<i64: 1, 32>}, {pipeline_mode = #tpu.pipeline_mode<synchronous>, transform_indices = @transform_6, window_bounds = array<i64: 32, 32>}, {pipeline_mode = #tpu.pipeline_mode<synchronous>, transform_indices = @transform_7, window_bounds = array<i64: 1, 32>}, {pipeline_mode = #tpu.pipeline_mode<synchronous>, transform_indices = @transform_8, window_bounds = array<i64: 32, 32>}, {pipeline_mode = #tpu.pipeline_mode<synchronous>, transform_indices = @transform_9, window_bounds = array<i64: 1, 32>}, {pipeline_mode = #tpu.pipeline_mode<synchronous>, transform_indices = @transform_10, window_bounds = array<i64: 32, 32>}, {pipeline_mode = #tpu.pipeline_mode<synchronous>, transform_indices = @transform_11, window_bounds = array<i64: 1, 32>}, {pipeline_mode = #tpu.pipeline_mode<synchronous>, transform_indices = @transform_12, window_bounds = array<i64: 1, 32>}, {pipeline_mode = #tpu.pipeline_mode<synchronous>, transform_indices = @transform_13, window_bounds = array<i64: 1, 32>}, {pipeline_mode = #tpu.pipeline_mode<synchronous>, transform_indices = @transform_14, window_bounds = array<i64: 1, 32, 64>}, {pipeline_mode = #tpu.pipeline_mode<synchronous>, transform_indices = @transform_15, window_bounds = array<i64: 1, 1, 64>}, {pipeline_mode = #tpu.pipeline_mode<synchronous>, transform_indices = @transform_16, window_bounds = array<i64: 1, 64, 32>}, {pipeline_mode = #tpu.pipeline_mode<synchronous>, transform_indices = @transform_17, window_bounds = array<i64: 1, 32>}, {transform_indices = @transform_18, window_bounds = array<i64: 1, 8, 32>}]} {
    %c0_i32 = arith.constant 0 : i32
    %0 = arith.cmpi eq, %arg1, %c0_i32 : i32
    %1 = arith.extui %0 : i1 to i32
    %cst = arith.constant 9.99999997E-7 : f32
    %c0_i32_0 = arith.constant 0 : i32
    %2 = arith.cmpi ne, %1, %c0_i32_0 : i32
    scf.if %2 {
      %c0_88 = arith.constant 0 : index
      %c0_89 = arith.constant 0 : index
      %c0_90 = arith.constant 0 : index
      %179 = vector.load %arg2[%c0_88, %c0_89, %c0_90] : memref<1x8x32xf32, #tpu.memory_space<vmem>>, vector<1x8x32xf32>
      %180 = vector.shape_cast %179 : vector<1x8x32xf32> to vector<8x32xf32>
      %c0_91 = arith.constant 0 : index
      %c0_92 = arith.constant 0 : index
      %181 = vector.load %arg4[%c0_91, %c0_92] : memref<1x32xf32, #tpu.memory_space<vmem>>, vector<1x32xf32>
      %c0_93 = arith.constant 0 : index
      %c0_94 = arith.constant 0 : index
      %182 = vector.load %arg5[%c0_93, %c0_94] : memref<1x32xf32, #tpu.memory_space<vmem>>, vector<1x32xf32>
      %cst_95 = arith.constant dense<0.000000e+00> : vector<8xf32>
      %183 = vector.multi_reduction <add>, %180, %cst_95 [1] : vector<8x32xf32> to vector<8xf32>
      %184 = vector.shape_cast %183 : vector<8xf32> to vector<8x1xf32>
      %cst_96 = arith.constant 3.200000e+01 : f32
      %185 = vector.broadcast %cst_96 : f32 to vector<8x1xf32>
      %186 = arith.divf %184, %185 : vector<8x1xf32>
      %187 = vector.broadcast %186 : vector<8x1xf32> to vector<8x32xf32>
      %188 = arith.subf %180, %187 : vector<8x32xf32>
      %189 = arith.mulf %188, %188 : vector<8x32xf32>
      %cst_97 = arith.constant dense<0.000000e+00> : vector<8xf32>
      %190 = vector.multi_reduction <add>, %189, %cst_97 [1] : vector<8x32xf32> to vector<8xf32>
      %191 = vector.shape_cast %190 : vector<8xf32> to vector<8x1xf32>
      %cst_98 = arith.constant 0.0322580636 : f32
      %192 = vector.broadcast %cst_98 : f32 to vector<8x1xf32>
      %193 = arith.mulf %191, %192 : vector<8x1xf32>
      %194 = math.sqrt %193 : vector<8x1xf32>
      %195 = vector.broadcast %186 : vector<8x1xf32> to vector<8x32xf32>
      %196 = arith.subf %180, %195 : vector<8x32xf32>
      %197 = vector.broadcast %181 : vector<1x32xf32> to vector<8x32xf32>
      %198 = arith.mulf %197, %196 : vector<8x32xf32>
      %199 = vector.broadcast %cst : f32 to vector<8x1xf32>
      %200 = arith.addf %194, %199 : vector<8x1xf32>
      %201 = vector.broadcast %200 : vector<8x1xf32> to vector<8x32xf32>
      %202 = arith.divf %198, %201 : vector<8x32xf32>
      %203 = vector.broadcast %182 : vector<1x32xf32> to vector<8x32xf32>
      %204 = arith.addf %202, %203 : vector<8x32xf32>
      %205 = arith.truncf %204 : vector<8x32xf32> to vector<8x32xbf16>
      %c0_99 = arith.constant 0 : index
      %c0_100 = arith.constant 0 : index
      %206 = vector.load %arg8[%c0_99, %c0_100] : memref<32x32xbf16, #tpu.memory_space<vmem>>, vector<32x32xbf16>
      %cst_101 = arith.constant dense<0.000000e+00> : vector<8x32xf32>
      %207 = tpu.matmul %205, %206, %cst_101 {dimension_numbers = #tpu.dot_dimension_numbers<[1], [0], [0], [1], [0, 0, 1, 1], [], []>} : vector<8x32xbf16>, vector<32x32xbf16>, vector<8x32xf32> -> vector<8x32xf32>
      %c0_102 = arith.constant 0 : index
      %c0_103 = arith.constant 0 : index
      %208 = vector.load %arg9[%c0_102, %c0_103] : memref<1x32xf32, #tpu.memory_space<vmem>>, vector<1x32xf32>
      %209 = vector.broadcast %208 : vector<1x32xf32> to vector<8x32xf32>
      %210 = arith.addf %207, %209 : vector<8x32xf32>
      %c0_104 = arith.constant 0 : index
      %c0_105 = arith.constant 0 : index
      %211 = vector.load %arg10[%c0_104, %c0_105] : memref<32x32xbf16, #tpu.memory_space<vmem>>, vector<32x32xbf16>
      %cst_106 = arith.constant dense<0.000000e+00> : vector<8x32xf32>
      %212 = tpu.matmul %205, %211, %cst_106 {dimension_numbers = #tpu.dot_dimension_numbers<[1], [0], [0], [1], [0, 0, 1, 1], [], []>} : vector<8x32xbf16>, vector<32x32xbf16>, vector<8x32xf32> -> vector<8x32xf32>
      %c0_107 = arith.constant 0 : index
      %c0_108 = arith.constant 0 : index
      %213 = vector.load %arg11[%c0_107, %c0_108] : memref<1x32xf32, #tpu.memory_space<vmem>>, vector<1x32xf32>
      %214 = vector.broadcast %213 : vector<1x32xf32> to vector<8x32xf32>
      %215 = arith.addf %212, %214 : vector<8x32xf32>
      %216 = tpu.transpose %210, [1, 0] : vector<8x32xf32> -> vector<32x8xf32>
      %217 = vector.extract_strided_slice %216 {offsets = [0, 0], sizes = [8, 8], strides = [1, 1]} : vector<32x8xf32> to vector<8x8xf32>
      %218 = arith.truncf %217 : vector<8x8xf32> to vector<8x8xbf16>
      %c0_109 = arith.constant 0 : index
      %c0_110 = arith.constant 0 : index
      %c0_111 = arith.constant 0 : index
      %219 = vector.load %arg21[%c0_109, %c0_110, %c0_111] : memref<4x8x8xbf16, #tpu.memory_space<vmem>>, vector<1x8x8xbf16>
      %220 = vector.shape_cast %219 : vector<1x8x8xbf16> to vector<8x8xbf16>
      %221 = vector.shape_cast %218 : vector<8x8xbf16> to vector<1x8x8xbf16>
      tpu.vector_store %arg21[%c0_109, %c0_110, %c0_111], %221 {strides = array<i32>} : memref<4x8x8xbf16, #tpu.memory_space<vmem>>, vector<1x8x8xbf16>,
      %222 = vector.extract_strided_slice %215 {offsets = [0, 0], sizes = [8, 8], strides = [1, 1]} : vector<8x32xf32> to vector<8x8xf32>
      %223 = arith.truncf %222 : vector<8x8xf32> to vector<8x8xbf16>
      %c0_112 = arith.constant 0 : index
      %c0_113 = arith.constant 0 : index
      %c0_114 = arith.constant 0 : index
      %224 = vector.load %arg22[%c0_112, %c0_113, %c0_114] : memref<4x8x8xbf16, #tpu.memory_space<vmem>>, vector<1x8x8xbf16>
      %225 = vector.shape_cast %224 : vector<1x8x8xbf16> to vector<8x8xbf16>
      %226 = vector.shape_cast %223 : vector<8x8xbf16> to vector<1x8x8xbf16>
      tpu.vector_store %arg22[%c0_112, %c0_113, %c0_114], %226 {strides = array<i32>} : memref<4x8x8xbf16, #tpu.memory_space<vmem>>, vector<1x8x8xbf16>,
      %227 = vector.extract_strided_slice %216 {offsets = [8, 0], sizes = [8, 8], strides = [1, 1]} : vector<32x8xf32> to vector<8x8xf32>
      %228 = arith.truncf %227 : vector<8x8xf32> to vector<8x8xbf16>
      %c1_115 = arith.constant 1 : index
      %c0_116 = arith.constant 0 : index
      %c0_117 = arith.constant 0 : index
      %229 = vector.load %arg21[%c1_115, %c0_116, %c0_117] : memref<4x8x8xbf16, #tpu.memory_space<vmem>>, vector<1x8x8xbf16>
      %230 = vector.shape_cast %229 : vector<1x8x8xbf16> to vector<8x8xbf16>
      %231 = vector.shape_cast %228 : vector<8x8xbf16> to vector<1x8x8xbf16>
      tpu.vector_store %arg21[%c1_115, %c0_116, %c0_117], %231 {strides = array<i32>} : memref<4x8x8xbf16, #tpu.memory_space<vmem>>, vector<1x8x8xbf16>,
      %232 = vector.extract_strided_slice %215 {offsets = [0, 8], sizes = [8, 8], strides = [1, 1]} : vector<8x32xf32> to vector<8x8xf32>
      %233 = arith.truncf %232 : vector<8x8xf32> to vector<8x8xbf16>
      %c1_118 = arith.constant 1 : index
      %c0_119 = arith.constant 0 : index
      %c0_120 = arith.constant 0 : index
      %234 = vector.load %arg22[%c1_118, %c0_119, %c0_120] : memref<4x8x8xbf16, #tpu.memory_space<vmem>>, vector<1x8x8xbf16>
      %235 = vector.shape_cast %234 : vector<1x8x8xbf16> to vector<8x8xbf16>
      %236 = vector.shape_cast %233 : vector<8x8xbf16> to vector<1x8x8xbf16>
      tpu.vector_store %arg22[%c1_118, %c0_119, %c0_120], %236 {strides = array<i32>} : memref<4x8x8xbf16, #tpu.memory_space<vmem>>, vector<1x8x8xbf16>,
      %237 = vector.extract_strided_slice %216 {offsets = [16, 0], sizes = [8, 8], strides = [1, 1]} : vector<32x8xf32> to vector<8x8xf32>
      %238 = arith.truncf %237 : vector<8x8xf32> to vector<8x8xbf16>
      %c2_121 = arith.constant 2 : index
      %c0_122 = arith.constant 0 : index
      %c0_123 = arith.constant 0 : index
      %239 = vector.load %arg21[%c2_121, %c0_122, %c0_123] : memref<4x8x8xbf16, #tpu.memory_space<vmem>>, vector<1x8x8xbf16>
      %240 = vector.shape_cast %239 : vector<1x8x8xbf16> to vector<8x8xbf16>
      %241 = vector.shape_cast %238 : vector<8x8xbf16> to vector<1x8x8xbf16>
      tpu.vector_store %arg21[%c2_121, %c0_122, %c0_123], %241 {strides = array<i32>} : memref<4x8x8xbf16, #tpu.memory_space<vmem>>, vector<1x8x8xbf16>,
      %242 = vector.extract_strided_slice %215 {offsets = [0, 16], sizes = [8, 8], strides = [1, 1]} : vector<8x32xf32> to vector<8x8xf32>
      %243 = arith.truncf %242 : vector<8x8xf32> to vector<8x8xbf16>
      %c2_124 = arith.constant 2 : index
      %c0_125 = arith.constant 0 : index
      %c0_126 = arith.constant 0 : index
      %244 = vector.load %arg22[%c2_124, %c0_125, %c0_126] : memref<4x8x8xbf16, #tpu.memory_space<vmem>>, vector<1x8x8xbf16>
      %245 = vector.shape_cast %244 : vector<1x8x8xbf16> to vector<8x8xbf16>
      %246 = vector.shape_cast %243 : vector<8x8xbf16> to vector<1x8x8xbf16>
      tpu.vector_store %arg22[%c2_124, %c0_125, %c0_126], %246 {strides = array<i32>} : memref<4x8x8xbf16, #tpu.memory_space<vmem>>, vector<1x8x8xbf16>,
      %247 = vector.extract_strided_slice %216 {offsets = [24, 0], sizes = [8, 8], strides = [1, 1]} : vector<32x8xf32> to vector<8x8xf32>
      %248 = arith.truncf %247 : vector<8x8xf32> to vector<8x8xbf16>
      %c3_127 = arith.constant 3 : index
      %c0_128 = arith.constant 0 : index
      %c0_129 = arith.constant 0 : index
      %249 = vector.load %arg21[%c3_127, %c0_128, %c0_129] : memref<4x8x8xbf16, #tpu.memory_space<vmem>>, vector<1x8x8xbf16>
      %250 = vector.shape_cast %249 : vector<1x8x8xbf16> to vector<8x8xbf16>
      %251 = vector.shape_cast %248 : vector<8x8xbf16> to vector<1x8x8xbf16>
      tpu.vector_store %arg21[%c3_127, %c0_128, %c0_129], %251 {strides = array<i32>} : memref<4x8x8xbf16, #tpu.memory_space<vmem>>, vector<1x8x8xbf16>,
      %252 = vector.extract_strided_slice %215 {offsets = [0, 24], sizes = [8, 8], strides = [1, 1]} : vector<8x32xf32> to vector<8x8xf32>
      %253 = arith.truncf %252 : vector<8x8xf32> to vector<8x8xbf16>
      %c3_130 = arith.constant 3 : index
      %c0_131 = arith.constant 0 : index
      %c0_132 = arith.constant 0 : index
      %254 = vector.load %arg22[%c3_130, %c0_131, %c0_132] : memref<4x8x8xbf16, #tpu.memory_space<vmem>>, vector<1x8x8xbf16>
      %255 = vector.shape_cast %254 : vector<1x8x8xbf16> to vector<8x8xbf16>
      %256 = vector.shape_cast %253 : vector<8x8xbf16> to vector<1x8x8xbf16>
      tpu.vector_store %arg22[%c3_130, %c0_131, %c0_132], %256 {strides = array<i32>} : memref<4x8x8xbf16, #tpu.memory_space<vmem>>, vector<1x8x8xbf16>,
    } else {
    }
    %c8_i32 = arith.constant 8 : i32
    %3 = arith.muli %arg1, %c8_i32 : i32
    %4 = tpu.assume_multiple %3, 8 : i32
    %c0 = arith.constant 0 : index
    %5 = arith.index_cast %4 : i32 to index
    %c0_1 = arith.constant 0 : index
    %6 = vector.load %arg2[%c0, %5, %c0_1] : memref<1x8x32xf32, #tpu.memory_space<vmem>>, vector<1x8x32xf32>
    %7 = vector.shape_cast %6 : vector<1x8x32xf32> to vector<8x32xf32>
    %c0_2 = arith.constant 0 : index
    %c0_3 = arith.constant 0 : index
    %8 = vector.load %arg4[%c0_2, %c0_3] : memref<1x32xf32, #tpu.memory_space<vmem>>, vector<1x32xf32>
    %c0_4 = arith.constant 0 : index
    %c0_5 = arith.constant 0 : index
    %9 = vector.load %arg5[%c0_4, %c0_5] : memref<1x32xf32, #tpu.memory_space<vmem>>, vector<1x32xf32>
    %cst_6 = arith.constant dense<0.000000e+00> : vector<8xf32>
    %10 = vector.multi_reduction <add>, %7, %cst_6 [1] : vector<8x32xf32> to vector<8xf32>
    %11 = vector.shape_cast %10 : vector<8xf32> to vector<8x1xf32>
    %cst_7 = arith.constant 3.200000e+01 : f32
    %12 = vector.broadcast %cst_7 : f32 to vector<8x1xf32>
    %13 = arith.divf %11, %12 : vector<8x1xf32>
    %14 = vector.broadcast %13 : vector<8x1xf32> to vector<8x32xf32>
    %15 = arith.subf %7, %14 : vector<8x32xf32>
    %16 = arith.mulf %15, %15 : vector<8x32xf32>
    %cst_8 = arith.constant dense<0.000000e+00> : vector<8xf32>
    %17 = vector.multi_reduction <add>, %16, %cst_8 [1] : vector<8x32xf32> to vector<8xf32>
    %18 = vector.shape_cast %17 : vector<8xf32> to vector<8x1xf32>
    %cst_9 = arith.constant 0.0322580636 : f32
    %19 = vector.broadcast %cst_9 : f32 to vector<8x1xf32>
    %20 = arith.mulf %18, %19 : vector<8x1xf32>
    %21 = math.sqrt %20 : vector<8x1xf32>
    %22 = vector.broadcast %13 : vector<8x1xf32> to vector<8x32xf32>
    %23 = arith.subf %7, %22 : vector<8x32xf32>
    %24 = vector.broadcast %8 : vector<1x32xf32> to vector<8x32xf32>
    %25 = arith.mulf %24, %23 : vector<8x32xf32>
    %cst_10 = arith.constant 9.99999997E-7 : f32
    %26 = vector.broadcast %cst_10 : f32 to vector<8x1xf32>
    %27 = arith.addf %21, %26 : vector<8x1xf32>
    %28 = vector.broadcast %27 : vector<8x1xf32> to vector<8x32xf32>
    %29 = arith.divf %25, %28 : vector<8x32xf32>
    %30 = vector.broadcast %9 : vector<1x32xf32> to vector<8x32xf32>
    %31 = arith.addf %29, %30 : vector<8x32xf32>
    %32 = arith.truncf %31 : vector<8x32xf32> to vector<8x32xbf16>
    %c0_11 = arith.constant 0 : index
    %c0_12 = arith.constant 0 : index
    %33 = vector.load %arg6[%c0_11, %c0_12] : memref<32x32xbf16, #tpu.memory_space<vmem>>, vector<32x32xbf16>
    %cst_13 = arith.constant dense<0.000000e+00> : vector<8x32xf32>
    %34 = tpu.matmul %32, %33, %cst_13 {dimension_numbers = #tpu.dot_dimension_numbers<[1], [0], [0], [1], [0, 0, 1, 1], [], []>} : vector<8x32xbf16>, vector<32x32xbf16>, vector<8x32xf32> -> vector<8x32xf32>
    %c0_14 = arith.constant 0 : index
    %c0_15 = arith.constant 0 : index
    %35 = vector.load %arg7[%c0_14, %c0_15] : memref<1x32xf32, #tpu.memory_space<vmem>>, vector<1x32xf32>
    %36 = vector.broadcast %35 : vector<1x32xf32> to vector<8x32xf32>
    %37 = arith.addf %34, %36 : vector<8x32xf32>
    %38 = arith.truncf %37 : vector<8x32xf32> to vector<8x32xbf16>
    %c0_16 = arith.constant 0 : index
    %c0_17 = arith.constant 0 : index
    %c0_18 = arith.constant 0 : index
    %39 = vector.load %arg3[%c0_16, %c0_17, %c0_18] : memref<1x1x8xf32, #tpu.memory_space<vmem>>, vector<1x1x8xf32>
    %40 = vector.shape_cast %39 : vector<1x1x8xf32> to vector<1x8xf32>
    %41 = vector.extract_strided_slice %38 {offsets = [0, 0], sizes = [8, 8], strides = [1, 1]} : vector<8x32xbf16> to vector<8x8xbf16>
    %c0_19 = arith.constant 0 : index
    %c0_20 = arith.constant 0 : index
    %c0_21 = arith.constant 0 : index
    %42 = vector.load %arg21[%c0_19, %c0_20, %c0_21] : memref<4x8x8xbf16, #tpu.memory_space<vmem>>, vector<1x8x8xbf16>
    %43 = vector.shape_cast %42 : vector<1x8x8xbf16> to vector<8x8xbf16>
    %cst_22 = arith.constant dense<0.000000e+00> : vector<8x8xf32>
    %44 = tpu.matmul %41, %43, %cst_22 {dimension_numbers = #tpu.dot_dimension_numbers<[1], [0], [0], [1], [0, 0, 1, 1], [], []>} : vector<8x8xbf16>, vector<8x8xbf16>, vector<8x8xf32> -> vector<8x8xf32>
    %45 = vector.broadcast %40 : vector<1x8xf32> to vector<8x8xf32>
    %46 = arith.addf %44, %45 : vector<8x8xf32>
    %cst_23 = arith.constant dense<0xFF800000> : vector<8xf32>
    %47 = vector.multi_reduction <maximumf>, %46, %cst_23 [1] : vector<8x8xf32> to vector<8xf32>
    %48 = vector.shape_cast %47 : vector<8xf32> to vector<8x1xf32>
    %49 = vector.broadcast %48 : vector<8x1xf32> to vector<8x8xf32>
    %50 = arith.subf %46, %49 : vector<8x8xf32>
    %51 = math.exp %50 : vector<8x8xf32>
    %cst_24 = arith.constant dense<0.000000e+00> : vector<8xf32>
    %52 = vector.multi_reduction <add>, %51, %cst_24 [1] : vector<8x8xf32> to vector<8xf32>
    %53 = vector.shape_cast %52 : vector<8xf32> to vector<8x1xf32>
    %54 = arith.truncf %51 : vector<8x8xf32> to vector<8x8xbf16>
    %c0_25 = arith.constant 0 : index
    %c0_26 = arith.constant 0 : index
    %c0_27 = arith.constant 0 : index
    %55 = vector.load %arg22[%c0_25, %c0_26, %c0_27] : memref<4x8x8xbf16, #tpu.memory_space<vmem>>, vector<1x8x8xbf16>
    %56 = vector.shape_cast %55 : vector<1x8x8xbf16> to vector<8x8xbf16>
    %cst_28 = arith.constant dense<0.000000e+00> : vector<8x8xf32>
    %57 = tpu.matmul %54, %56, %cst_28 {dimension_numbers = #tpu.dot_dimension_numbers<[1], [0], [0], [1], [0, 0, 1, 1], [], []>} : vector<8x8xbf16>, vector<8x8xbf16>, vector<8x8xf32> -> vector<8x8xf32>
    %58 = tpu.reciprocal %53 {approx = true} : vector<8x1xf32> -> vector<8x1xf32>
    %59 = vector.broadcast %58 : vector<8x1xf32> to vector<8x8xf32>
    %60 = arith.mulf %57, %59 : vector<8x8xf32>
    %61 = arith.truncf %60 : vector<8x8xf32> to vector<8x8xbf16>
    %62 = vector.extract_strided_slice %38 {offsets = [0, 8], sizes = [8, 8], strides = [1, 1]} : vector<8x32xbf16> to vector<8x8xbf16>
    %c1 = arith.constant 1 : index
    %c0_29 = arith.constant 0 : index
    %c0_30 = arith.constant 0 : index
    %63 = vector.load %arg21[%c1, %c0_29, %c0_30] : memref<4x8x8xbf16, #tpu.memory_space<vmem>>, vector<1x8x8xbf16>
    %64 = vector.shape_cast %63 : vector<1x8x8xbf16> to vector<8x8xbf16>
    %cst_31 = arith.constant dense<0.000000e+00> : vector<8x8xf32>
    %65 = tpu.matmul %62, %64, %cst_31 {dimension_numbers = #tpu.dot_dimension_numbers<[1], [0], [0], [1], [0, 0, 1, 1], [], []>} : vector<8x8xbf16>, vector<8x8xbf16>, vector<8x8xf32> -> vector<8x8xf32>
    %66 = vector.broadcast %40 : vector<1x8xf32> to vector<8x8xf32>
    %67 = arith.addf %65, %66 : vector<8x8xf32>
    %cst_32 = arith.constant dense<0xFF800000> : vector<8xf32>
    %68 = vector.multi_reduction <maximumf>, %67, %cst_32 [1] : vector<8x8xf32> to vector<8xf32>
    %69 = vector.shape_cast %68 : vector<8xf32> to vector<8x1xf32>
    %70 = vector.broadcast %69 : vector<8x1xf32> to vector<8x8xf32>
    %71 = arith.subf %67, %70 : vector<8x8xf32>
    %72 = math.exp %71 : vector<8x8xf32>
    %cst_33 = arith.constant dense<0.000000e+00> : vector<8xf32>
    %73 = vector.multi_reduction <add>, %72, %cst_33 [1] : vector<8x8xf32> to vector<8xf32>
    %74 = vector.shape_cast %73 : vector<8xf32> to vector<8x1xf32>
    %75 = arith.truncf %72 : vector<8x8xf32> to vector<8x8xbf16>
    %c1_34 = arith.constant 1 : index
    %c0_35 = arith.constant 0 : index
    %c0_36 = arith.constant 0 : index
    %76 = vector.load %arg22[%c1_34, %c0_35, %c0_36] : memref<4x8x8xbf16, #tpu.memory_space<vmem>>, vector<1x8x8xbf16>
    %77 = vector.shape_cast %76 : vector<1x8x8xbf16> to vector<8x8xbf16>
    %cst_37 = arith.constant dense<0.000000e+00> : vector<8x8xf32>
    %78 = tpu.matmul %75, %77, %cst_37 {dimension_numbers = #tpu.dot_dimension_numbers<[1], [0], [0], [1], [0, 0, 1, 1], [], []>} : vector<8x8xbf16>, vector<8x8xbf16>, vector<8x8xf32> -> vector<8x8xf32>
    %79 = tpu.reciprocal %74 {approx = true} : vector<8x1xf32> -> vector<8x1xf32>
    %80 = vector.broadcast %79 : vector<8x1xf32> to vector<8x8xf32>
    %81 = arith.mulf %78, %80 : vector<8x8xf32>
    %82 = arith.truncf %81 : vector<8x8xf32> to vector<8x8xbf16>
    %83 = vector.extract_strided_slice %38 {offsets = [0, 16], sizes = [8, 8], strides = [1, 1]} : vector<8x32xbf16> to vector<8x8xbf16>
    %c2 = arith.constant 2 : index
    %c0_38 = arith.constant 0 : index
    %c0_39 = arith.constant 0 : index
    %84 = vector.load %arg21[%c2, %c0_38, %c0_39] : memref<4x8x8xbf16, #tpu.memory_space<vmem>>, vector<1x8x8xbf16>
    %85 = vector.shape_cast %84 : vector<1x8x8xbf16> to vector<8x8xbf16>
    %cst_40 = arith.constant dense<0.000000e+00> : vector<8x8xf32>
    %86 = tpu.matmul %83, %85, %cst_40 {dimension_numbers = #tpu.dot_dimension_numbers<[1], [0], [0], [1], [0, 0, 1, 1], [], []>} : vector<8x8xbf16>, vector<8x8xbf16>, vector<8x8xf32> -> vector<8x8xf32>
    %87 = vector.broadcast %40 : vector<1x8xf32> to vector<8x8xf32>
    %88 = arith.addf %86, %87 : vector<8x8xf32>
    %cst_41 = arith.constant dense<0xFF800000> : vector<8xf32>
    %89 = vector.multi_reduction <maximumf>, %88, %cst_41 [1] : vector<8x8xf32> to vector<8xf32>
    %90 = vector.shape_cast %89 : vector<8xf32> to vector<8x1xf32>
    %91 = vector.broadcast %90 : vector<8x1xf32> to vector<8x8xf32>
    %92 = arith.subf %88, %91 : vector<8x8xf32>
    %93 = math.exp %92 : vector<8x8xf32>
    %cst_42 = arith.constant dense<0.000000e+00> : vector<8xf32>
    %94 = vector.multi_reduction <add>, %93, %cst_42 [1] : vector<8x8xf32> to vector<8xf32>
    %95 = vector.shape_cast %94 : vector<8xf32> to vector<8x1xf32>
    %96 = arith.truncf %93 : vector<8x8xf32> to vector<8x8xbf16>
    %c2_43 = arith.constant 2 : index
    %c0_44 = arith.constant 0 : index
    %c0_45 = arith.constant 0 : index
    %97 = vector.load %arg22[%c2_43, %c0_44, %c0_45] : memref<4x8x8xbf16, #tpu.memory_space<vmem>>, vector<1x8x8xbf16>
    %98 = vector.shape_cast %97 : vector<1x8x8xbf16> to vector<8x8xbf16>
    %cst_46 = arith.constant dense<0.000000e+00> : vector<8x8xf32>
    %99 = tpu.matmul %96, %98, %cst_46 {dimension_numbers = #tpu.dot_dimension_numbers<[1], [0], [0], [1], [0, 0, 1, 1], [], []>} : vector<8x8xbf16>, vector<8x8xbf16>, vector<8x8xf32> -> vector<8x8xf32>
    %100 = tpu.reciprocal %95 {approx = true} : vector<8x1xf32> -> vector<8x1xf32>
    %101 = vector.broadcast %100 : vector<8x1xf32> to vector<8x8xf32>
    %102 = arith.mulf %99, %101 : vector<8x8xf32>
    %103 = arith.truncf %102 : vector<8x8xf32> to vector<8x8xbf16>
    %104 = vector.extract_strided_slice %38 {offsets = [0, 24], sizes = [8, 8], strides = [1, 1]} : vector<8x32xbf16> to vector<8x8xbf16>
    %c3 = arith.constant 3 : index
    %c0_47 = arith.constant 0 : index
    %c0_48 = arith.constant 0 : index
    %105 = vector.load %arg21[%c3, %c0_47, %c0_48] : memref<4x8x8xbf16, #tpu.memory_space<vmem>>, vector<1x8x8xbf16>
    %106 = vector.shape_cast %105 : vector<1x8x8xbf16> to vector<8x8xbf16>
    %cst_49 = arith.constant dense<0.000000e+00> : vector<8x8xf32>
    %107 = tpu.matmul %104, %106, %cst_49 {dimension_numbers = #tpu.dot_dimension_numbers<[1], [0], [0], [1], [0, 0, 1, 1], [], []>} : vector<8x8xbf16>, vector<8x8xbf16>, vector<8x8xf32> -> vector<8x8xf32>
    %108 = vector.broadcast %40 : vector<1x8xf32> to vector<8x8xf32>
    %109 = arith.addf %107, %108 : vector<8x8xf32>
    %cst_50 = arith.constant dense<0xFF800000> : vector<8xf32>
    %110 = vector.multi_reduction <maximumf>, %109, %cst_50 [1] : vector<8x8xf32> to vector<8xf32>
    %111 = vector.shape_cast %110 : vector<8xf32> to vector<8x1xf32>
    %112 = vector.broadcast %111 : vector<8x1xf32> to vector<8x8xf32>
    %113 = arith.subf %109, %112 : vector<8x8xf32>
    %114 = math.exp %113 : vector<8x8xf32>
    %cst_51 = arith.constant dense<0.000000e+00> : vector<8xf32>
    %115 = vector.multi_reduction <add>, %114, %cst_51 [1] : vector<8x8xf32> to vector<8xf32>
    %116 = vector.shape_cast %115 : vector<8xf32> to vector<8x1xf32>
    %117 = arith.truncf %114 : vector<8x8xf32> to vector<8x8xbf16>
    %c3_52 = arith.constant 3 : index
    %c0_53 = arith.constant 0 : index
    %c0_54 = arith.constant 0 : index
    %118 = vector.load %arg22[%c3_52, %c0_53, %c0_54] : memref<4x8x8xbf16, #tpu.memory_space<vmem>>, vector<1x8x8xbf16>
    %119 = vector.shape_cast %118 : vector<1x8x8xbf16> to vector<8x8xbf16>
    %cst_55 = arith.constant dense<0.000000e+00> : vector<8x8xf32>
    %120 = tpu.matmul %117, %119, %cst_55 {dimension_numbers = #tpu.dot_dimension_numbers<[1], [0], [0], [1], [0, 0, 1, 1], [], []>} : vector<8x8xbf16>, vector<8x8xbf16>, vector<8x8xf32> -> vector<8x8xf32>
    %121 = tpu.reciprocal %116 {approx = true} : vector<8x1xf32> -> vector<8x1xf32>
    %122 = vector.broadcast %121 : vector<8x1xf32> to vector<8x8xf32>
    %123 = arith.mulf %120, %122 : vector<8x8xf32>
    %124 = arith.truncf %123 : vector<8x8xf32> to vector<8x8xbf16>
    %125 = tpu.concatenate %61, %82, %103, %124 in 1 : vector<8x8xbf16>, vector<8x8xbf16>, vector<8x8xbf16>, vector<8x8xbf16> -> vector<8x32xbf16>
    %c0_56 = arith.constant 0 : index
    %c0_57 = arith.constant 0 : index
    %126 = vector.load %arg12[%c0_56, %c0_57] : memref<32x32xbf16, #tpu.memory_space<vmem>>, vector<32x32xbf16>
    %cst_58 = arith.constant dense<0.000000e+00> : vector<8x32xf32>
    %127 = tpu.matmul %125, %126, %cst_58 {dimension_numbers = #tpu.dot_dimension_numbers<[1], [0], [0], [1], [0, 0, 1, 1], [], []>} : vector<8x32xbf16>, vector<32x32xbf16>, vector<8x32xf32> -> vector<8x32xf32>
    %c0_59 = arith.constant 0 : index
    %c0_60 = arith.constant 0 : index
    %128 = vector.load %arg13[%c0_59, %c0_60] : memref<1x32xf32, #tpu.memory_space<vmem>>, vector<1x32xf32>
    %129 = vector.broadcast %128 : vector<1x32xf32> to vector<8x32xf32>
    %130 = arith.addf %127, %129 : vector<8x32xf32>
    %131 = arith.addf %7, %130 : vector<8x32xf32>
    %c0_61 = arith.constant 0 : index
    %c0_62 = arith.constant 0 : index
    %132 = vector.load %arg14[%c0_61, %c0_62] : memref<1x32xf32, #tpu.memory_space<vmem>>, vector<1x32xf32>
    %c0_63 = arith.constant 0 : index
    %c0_64 = arith.constant 0 : index
    %133 = vector.load %arg15[%c0_63, %c0_64] : memref<1x32xf32, #tpu.memory_space<vmem>>, vector<1x32xf32>
    %cst_65 = arith.constant dense<0.000000e+00> : vector<8xf32>
    %134 = vector.multi_reduction <add>, %131, %cst_65 [1] : vector<8x32xf32> to vector<8xf32>
    %135 = vector.shape_cast %134 : vector<8xf32> to vector<8x1xf32>
    %cst_66 = arith.constant 3.200000e+01 : f32
    %136 = vector.broadcast %cst_66 : f32 to vector<8x1xf32>
    %137 = arith.divf %135, %136 : vector<8x1xf32>
    %138 = vector.broadcast %137 : vector<8x1xf32> to vector<8x32xf32>
    %139 = arith.subf %131, %138 : vector<8x32xf32>
    %140 = arith.mulf %139, %139 : vector<8x32xf32>
    %cst_67 = arith.constant dense<0.000000e+00> : vector<8xf32>
    %141 = vector.multi_reduction <add>, %140, %cst_67 [1] : vector<8x32xf32> to vector<8xf32>
    %142 = vector.shape_cast %141 : vector<8xf32> to vector<8x1xf32>
    %cst_68 = arith.constant 0.0322580636 : f32
    %143 = vector.broadcast %cst_68 : f32 to vector<8x1xf32>
    %144 = arith.mulf %142, %143 : vector<8x1xf32>
    %145 = math.sqrt %144 : vector<8x1xf32>
    %146 = vector.broadcast %137 : vector<8x1xf32> to vector<8x32xf32>
    %147 = arith.subf %131, %146 : vector<8x32xf32>
    %148 = vector.broadcast %132 : vector<1x32xf32> to vector<8x32xf32>
    %149 = arith.mulf %148, %147 : vector<8x32xf32>
    %cst_69 = arith.constant 9.99999997E-7 : f32
    %150 = vector.broadcast %cst_69 : f32 to vector<8x1xf32>
    %151 = arith.addf %145, %150 : vector<8x1xf32>
    %152 = vector.broadcast %151 : vector<8x1xf32> to vector<8x32xf32>
    %153 = arith.divf %149, %152 : vector<8x32xf32>
    %154 = vector.broadcast %133 : vector<1x32xf32> to vector<8x32xf32>
    %155 = arith.addf %153, %154 : vector<8x32xf32>
    %156 = arith.truncf %155 : vector<8x32xf32> to vector<8x32xbf16>
    %cst_70 = arith.constant 0.000000e+00 : f32
    %157 = vector.broadcast %cst_70 : f32 to vector<8x32xf32>
    %c0_71 = arith.constant 0 : index
    %c0_72 = arith.constant 0 : index
    %c0_73 = arith.constant 0 : index
    %158 = vector.load %arg16[%c0_71, %c0_72, %c0_73] : memref<1x32x64xbf16, #tpu.memory_space<vmem>>, vector<1x32x64xbf16>
    %159 = vector.shape_cast %158 : vector<1x32x64xbf16> to vector<32x64xbf16>
    %cst_74 = arith.constant dense<0.000000e+00> : vector<8x64xf32>
    %160 = tpu.matmul %156, %159, %cst_74 {dimension_numbers = #tpu.dot_dimension_numbers<[1], [0], [0], [1], [0, 0, 1, 1], [], []>} : vector<8x32xbf16>, vector<32x64xbf16>, vector<8x64xf32> -> vector<8x64xf32>
    %c0_75 = arith.constant 0 : index
    %c0_76 = arith.constant 0 : index
    %c0_77 = arith.constant 0 : index
    %161 = vector.load %arg17[%c0_75, %c0_76, %c0_77] : memref<1x1x64xf32, #tpu.memory_space<vmem>>, vector<1x1x64xf32>
    %162 = vector.shape_cast %161 : vector<1x1x64xf32> to vector<1x64xf32>
    %163 = vector.broadcast %162 : vector<1x64xf32> to vector<8x64xf32>
    %164 = arith.addf %160, %163 : vector<8x64xf32>
    %cst_78 = arith.constant 0.000000e+00 : f32
    %165 = vector.broadcast %cst_78 : f32 to vector<8x64xf32>
    %166 = arith.maximumf %164, %165 : vector<8x64xf32>
    %167 = arith.truncf %166 : vector<8x64xf32> to vector<8x64xbf16>
    %c0_79 = arith.constant 0 : index
    %c0_80 = arith.constant 0 : index
    %c0_81 = arith.constant 0 : index
    %168 = vector.load %arg18[%c0_79, %c0_80, %c0_81] : memref<1x64x32xbf16, #tpu.memory_space<vmem>>, vector<1x64x32xbf16>
    %169 = vector.shape_cast %168 : vector<1x64x32xbf16> to vector<64x32xbf16>
    %cst_82 = arith.constant dense<0.000000e+00> : vector<8x32xf32>
    %170 = tpu.matmul %167, %169, %cst_82 {dimension_numbers = #tpu.dot_dimension_numbers<[1], [0], [0], [1], [0, 0, 1, 1], [], []>} : vector<8x64xbf16>, vector<64x32xbf16>, vector<8x32xf32> -> vector<8x32xf32>
    %171 = arith.addf %157, %170 : vector<8x32xf32>
    %172 = arith.addf %131, %171 : vector<8x32xf32>
    %c0_83 = arith.constant 0 : index
    %c0_84 = arith.constant 0 : index
    %173 = vector.load %arg19[%c0_83, %c0_84] : memref<1x32xf32, #tpu.memory_space<vmem>>, vector<1x32xf32>
    %174 = vector.broadcast %173 : vector<1x32xf32> to vector<8x32xf32>
    %175 = arith.addf %172, %174 : vector<8x32xf32>
    %c0_85 = arith.constant 0 : index
    %c0_86 = arith.constant 0 : index
    %c0_87 = arith.constant 0 : index
    %176 = vector.load %arg20[%c0_85, %c0_86, %c0_87] : memref<1x8x32xf32, #tpu.memory_space<vmem>>, vector<1x8x32xf32>
    %177 = vector.shape_cast %176 : vector<1x8x32xf32> to vector<8x32xf32>
    %178 = vector.shape_cast %175 : vector<8x32xf32> to vector<1x8x32xf32>
    tpu.vector_store %arg20[%c0_85, %c0_86, %c0_87], %178 {strides = array<i32>} : memref<1x8x32xf32, #tpu.memory_space<vmem>>, vector<1x8x32xf32>,
    return
  }
  func.func @transform_0(%arg0: i32, %arg1: i32) -> (i32, i32, i32) {
    %c0_i32 = arith.constant 0 : i32
    %c0_i32_0 = arith.constant 0 : i32
    %c0_i32_1 = arith.constant 0 : i32
    return %arg0, %c0_i32, %c0_i32_0 : i32, i32, i32
  }
  func.func @transform_1(%arg0: i32, %arg1: i32) -> (i32, i32, i32) {
    %c0_i32 = arith.constant 0 : i32
    %c0_i32_0 = arith.constant 0 : i32
    %c0_i32_1 = arith.constant 0 : i32
    return %arg0, %c0_i32, %c0_i32_0 : i32, i32, i32
  }
  func.func @transform_2(%arg0: i32, %arg1: i32) -> (i32, i32) {
    %c0_i32 = arith.constant 0 : i32
    %c0_i32_0 = arith.constant 0 : i32
    %c0_i32_1 = arith.constant 0 : i32
    return %c0_i32, %c0_i32_0 : i32, i32
  }
  func.func @transform_3(%arg0: i32, %arg1: i32) -> (i32, i32) {
    %c0_i32 = arith.constant 0 : i32
    %c0_i32_0 = arith.constant 0 : i32
    %c0_i32_1 = arith.constant 0 : i32
    return %c0_i32, %c0_i32_0 : i32, i32
  }
  func.func @transform_4(%arg0: i32, %arg1: i32) -> (i32, i32) {
    %c0_i32 = arith.constant 0 : i32
    %c0_i32_0 = arith.constant 0 : i32
    %c0_i32_1 = arith.constant 0 : i32
    return %c0_i32, %c0_i32_0 : i32, i32
  }
  func.func @transform_5(%arg0: i32, %arg1: i32) -> (i32, i32) {
    %c0_i32 = arith.constant 0 : i32
    %c0_i32_0 = arith.constant 0 : i32
    %c0_i32_1 = arith.constant 0 : i32
    return %c0_i32, %c0_i32_0 : i32, i32
  }
  func.func @transform_6(%arg0: i32, %arg1: i32) -> (i32, i32) {
    %c0_i32 = arith.constant 0 : i32
    %c0_i32_0 = arith.constant 0 : i32
    %c0_i32_1 = arith.constant 0 : i32
    return %c0_i32, %c0_i32_0 : i32, i32
  }
  func.func @transform_7(%arg0: i32, %arg1: i32) -> (i32, i32) {
    %c0_i32 = arith.constant 0 : i32
    %c0_i32_0 = arith.constant 0 : i32
    %c0_i32_1 = arith.constant 0 : i32
    return %c0_i32, %c0_i32_0 : i32, i32
  }
  func.func @transform_8(%arg0: i32, %arg1: i32) -> (i32, i32) {
    %c0_i32 = arith.constant 0 : i32
    %c0_i32_0 = arith.constant 0 : i32
    %c0_i32_1 = arith.constant 0 : i32
    return %c0_i32, %c0_i32_0 : i32, i32
  }
  func.func @transform_9(%arg0: i32, %arg1: i32) -> (i32, i32) {
    %c0_i32 = arith.constant 0 : i32
    %c0_i32_0 = arith.constant 0 : i32
    %c0_i32_1 = arith.constant 0 : i32
    return %c0_i32, %c0_i32_0 : i32, i32
  }
  func.func @transform_10(%arg0: i32, %arg1: i32) -> (i32, i32) {
    %c0_i32 = arith.constant 0 : i32
    %c0_i32_0 = arith.constant 0 : i32
    %c0_i32_1 = arith.constant 0 : i32
    return %c0_i32, %c0_i32_0 : i32, i32
  }
  func.func @transform_11(%arg0: i32, %arg1: i32) -> (i32, i32) {
    %c0_i32 = arith.constant 0 : i32
    %c0_i32_0 = arith.constant 0 : i32
    %c0_i32_1 = arith.constant 0 : i32
    return %c0_i32, %c0_i32_0 : i32, i32
  }
  func.func @transform_12(%arg0: i32, %arg1: i32) -> (i32, i32) {
    %c0_i32 = arith.constant 0 : i32
    %c0_i32_0 = arith.constant 0 : i32
    %c0_i32_1 = arith.constant 0 : i32
    return %c0_i32, %c0_i32_0 : i32, i32
  }
  func.func @transform_13(%arg0: i32, %arg1: i32) -> (i32, i32) {
    %c0_i32 = arith.constant 0 : i32
    %c0_i32_0 = arith.constant 0 : i32
    %c0_i32_1 = arith.constant 0 : i32
    return %c0_i32, %c0_i32_0 : i32, i32
  }
  func.func @transform_14(%arg0: i32, %arg1: i32) -> (i32, i32, i32) {
    %c0_i32 = arith.constant 0 : i32
    %c0_i32_0 = arith.constant 0 : i32
    %c0_i32_1 = arith.constant 0 : i32
    %c0_i32_2 = arith.constant 0 : i32
    return %c0_i32, %c0_i32_0, %c0_i32_1 : i32, i32, i32
  }
  func.func @transform_15(%arg0: i32, %arg1: i32) -> (i32, i32, i32) {
    %c0_i32 = arith.constant 0 : i32
    %c0_i32_0 = arith.constant 0 : i32
    %c0_i32_1 = arith.constant 0 : i32
    %c0_i32_2 = arith.constant 0 : i32
    return %c0_i32, %c0_i32_0, %c0_i32_1 : i32, i32, i32
  }
  func.func @transform_16(%arg0: i32, %arg1: i32) -> (i32, i32, i32) {
    %c0_i32 = arith.constant 0 : i32
    %c0_i32_0 = arith.constant 0 : i32
    %c0_i32_1 = arith.constant 0 : i32
    %c0_i32_2 = arith.constant 0 : i32
    return %c0_i32, %c0_i32_0, %c0_i32_1 : i32, i32, i32
  }
  func.func @transform_17(%arg0: i32, %arg1: i32) -> (i32, i32) {
    %c0_i32 = arith.constant 0 : i32
    %c0_i32_0 = arith.constant 0 : i32
    %c0_i32_1 = arith.constant 0 : i32
    return %c0_i32, %c0_i32_0 : i32, i32
  }
  func.func @transform_18(%arg0: i32, %arg1: i32) -> (i32, i32, i32) {
    %c0_i32 = arith.constant 0 : i32
    %c0_i32_0 = arith.constant 0 : i32
    return %arg0, %arg1, %c0_i32 : i32, i32, i32
  }
}

</mosaic_0001>

<bundles_post_ra>
// kernel: tpu_custom_call.1
= control target key start
LH: loop header
LB: loop body
LE: loop exit
PB: predicated region body
PF: predicated region fallthrough
CT: control target
= control target key end

     0   :  { %s3369_s0 = inlined_call_operand.vmem [shape: f32[2,8,32], index: 0, kind: input, shape index: {}]   ;;  %s3370_s1 = inlined_call_operand.hbm [shape: f32[2,1,8], index: 1, kind: input, shape index: {}]   ;;  %s3371_s2 = inlined_call_operand.vmem [shape: f32[1,32], index: 2, kind: input, shape index: {}]   ;;  %s3372_s3 = inlined_call_operand.hbm [shape: f32[1,32], index: 3, kind: input, shape index: {}]   ;;  %s3373_s4 = inlined_call_operand.vmem [shape: bf16[32,32], index: 4, kind: input, shape index: {}]   ;;  %s3374_s5 = inlined_call_operand.hbm [shape: f32[1,32], index: 5, kind: input, shape index: {}]   ;;  %s3375_s6 = inlined_call_operand.vmem [shape: bf16[32,32], index: 6, kind: input, shape index: {}]   ;;  %s3376_s7 = inlined_call_operand.hbm [shape: f32[1,32], index: 7, kind: input, shape index: {}]   ;;  %s3377_s8 = inlined_call_operand.hbm [shape: bf16[32,32], index: 8, kind: input, shape index: {}]   ;;  %s3378_s9 = inlined_call_operand.hbm [shape: f32[1,32], index: 9, kind: input, shape index: {}]   ;;  %s3379_s10 = inlined_call_operand.vmem [shape: bf16[32,32], index: 10, kind: input, shape index: {}]   ;;  %s3380_s11 = inlined_call_operand.hbm [shape: f32[1,32], index: 11, kind: input, shape index: {}]   ;;  %s3381_s12 = inlined_call_operand.hbm [shape: f32[1,32], index: 12, kind: input, shape index: {}]   ;;  %s3382_s13 = inlined_call_operand.hbm [shape: f32[1,32], index: 13, kind: input, shape index: {}]   ;;  %s3383_s14 = inlined_call_operand.vmem [shape: bf16[1,32,64], index: 14, kind: input, shape index: {}]   ;;  %s3384_s15 = inlined_call_operand.vmem [shape: f32[1,1,64], index: 15, kind: input, shape index: {}]   ;;  %s3385_s16 = inlined_call_operand.vmem [shape: bf16[1,64,32], index: 16, kind: input, shape index: {}]   ;;  %s3386_s17 = inlined_call_operand.vmem [shape: f32[1,32], index: 17, kind: input, shape index: {}]   ;;  %s3387_s18 = inlined_call_operand.hbm [shape: f32[2,8,32], index: 18, kind: output, shape index: {}]  }
   0x1   :  { %3410 = sst [smem:[#allocation29_spill]] %s3369_s0 }
   0x2   :  { %3411 = sst [smem:[#allocation30_spill]] %s3370_s1 }
   0x3   :  { %3412 = sst [smem:[#allocation31_spill]] %s3371_s2 }
   0x4   :  { %3413 = sst [smem:[#allocation32_spill]] %s3372_s3 }
   0x5   :  { %3414 = sst [smem:[#allocation33_spill]] %s3373_s4 }
   0x6   :  { %3415 = sst [smem:[#allocation34_spill]] %s3374_s5 }
   0x7   :  { %3416 = sst [smem:[#allocation35_spill]] %s3375_s6 }
   0x8   :  { %3417 = sst [smem:[#allocation36_spill]] %s3376_s7 }
   0x9   :  { %3418 = sst [smem:[#allocation37_spill]] %s3378_s9 }
   0xa   :  { %3419 = sst [smem:[#allocation38_spill]] %s3379_s10 }
   0xb   :  { %3420 = sst [smem:[#allocation39_spill]] %s3381_s12 }
   0xc   :  { %3421 = sst [smem:[#allocation40_spill]] %s3383_s14 }
   0xd   :  { %3422 = sst [smem:[#allocation41_spill]] %s3384_s15 }
   0xe   :  { %3423 = sst [smem:[#allocation42_spill]] %s3385_s16 }
   0xf   :  { %3424 = sst [smem:[#allocation43_spill]] %s3386_s17 }
  0x10   :  { %3425 = sst [smem:[#allocation44_spill]] %s3387_s18 }
  0x11   :  { %23 = vsyncpa [#allocation5], 0 }
  0x12   :  { %24 = vsyncpa [#allocation8], 0 }
  0x13   :  { %25 = vsyncpa [#allocation11], 0 }
  0x14   :  { %26 = vsyncpa [#allocation14], 0 }
  0x15   :  { %27 = vsyncpa [#allocation17], 0 }
  0x16   :  { %28 = vsyncpa [#allocation6], 0 }
  0x17   :  { %30 = vsyncpa [#allocation6 + $0x1], 0  ;;  %s2826_s27 = smov 0   ;;  %s2828_s28 = smov 0  }
  0x18   :  { %s2830_s29 = smov 0   ;;  %s2832_s30 = smov 0  }
  0x19   :  { %s2834_s0 = smov 0   ;;  %s2836_s19 = smov 0  }
  0x1a LB: > { %3426 = sst [smem:[#allocation26_spill]] %s2705_s0  ;;  %s2711_s1 = smov [#allocation7]   ;;  %s2709_s19 = sphi %s2836_s19, %s36_s19   ;;  %s2705_s0 = sphi %s2834_s0, %s3465_s0   ;;  %s2701_s30 = sphi %s2832_s30, %s3464_s30   ;;  %s2697_s29 = sphi %s2830_s29, %s3468_s29   ;;  %s2693_s28 = sphi %s2828_s28, %s3467_s28   ;;  %s2689_s27 = sphi %s2826_s27, %s3466_s27  }
  0x1b   : > { %s505_s20 = sshll.u32 %s2711_s1, 4  ;;  %s3389_s21 = sadd.s32 4294967295, %s2709_s19   ;;  %s2865_s20 = int_to_ptr.vmem [resolvable:$true] %s505_s20 }
  0x1c   : > { %p1959_p0 = scmp.ge.s32.totalorder %s2709_s19, 1  ;;  %p2860_p1 = scmp.eq.s32.totalorder %s3389_s21, 0 }
  0x1d   : > { %p469_p2 = scmp.lt.s32.totalorder %s2709_s19, 3  ;;  %s2712_s23 = smov [#allocation10]  }
  0x1e   : > { %s3427_s22 = scalar_select %p2860_p1, 1, 0 }
  0x1f   : > { %p2867_p3 = pnand %p1959_p0, %p469_p2  ;;  %s533_s24 = sshll.u32 %s2712_s23, 4  ;;  %s2873_s24 = int_to_ptr.vmem [resolvable:$true] %s533_s24 }
  0x20   : > { %s2713_s25 = smov [#allocation13]   ;;  %s2714_s21 = smov [#allocation16]  }
  0x21   : > { %s3428_s2 = scalar_select %p2867_p3, 1, 0 }
  0x22   : > { %p3394_p4 = pneg %p2867_p3  ;;  %s557_s26 = sshll.u32 %s2713_s25, 4  ;;  %s2884_s26 = int_to_ptr.vmem [resolvable:$true] %s557_s26 }
  0x23   : > { %s582_s18 = sshll.u32 %s2714_s21, 4  ;;  %s3430_s3 = sld [smem:[#allocation32_spill]]  ;;  %s2886_s18 = int_to_ptr.vmem [resolvable:$true] %s582_s18 }
  0x24   : > { %p2880_p5 = pnand %p3394_p4, %p2860_p1 }
  0x26   : > { %s3429_s1 = scalar_select %p2880_p5, 1, 0 }
  0x27   : > { %p2896_p7 = pneg %p2880_p5 }
  0x29   : > { %s2357_s15 = scalar_lea.hbm %s3430_s3, 16 }
  0x2a   : > { %p2358_p6 = scmp.ne.s32.totalorder %s3430_s3, %s2357_s15  ;;  %p2364_p10 = scmp.lt.u32.totalorder %s2357_s15, %s3430_s3 }
  0x2b   : > { %s3431_s14 = scalar_select %p2896_p7, 1, 0 }
  0x2c   : > { %p2360_p8 = pnand %p2896_p7, %p2358_p6 }
  0x2e   : > { %p2361_p9 = pneg %p2360_p8 }
  0x30   : > { %p2366_p11 = pnand %p2364_p10, %p2361_p9 }
  0x32   : > { %2369 = shalt.err (!%p2366_p11)
}
  0x33   : > { %s2370_s16 = scalar_lea.vmem %s2865_s20, 16  ;;  %s2377_s17 = scalar_lea.vmem %s2865_s20, 32 }
  0x34   : > { %p2371_p12 = scmp.ne.s32.totalorder %s2865_s20, %s2370_s16  ;;  %p2378_p2 = scmp.lt.s32.totalorder %s2865_s20, %s2865_s20 }
  0x35   : > { %p2379_p6 = scmp.lt.s32.totalorder %s2377_s17, %s2370_s16 }
  0x36   : > { %p2373_p13 = pnand %p2371_p12, %p2896_p7 }
  0x37   : > { %p2380_p8 = por %p2379_p6, %p2378_p2 }
  0x38   : > { %p2374_p0 = pneg %p2373_p13 }
  0x3a   : > { %p2381_p4 = pnand %p2380_p8, %p2374_p0 }
  0x3c   : > { %2384 = shalt.err (!%p2381_p4)
}
  0x3d   : > { %2205 = dma.hbm_to_vmem [thread:$0]  (!%p2880_p5), %s3430_s3, 16, %s2865_s20, [#allocation8]  }
  0x3e   : > { %s3432_s7 = sld [smem:[#allocation36_spill]] }
  0x44   : > { %s2385_s21 = scalar_lea.hbm %s3432_s7, 16 }
  0x45   : > { %p2386_p9 = scmp.ne.s32.totalorder %s3432_s7, %s2385_s21  ;;  %p2392_p4 = scmp.lt.u32.totalorder %s2385_s21, %s3432_s7 }
  0x47   : > { %p2388_p10 = pnand %p2386_p9, %p2896_p7 }
  0x49   : > { %p2389_p11 = pneg %p2388_p10 }
  0x4b   : > { %p2394_p12 = pnand %p2392_p4, %p2389_p11 }
  0x4d   : > { %2397 = shalt.err (!%p2394_p12)
}
  0x4e   : > { %s2398_s20 = scalar_lea.vmem %s2873_s24, 16  ;;  %s2405_s4 = scalar_lea.vmem %s2873_s24, 32 }
  0x4f   : > { %p2399_p13 = scmp.ne.s32.totalorder %s2873_s24, %s2398_s20  ;;  %p2406_p6 = scmp.lt.s32.totalorder %s2873_s24, %s2873_s24 }
  0x50   : > { %p2407_p8 = scmp.lt.s32.totalorder %s2405_s4, %s2398_s20 }
  0x51   : > { %p2401_p0 = pnand %p2399_p13, %p2896_p7 }
  0x52   : > { %p2408_p9 = por %p2407_p8, %p2406_p6 }
  0x53   : > { %p2402_p2 = pneg %p2401_p0 }
  0x55   : > { %p2409_p10 = pnand %p2408_p9, %p2402_p2 }
  0x57   : > { %2412 = shalt.err (!%p2409_p10)
}
  0x58   : > { %2211 = dma.hbm_to_vmem [thread:$0]  (!%p2880_p5), %s3432_s7, 16, %s2873_s24, [#allocation11]  }
  0x59   : > { %s3433_s9 = sld [smem:[#allocation37_spill]] }
  0x5f   : > { %s2413_s25 = scalar_lea.hbm %s3433_s9, 16 }
  0x60   : > { %p2414_p11 = scmp.ne.s32.totalorder %s3433_s9, %s2413_s25  ;;  %p2420_p13 = scmp.lt.u32.totalorder %s2413_s25, %s3433_s9 }
  0x62   : > { %p2416_p4 = pnand %p2414_p11, %p2896_p7 }
  0x64   : > { %p2417_p12 = pneg %p2416_p4 }
  0x66   : > { %p2422_p0 = pnand %p2420_p13, %p2417_p12 }
  0x68   : > { %2425 = shalt.err (!%p2422_p0)
}
  0x69   : > { %s2426_s24 = scalar_lea.vmem %s2884_s26, 16  ;;  %s2433_s4 = scalar_lea.vmem %s2884_s26, 32 }
  0x6a   : > { %p2427_p2 = scmp.ne.s32.totalorder %s2884_s26, %s2426_s24  ;;  %p2434_p9 = scmp.lt.s32.totalorder %s2884_s26, %s2884_s26 }
  0x6b   : > { %p2435_p10 = scmp.lt.s32.totalorder %s2433_s4, %s2426_s24 }
  0x6c   : > { %p2429_p6 = pnand %p2427_p2, %p2896_p7 }
  0x6d   : > { %p2436_p11 = por %p2435_p10, %p2434_p9 }
  0x6e   : > { %p2430_p8 = pneg %p2429_p6 }
  0x70   : > { %p2437_p4 = pnand %p2436_p11, %p2430_p8 }
  0x72   : > { %2440 = shalt.err (!%p2437_p4)
}
  0x73   : > { %2217 = dma.hbm_to_vmem [thread:$0]  (!%p2880_p5), %s3433_s9, 16, %s2884_s26, [#allocation14]  }
  0x74   : > { %s3434_s12 = sld [smem:[#allocation39_spill]] }
  0x7a   : > { %s2441_s25 = scalar_lea.hbm %s3434_s12, 16 }
  0x7b   : > { %p2442_p12 = scmp.ne.s32.totalorder %s3434_s12, %s2441_s25  ;;  %p2448_p2 = scmp.lt.u32.totalorder %s2441_s25, %s3434_s12 }
  0x7d   : > { %p2444_p13 = pnand %p2442_p12, %p2896_p7 }
  0x7f   : > { %p2445_p0 = pneg %p2444_p13 }
  0x81   : > { %p2450_p6 = pnand %p2448_p2, %p2445_p0 }
  0x83   : > { %2453 = shalt.err (!%p2450_p6)
}
  0x84   : > { %s2454_s26 = scalar_lea.vmem %s2886_s18, 16  ;;  %s2461_s24 = scalar_lea.vmem %s2886_s18, 32 }
  0x85   : > { %p2455_p8 = scmp.ne.s32.totalorder %s2886_s18, %s2454_s26  ;;  %p2462_p11 = scmp.lt.s32.totalorder %s2886_s18, %s2886_s18 }
  0x86   : > { %p2463_p4 = scmp.lt.s32.totalorder %s2461_s24, %s2454_s26 }
  0x87   : > { %p2457_p9 = pnand %p2455_p8, %p2896_p7 }
  0x88   : > { %p2464_p12 = por %p2463_p4, %p2462_p11 }
  0x89   : > { %p2458_p10 = pneg %p2457_p9 }
  0x8b   : > { %p2465_p13 = pnand %p2464_p12, %p2458_p10 }
  0x8d   : > { %2468 = shalt.err (!%p2465_p13)
}
  0x8e   : > { %2223 = dma.hbm_to_vmem [thread:$0]  (!%p2880_p5), %s3434_s12, 16, %s2886_s18, [#allocation17]  }
  0x8f   : > { %s1958_s10 = sadd.s32 4294967294, %s2709_s19   ;;  %s48_s15 = sadd.s32 1, %s2705_s0 }
  0x90   : > { %s81_s23 = sadd.s32 1, %s2697_s29  ;;  %p50_p0 = scmp.ge.s32.totalorder %s48_s15, 2 }
  0x91   : > { %p94_p2 = scmp.ne.s32.totalorder %s2693_s28, %s2689_s27  ;;  %p455_p6 = scmp.ne.s32.totalorder %s2697_s29, %s2693_s28 }
  0x92   : > { %s3435_s25 = sadd.s32 4294967295, %s2709_s19   ;;  %s3470_s15 = smov (%p50_p0, %s48_s15), 0 }
  0x93   : > { %p456_p8 = scmp.eq.s32.totalorder %s3435_s25, 1  ;;  %3436 = sst [smem:[#allocation27_spill]] %s3470_s15 }
  0x94   : > { %p3003_p9 = por %p2860_p1, %p94_p2  ;;  %s78_s16 = ssub.s32 %s2705_s0, %s3470_s15 }
  0x95   : > { %p3007_p10 = por %p456_p8, %p455_p6  ;;  %p462_p11 = scmp.eq.s32.totalorder %s1958_s10, 1 }
  0x96   : > { %s3437_s21 = scalar_select %p3003_p9, 1, 0 }
  0x97   : > { %s3438_s18 = scalar_select %p3007_p10, 1, 0 }
  0x98   : > { %p79_p4 = scmp.eq.s32.totalorder %s78_s16, 0  ;;  %s1960_s17 = sshll.u32 %s2701_s30, 4 }
  0x99   : > { %p3014_p12 = por %p462_p11, %p94_p2  ;;  %s3440_s4 = sld [smem:[#allocation30_spill]] }
  0x9a   : > { %s3024_s25 = scalar_select %p79_p4, %s2697_s29, %s81_s23  }
  0x9b   : > { %s3439_s20 = scalar_select %p3014_p12, 1, 0 }
  0x9c   : > { %3441 = sst [smem:[#allocation28_spill]] %s3024_s25  ;;  %p3442_p13 = pneg %p2867_p3 }
  0x9d   : > { %s2715_s16 = smov [#allocation4]  }
  0x9e   : > { %p3031_p0 = pnand %p3442_p13, %p3003_p9  ;;  %s491_s3 = sshll.u32 %s2715_s16, 4  ;;  %s492_s3 = int_to_ptr.vmem [resolvable:$true] %s491_s3 }
  0x9f   : > { %s3021_s6 = scalar_lea.hbm %s3440_s4, %s1960_s17  ;;  %s2474_s24 = scalar_lea.hbm %s3440_s4, 32 }
  0xa0   : > { %s2469_s17 = scalar_lea.hbm %s3021_s6, 16  ;;  %p2471_p6 = pneg %p3031_p0 }
  0xa1   : > { %p2470_p2 = scmp.ne.s32.totalorder %s3021_s6, %s2469_s17  ;;  %p2475_p4 = scmp.lt.u32.totalorder %s3021_s6, %s3440_s4 }
  0xa2   : > { %p2476_p13 = scmp.lt.u32.totalorder %s2474_s24, %s2469_s17  ;;  %p2478_p10 = scmp.lt.u32.totalorder %s2469_s17, %s3021_s6 }
  0xa3   : > { %p2472_p8 = pnand %p2471_p6, %p2470_p2 }
  0xa4   : > { %p2477_p12 = por %p2476_p13, %p2475_p4 }
  0xa5   : > { %p2473_p11 = pneg %p2472_p8 }
  0xa6   : > { %p2479_p1 = por %p2478_p10, %p2477_p12 }
  0xa8   : > { %p2480_p9 = pnand %p2479_p1, %p2473_p11 }
  0xaa   : > { %2483 = shalt.err (!%p2480_p9)
}
  0xab   : > { %s2484_s16 = scalar_lea.vmem %s492_s3, 16  ;;  %s2491_s12 = scalar_lea.vmem %s492_s3, 32 }
  0xac   : > { %p2485_p3 = scmp.ne.s32.totalorder %s492_s3, %s2484_s16  ;;  %p2492_p5 = scmp.lt.s32.totalorder %s492_s3, %s492_s3 }
  0xad   : > { %p2493_p7 = scmp.lt.s32.totalorder %s2491_s12, %s2484_s16 }
  0xae   : > { %p2487_p2 = pnand %p2485_p3, %p2471_p6 }
  0xaf   : > { %p2494_p4 = por %p2493_p7, %p2492_p5 }
  0xb0   : > { %p2488_p8 = pneg %p2487_p2 }
  0xb2   : > { %p2495_p13 = pnand %p2494_p4, %p2488_p8 }
  0xb4   : > { %2498 = shalt.err (!%p2495_p13)
}
  0xb5   : > { %2202 = dma.hbm_to_vmem [thread:$0]  (!%p3031_p0), %s3021_s6, 16, %s492_s3, [#allocation5]  }
  0xb6   : > { %s2716_s7 = smov [#allocation9]   ;;  %s2717_s17 = smov [#allocation12]  }
  0xb7   : > { %s519_s9 = sshll.u32 %s2716_s7, 4  ;;  %s543_s23 = sshll.u32 %s2717_s17, 4  ;;  %s520_s9 = int_to_ptr.vmem [resolvable:$true] %s519_s9  ;;  %s544_s23 = int_to_ptr.vmem [resolvable:$true] %s543_s23 }
  0xb8   : > { %s3444_s5 = sld [smem:[#allocation34_spill]]  ;;  %p3445_p3 = scmp.ne.s32.totalorder %s3431_s14, 0 }
  0xbe   : > { %s2499_s4 = scalar_lea.hbm %s3444_s5, 16 }
  0xbf   : > { %p2500_p1 = scmp.ne.s32.totalorder %s3444_s5, %s2499_s4  ;;  %p2506_p9 = scmp.lt.u32.totalorder %s2499_s4, %s3444_s5 }
  0xc1   : > { %p2502_p5 = pnand %p2500_p1, %p3445_p3 }
  0xc3   : > { %p2503_p7 = pneg %p2502_p5 }
  0xc5   : > { %p2508_p10 = pnand %p2506_p9, %p2503_p7 }
  0xc7   : > { %2511 = shalt.err (!%p2508_p10)
}
  0xc8   : > { %s2512_s3 = scalar_lea.vmem %s520_s9, 16  ;;  %s2519_s6 = scalar_lea.vmem %s520_s9, 32 }
  0xc9   : > { %p2513_p12 = scmp.ne.s32.totalorder %s520_s9, %s2512_s3  ;;  %p2520_p11 = scmp.lt.s32.totalorder %s520_s9, %s520_s9 }
  0xca   : > { %p2521_p2 = scmp.lt.s32.totalorder %s2519_s6, %s2512_s3 }
  0xcb   : > { %p2515_p0 = pnand %p2513_p12, %p3445_p3 }
  0xcc   : > { %p2522_p8 = por %p2521_p2, %p2520_p11 }
  0xcd   : > { %p2516_p6 = pneg %p2515_p0 }
  0xcf   : > { %p2523_p4 = pnand %p2522_p8, %p2516_p6 }
  0xd1   : > { %2526 = shalt.err (!%p2523_p4)
}
  0xd2   : > { %p3446_p13 = scmp.ne.s32.totalorder %s3429_s1, 0  ;;  %s2527_s7 = scalar_lea.hbm %s3377_s8, 256 }
  0xd3   : > { %p2528_p1 = scmp.ne.s32.totalorder %s3377_s8, %s2527_s7  ;;  %p2534_p9 = scmp.lt.u32.totalorder %s2527_s7, %s3377_s8 }
  0xd4   : > { %2208 = dma.hbm_to_vmem [thread:$0]  (!%p3446_p13), %s3444_s5, 16, %s520_s9, [#allocation8]  }
  0xd5   : > { %p2530_p5 = pnand %p2528_p1, %p3445_p3 }
  0xd7   : > { %p2531_p7 = pneg %p2530_p5 }
  0xd9   : > { %p2536_p10 = pnand %p2534_p9, %p2531_p7 }
  0xdb   : > { %2539 = shalt.err (!%p2536_p10)
}
  0xdc   : > { %s2540_s10 = scalar_lea.vmem %s544_s23, 256  ;;  %p2548_p11 = scmp.lt.s32.totalorder %s544_s23, %s544_s23 }
  0xdd   : > { %p2541_p12 = scmp.ne.s32.totalorder %s544_s23, %s2540_s10  ;;  %p2549_p2 = scmp.lt.s32.totalorder %s2540_s10, %s2540_s10 }
  0xdf   : > { %p2543_p0 = pnand %p2541_p12, %p3445_p3  ;;  %p2550_p8 = por %p2549_p2, %p2548_p11 }
  0xe1   : > { %p2544_p6 = pneg %p2543_p0 }
  0xe3   : > { %p2551_p4 = pnand %p2550_p8, %p2544_p6 }
  0xe5   : > { %2554 = shalt.err (!%p2551_p4)
}
  0xe6   : > { %s2718_s9 = smov 64   ;;  %s2719_s3 = smov 4  }
  0xe7   : > { %2214 = dma.hbm_to_vmem [thread:$0]  (!%p3446_p13), %s3377_s8, 256, %s544_s23, [#allocation11], %s2718_s9, %s2718_s9, %s2719_s3  }
  0xe8   : > { %s2720_s15 = smov [#allocation15]   ;;  %s2721_s16 = smov [#allocation18]  }
  0xe9   : > { %s571_s4 = sshll.u32 %s2720_s15, 4  ;;  %s593_s7 = sshll.u32 %s2721_s16, 4  ;;  %s572_s4 = int_to_ptr.vmem [resolvable:$true] %s571_s4  ;;  %s594_s7 = int_to_ptr.vmem [resolvable:$true] %s593_s7 }
  0xea   : > { %s2555_s24 = scalar_lea.hbm %s3380_s11, 16 }
  0xeb   : > { %p2556_p1 = scmp.ne.s32.totalorder %s3380_s11, %s2555_s24  ;;  %p2562_p9 = scmp.lt.u32.totalorder %s2555_s24, %s3380_s11 }
  0xed   : > { %p2558_p5 = pnand %p2556_p1, %p3445_p3 }
  0xef   : > { %p2559_p7 = pneg %p2558_p5 }
  0xf1   : > { %p2564_p10 = pnand %p2562_p9, %p2559_p7 }
  0xf3   : > { %2567 = shalt.err (!%p2564_p10)
}
  0xf4   : > { %s2568_s23 = scalar_lea.vmem %s572_s4, 16  ;;  %s2575_s9 = scalar_lea.vmem %s572_s4, 32 }
  0xf5   : > { %p2569_p12 = scmp.ne.s32.totalorder %s572_s4, %s2568_s23  ;;  %p2576_p11 = scmp.lt.s32.totalorder %s572_s4, %s572_s4 }
  0xf6   : > { %p2577_p2 = scmp.lt.s32.totalorder %s2575_s9, %s2568_s23 }
  0xf7   : > { %p2571_p0 = pnand %p2569_p12, %p3445_p3 }
  0xf8   : > { %p2578_p8 = por %p2577_p2, %p2576_p11 }
  0xf9   : > { %p2572_p6 = pneg %p2571_p0 }
  0xfb   : > { %p2579_p4 = pnand %p2578_p8, %p2572_p6 }
  0xfd   : > { %2582 = shalt.err (!%p2579_p4)
}
  0xfe   : > { %2220 = dma.hbm_to_vmem [thread:$0]  (!%p3446_p13), %s3380_s11, 16, %s572_s4, [#allocation14]  }
  0xff   : > { %s2583_s0 = scalar_lea.hbm %s3382_s13, 16 }
 0x100   : > { %p2584_p1 = scmp.ne.s32.totalorder %s3382_s13, %s2583_s0  ;;  %p2590_p9 = scmp.lt.u32.totalorder %s2583_s0, %s3382_s13 }
 0x102   : > { %p2586_p5 = pnand %p2584_p1, %p3445_p3 }
 0x104   : > { %p2587_p7 = pneg %p2586_p5 }
 0x106   : > { %p2592_p10 = pnand %p2590_p9, %p2587_p7 }
 0x108   : > { %2595 = shalt.err (!%p2592_p10)
}
 0x109   : > { %s2596_s24 = scalar_lea.vmem %s594_s7, 16  ;;  %s2603_s4 = scalar_lea.vmem %s594_s7, 32 }
 0x10a   : > { %p2597_p12 = scmp.ne.s32.totalorder %s594_s7, %s2596_s24  ;;  %p2604_p11 = scmp.lt.s32.totalorder %s594_s7, %s594_s7 }
 0x10b   : > { %p2605_p2 = scmp.lt.s32.totalorder %s2603_s4, %s2596_s24 }
 0x10c   : > { %p2599_p0 = pnand %p2597_p12, %p3445_p3 }
 0x10d   : > { %p2606_p8 = por %p2605_p2, %p2604_p11 }
 0x10e   : > { %p2600_p6 = pneg %p2599_p0 }
 0x110   : > { %p2607_p4 = pnand %p2606_p8, %p2600_p6 }
 0x112   : > { %2610 = shalt.err (!%p2607_p4)
}
 0x113   : > { %2226 = dma.hbm_to_vmem [thread:$0]  (!%p3446_p13), %s3382_s13, 16, %s594_s7, [#allocation17]  }
 0x114   : > { %p3447_p1 = scmp.ne.s32.totalorder %s3428_s2, 0 }
 0x115   : > { %p3448_p5 = scmp.ne.s32.totalorder (!%p3447_p1), %s3437_s21, 0 }
 0x116   : > { %618 = sbr.rel (%p3447_p1) target bundleno = 2751 (0xabf), region = 92 }
 0x11d   : > { %2664 = dma.done.wait (%p3448_p5), [#allocation5], 16  }
 0x11e   : > { %2666 = vsyncadd (%p3448_p5), [#allocation5], 4294967280  ;;  %p3449_p3 = scmp.ne.s32.totalorder %s3427_s22, 0 }
 0x120   : > { %2668 = dma.done.wait (%p3449_p3), [#allocation8], 32  }
 0x121   : > { %2670 = vsyncadd (%p3449_p3), [#allocation8], 4294967264 }
 0x122   : > { %2672 = dma.done.wait (%p3449_p3), [#allocation11], 272  }
 0x123   : > { %2674 = vsyncadd (%p3449_p3), [#allocation11], 4294967024 }
 0x124   : > { %2676 = dma.done.wait (%p3449_p3), [#allocation14], 32  }
 0x125   : > { %2678 = vsyncadd (%p3449_p3), [#allocation14], 4294967264 }
 0x126   : > { %2680 = dma.done.wait (%p3449_p3), [#allocation17], 32  }
 0x127   : > { %2682 = vsyncadd (%p3449_p3), [#allocation17], 4294967264  ;;  %p703_p13 = scmp.lt.s32.totalorder %s2701_s30, 1  ;;  %s3450_s7 = sld [smem:[#allocation29_spill]]  ;;  %vm715_vm0 = vcmask 261120   ;;  %v2316_v13 = vld [vmem:[#allocation12] sm:$0xff]  }
 0x128   : > { %s3451_s3 = sld [smem:[#allocation35_spill]]  ;;  %v2722_v14 = vmov 0.0   ;;  %v2318_v16 = vld [vmem:[#allocation12 + $0x8] sm:$0xff]   ;;  %vm2723_vm1 = vmmov 0   ;;  %s3452_s15 = sld [smem:[#allocation31_spill]]  ;;  %vm914_vm6 = vcmask 60416  }
 0x129   : > { %s704_s14 = scalar_select %p703_p13, %s2701_s30, 1  ;;  %2063 = vmatprep.subr.bf16.mxu0 %v2722_v14  ;;  %2071 = vmatprep.subr.bf16.mxu1 %v2722_v14  ;;  %v1981_v36 = vld [vmem:[#allocation7] ss:$0 sm:$0xff]  ;;  %v1982_v47 = vld [vmem:[#allocation10] ss:$0 sm:$0xff]  ;;  %vm1066_vm7 = vcmask 1043456  }
 0x12a   : > { %2072 = vmatpush3.bf16.msra.mxu1 %v2316_v13  ;;  %2067 = vmatprep.mubr.msk.bf16.mxu0 %vm2723_vm1, %v2722_v14  ;;  %s3453_s26 = sld [smem:[#allocation33_spill]]  ;;  %v1986_v48 = vld [vmem:[#allocation13] ss:$0 sm:$0xff]  ;;  %v1993_v60 = vld [vmem:[#allocation9] ss:$0 sm:$0xff]  ;;  %s2724_s12 = smov 120  }
 0x12b   : > { %s1979_s2 = sshll.u32 %s704_s14, 3  ;;  %2073 = vmatprep.subr.bf16.mxu1 %v2722_v14  ;;  %2075 = vmatprep.mubr.msk.bf16.mxu1 %vm2723_vm1, %v2722_v14  ;;  %s2725_s10 = smov 112   ;;  %vm1062_vm8 = vcmask 64512   ;;  %vm1516_vm9 = vcmask 130048   ;;  %vm1519_vm10 = vcmask 195584   ;;  %vm1725_vm13 = vcmask 523264  }
 0x12c   : > { %s2726_s14 = smov 104   ;;  %s2728_s9 = smov 16  }
 0x12d   : > { %s706_s23 = scalar_lea.vmem %s3450_s7, %s1979_s2  ;;  %s2727_s2 = smov 8  }
 0x12e   : > { %v3155_v0 = vld [vmem:[%s706_s23] sm:$0xff]  ;;  %v2317_v15 = vld [vmem:[%s3451_s3 + $0x8] sm:$0xff]   ;;  %2074 = vmatpush3.bf16.msra.mxu1 %v2318_v16  ;;  %s3454_s7 = sld [smem:[#allocation38_spill]]  ;;  %s2729_s6 = smov 24  }
 0x12f   : > { %v716_v1 = vsel %vm715_vm0, %v3155_v0, 0.0  ;;  %v2315_v12 = vld [vmem:[%s3451_s3] sm:$0xff]   ;;  %2087 = vmatprep.subr.bf16.mxu1 %v2722_v14  ;;  %s3455_s0 = sld [smem:[#allocation40_spill]]  ;;  %s700_s5 = sand.u32 1, %s2693_s28  }
 0x130   : > { %717 = vadd.xlane.f32.xlu0 %v716_v1  ;;  %2064 = vmatpush3.bf16.msra.mxu0 %v2315_v12  ;;  %v1980_v33 = vld [vmem:[%s3452_s15] ss:$0 sm:$0xff]  ;;  %v2320_v44 = vld [vmem:[%s3453_s26 + $0x8] sm:$0xff]   ;;  %s1978_s25 = sshll.u32 %s700_s5, 3  ;;  %s3459_s17 = sld [smem:[#allocation43_spill]] }
 0x131   : > { %2065 = vmatprep.subr.bf16.mxu0 %v2722_v14  ;;  %v2319_v41 = vld [vmem:[%s3453_s26] sm:$0xff]   ;;  %s2023_s24 = sshll.u32 %s2701_s30, 7  ;;  %s702_s4 = scalar_lea.vmem [#allocation19], %s1978_s25 }
 0x132   : > { %s3460_s1 = sld [smem:[#allocation44_spill]]  ;;  %s1780_s30 = scalar_lea.sflag [#allocation6], %s700_s5 }
 0x133   : > { %p3461_p9 = scmp.ne.s32.totalorder %s3438_s18, 0  ;;  %s2730_s22 = smov [#allocation19]  }
 0x134   : > { %952 = vadd.xlane.f32.xlu0 %v716_v1  ;;  %2066 = vmatpush3.bf16.msra.mxu0 %v2317_v15 }
 0x135   : > { %2079 = vmatprep.subr.bf16.mxu0 %v2722_v14  ;;  %s3456_s15 = smov %s3455_s0 }
 0x138   : > { %s3321_s21 = scalar_lea.hbm %s3460_s1, %s2023_s24 }
 0x1bd   : > { %v718_v2 = vpop.xlane.xlu0 %717 }
 0x1be   : > { %v720_v3 = vmul.f32 0.03125, %v718_v2 }
 0x1c0   : > { %v721_v4 = vsub.f32 %v3155_v0, %v720_v3 }
 0x1c1   : > { %v953_v5 = vpop.xlane.xlu0 %952 }
 0x1c2   : > { %v955_v6 = vmul.f32 0.03125, %v953_v5  ;;  %v722_v7 = vmul.f32 %v721_v4, %v721_v4  ;;  %v740_v34 = vmul.f32 %v1980_v33, %v721_v4 }
 0x1c4   : > { %v956_v8 = vsub.f32 %v3155_v0, %v955_v6  ;;  %v723_v9 = vsel %vm715_vm0, %v722_v7, 0.0 }
 0x1c5   : > { %724 = vadd.xlane.f32.xlu1 %v723_v9 }
 0x1c6   : > { %v957_v10 = vmul.f32 %v956_v8, %v956_v8  ;;  %v975_v38 = vmul.f32 %v1980_v33, %v956_v8 }
 0x1c8   : > { %v958_v11 = vsel %vm715_vm0, %v957_v10, 0.0 }
 0x1c9   : > { %959 = vadd.xlane.f32.xlu1 %v958_v11 }
 0x252   : > { %v725_v17 = vpop.xlane.xlu1 %724 }
 0x253   : > { %v726_v18 = vmul.f32 0.032258064, %v725_v17 }
 0x255   : > { %2329 = vrsqrt.f32 %v726_v18  ;;  %vm729_vm2 = vcmp.eq.f32.partialorder %v726_v18, inf  ;;  %v732_v23 = vand.u32 2147483648, %v726_v18  ;;  %vm731_vm3 = vcmp.eq.f32.partialorder %v726_v18, 0.0 }
 0x256   : > { %v960_v19 = vpop.xlane.xlu1 %959 }
 0x257   : > { %v961_v20 = vmul.f32 0.032258064, %v960_v19 }
 0x259   : > { %2331 = vrsqrt.f32 %v961_v20  ;;  %vm964_vm4 = vcmp.eq.f32.partialorder %v961_v20, inf  ;;  %v967_v27 = vand.u32 2147483648, %v961_v20  ;;  %vm966_vm5 = vcmp.eq.f32.partialorder %v961_v20, 0.0 }
 0x25f   : > { %v2330_v21 = vpop.eup %2329 }
 0x260   : > { %v728_v22 = vmul.f32 %v2330_v21, %v726_v18 }
 0x262   : > { %v730_v24 = vsel %vm729_vm2, %v726_v18, %v728_v22 }
 0x263   : > { %v2332_v25 = vpop.eup %2331  ;;  %v733_v26 = vsel %vm731_vm3, %v732_v23, %v730_v24 }
 0x264   : > { %v741_v28 = vadd.f32 1e-06, %v733_v26  ;;  %v963_v29 = vmul.f32 %v2332_v25, %v961_v20  ;;  %v1997_v26 = vld [vmem:[#allocation4] ss:$0 sm:$0xff] }
 0x266   : > { %v965_v30 = vsel %vm964_vm4, %v961_v20, %v963_v29  ;;  %2333 = vrcp.f32 %v741_v28 }
 0x267   : > { %v968_v31 = vsel %vm966_vm5, %v967_v27, %v965_v30 }
 0x268   : > { %v976_v32 = vadd.f32 1e-06, %v968_v31 }
 0x26a   : > { %2335 = vrcp.f32 %v976_v32 }
 0x270   : > { %v2334_v35 = vpop.eup %2333 }
 0x271   : > { %v743_v37 = vmul.f32 %v2334_v35, %v740_v34 }
 0x273   : > { %v750_v39 = vadd.f32 %v1981_v36, %v743_v37 }
 0x274   : > { %v2336_v40 = vpop.eup %2335 }
 0x275   : > { %v751_v42 = vpack.c.bf16 %v750_v39, %v750_v39  ;;  %v978_v43 = vmul.f32 %v2336_v40, %v975_v38 }
 0x277   : > { %2068 = vmatmul.mubr.msk.bf16.vlgmr.msra.gmra.mrb[0].mxu0 %vm715_vm0, %v751_v42  ;;  %2076 = vmatmul.mubr.msk.bf16.vlgmr.msra.gmra.mrb[0].mxu1 %vm715_vm0, %v751_v42  ;;  %v985_v45 = vadd.f32 %v1981_v36, %v978_v43 }
 0x278   : > { %2080 = vmatpush3.bf16.msra.mxu0 %v2319_v41  ;;  %2083 = vmatprep.mubr.msk.bf16.mxu0 %vm2723_vm1, %v2722_v14 }
 0x279   : > { %2081 = vmatprep.subr.bf16.mxu0 %v2722_v14  ;;  %2089 = vmatprep.mubr.msk.bf16.mxu1 %vm2723_vm1, %v2722_v14  ;;  %v986_v46 = vpack.c.bf16 %v985_v45, %v985_v45 }
 0x27c   : > { %2082 = vmatpush3.bf16.msra.mxu0 %v2320_v44 }
 0x27d   : > { %2093 = vmatprep.subr.bf16.mxu0 %v2722_v14 }
 0x27f   : > { %2084 = vmatmul.mubr.msk.bf16.vlgmr.msra.gmra.mrb[4].mxu0 %vm715_vm0, %v986_v46 }
 0x280   : > { %2095 = vmatprep.mubr.msk.bf16.mxu0 %vm2723_vm1, %v2722_v14 }
 0x34a   : > { %v812_v49 = vpop.f32.mrb[0].mxu0  ;;  %v875_v50 = vpop.f32.mrb[0].mxu1 }
 0x34b   : > { %v813_v51 = vadd.f32 %v1982_v47, %v812_v49  ;;  %v876_v52 = vadd.f32 %v1986_v48, %v875_v50  ;;  %v2069_v53 = vpop.f32.mrb[1].mxu0  ;;  %v2077_v54 = vpop.f32.mrb[1].mxu1 }
 0x34c   : > { %v815_v55 = vpop.f32.mrb[2].mxu0  ;;  %v878_v56 = vpop.f32.mrb[2].mxu1 }
 0x34d   : > { %v3199_v57 = vpack.c.bf16 %v876_v52, %v876_v52  ;;  %v2070_v58 = vpop.f32.mrb[3].mxu0  ;;  %v2078_v59 = vpop.f32.mrb[3].mxu1  ;;  %881 = vxpose.xlu1.b32.start.end [1/1] (short) (narrow) %v813_v51, 32 }
 0x34f   : > { %917 = vst.msk [vmem:[#allocation3] sm:$0xf] %vm914_vm6, %v3199_v57 }
 0x352   : > { %v1047_v61 = vpop.f32.mrb[4].mxu0 }
 0x353   : > { %v1048_v62 = vadd.f32 %v1993_v60, %v1047_v61  ;;  %v2085_v63 = vpop.f32.mrb[5].mxu0 }
 0x354   : > { %v1050_v1 = vpop.f32.mrb[6].mxu0 }
 0x355   : > { %v1053_v2 = vpack.c.bf16 %v1048_v62, %v1048_v62  ;;  %v2086_v3 = vpop.f32.mrb[7].mxu0 }
 0x356   : > { %v1120_v4 = vld [vmem:[#allocation3] sm:$0xf] }
 0x357   : > { %1173 = vrot.lane.b32.xlu0 %v1053_v2, %s2724_s12  ;;  %v1125_v5 = vsel %vm1066_vm7, %v1120_v4, 0 }
 0x358   : > { %2094 = vmatpush3.bf16.msra.mxu0 %v1125_v5 }
 0x359   : > { %2105 = vmatprep.subr.bf16.mxu0 %v2722_v14 }
 0x35b   : > { %1284 = vrot.lane.b32.xlu0 %v1053_v2, %s2725_s10 }
 0x35f   : > { %1395 = vrot.lane.b32.xlu0 %v1053_v2, %s2726_s14 }
 0x3c9   : > { %v1174_v21 = vpop.permute.xlu0 %1173 }
 0x3cd   : > { %v897_v6 = vpop.trf.xlu1  ;;  %v1285_v24 = vpop.permute.xlu0 %1284 }
 0x3ce   : > { %v913_v7 = vpack.c.bf16 %v897_v6, %v897_v6 }
 0x3d0   : > { %915 = vst.msk [vmem:[#allocation2] sm:$0xf] %vm914_vm6, %v913_v7 }
 0x3d1   : > { %v898_v8 = vpop.trf.xlu1  ;;  %v1396_v25 = vpop.permute.xlu0 %1395 }
 0x3d2   : > { %v918_v9 = vpack.c.bf16 %v898_v8, %v898_v8 }
 0x3d4   : > { %920 = vst.msk [vmem:[#allocation2 + $0x4] sm:$0xf] %vm914_vm6, %v918_v9 }
 0x3d5   : > { %v899_v10 = vpop.trf.xlu1 }
 0x3d6   : > { %v929_v11 = vpack.c.bf16 %v899_v10, %v899_v10 }
 0x3d7   : > { %v1055_v12 = vld [vmem:[#allocation2] sm:$0xf] }
 0x3d8   : > { %v1068_v13 = vsel %vm1066_vm7, %v1055_v12, 0  ;;  %931 = vst.msk [vmem:[#allocation2 + $0x8] sm:$0xf] %vm914_vm6, %v929_v11 }
 0x3d9   : > { %2088 = vmatpush3.bf16.msra.mxu1 %v1068_v13  ;;  %v900_v15 = vpop.trf.xlu1 }
 0x3da   : > { %2099 = vmatprep.subr.bf16.mxu1 %v2722_v14  ;;  %v937_v16 = vpack.c.bf16 %v900_v15, %v900_v15 }
 0x3db   : > { %v1171_v17 = vld [vmem:[#allocation2 + $0x4] sm:$0xf] }
 0x3dc   : > { %2090 = vmatmul.mubr.msk.bf16.vlgmr.msra.gmra.mrb[4].mxu1 %vm1062_vm8, %v1053_v2  ;;  %v1179_v18 = vsel %vm1066_vm7, %v1171_v17, 0  ;;  %939 = vst.msk [vmem:[#allocation2 + $0xc] sm:$0xf] %vm914_vm6, %v937_v16 }
 0x3dd   : > { %2100 = vmatpush3.bf16.msra.mxu1 %v1179_v18  ;;  %2101 = vmatprep.mubr.msk.bf16.mxu1 %vm2723_vm1, %v2722_v14 }
 0x3de   : > { %2111 = vmatprep.subr.bf16.mxu1 %v2722_v14 }
 0x3df   : > { %v1283_v19 = vld [vmem:[#allocation2 + $0x8] sm:$0xf] }
 0x3e0   : > { %v1290_v20 = vsel %vm1066_vm7, %v1283_v19, 0 }
 0x3e3   : > { %v1394_v22 = vld [vmem:[#allocation2 + $0xc] sm:$0xf] }
 0x3e4   : > { %2102 = vmatmul.mubr.msk.bf16.vlgmr.msra.gmra.mrb[8].mxu1 %vm1062_vm8, %v1174_v21  ;;  %v1401_v23 = vsel %vm1066_vm7, %v1394_v22, 0 }
 0x3e5   : > { %2112 = vmatpush3.bf16.msra.mxu1 %v1290_v20  ;;  %2113 = vmatprep.mubr.msk.bf16.mxu1 %vm2723_vm1, %v2722_v14 }
 0x3e6   : > { %2123 = vmatprep.subr.bf16.mxu1 %v2722_v14 }
 0x3ec   : > { %2114 = vmatmul.mubr.msk.bf16.vlgmr.msra.gmra.mrb[12].mxu1 %vm1062_vm8, %v1285_v24 }
 0x3ed   : > { %2124 = vmatpush3.bf16.msra.mxu1 %v1401_v23  ;;  %2125 = vmatprep.mubr.msk.bf16.mxu1 %vm2723_vm1, %v2722_v14 }
 0x3ee   : > { %2135 = vmatprep.subr.bf16.mxu1 %v2722_v14 }
 0x3f4   : > { %2126 = vmatmul.mubr.msk.bf16.vlgmr.msra.gmra.mrb[16].mxu1 %vm1062_vm8, %v1396_v25 }
 0x3f5   : > { %2139 = vmatprep.mubr.msk.bf16.mxu1 %vm2723_vm1, %v2722_v14 }
 0x4af   : > { %v1104_v27 = vpop.f32.mrb[4].mxu1 }
 0x4b0   : > { %v1105_v28 = vadd.f32 %v1997_v26, %v1104_v27  ;;  %v2091_v29 = vpop.f32.mrb[5].mxu1 }
 0x4b1   : > { %v1107_v30 = vpop.f32.mrb[6].mxu1 }
 0x4b2   : > { %v2092_v31 = vpop.f32.mrb[7].mxu1  ;;  %v1110_v32 = vsel %vm1062_vm8, %v1105_v28, -inf }
 0x4b3   : > { %1111 = vmax.xlane.f32.xlu0 %v1110_v32 }
 0x4b7   : > { %v1215_v33 = vpop.f32.mrb[8].mxu1 }
 0x4b8   : > { %v1216_v34 = vadd.f32 %v1997_v26, %v1215_v33  ;;  %v2103_v35 = vpop.f32.mrb[9].mxu1 }
 0x4b9   : > { %v1218_v36 = vpop.f32.mrb[10].mxu1  ;;  %v2321_v35 = vld [vmem:[%s3454_s7] sm:$0xff]  }
 0x4ba   : > { %v2104_v37 = vpop.f32.mrb[11].mxu1  ;;  %v1221_v38 = vsel %vm1062_vm8, %v1216_v34, -inf  ;;  %2136 = vmatpush3.bf16.msra.mxu1 %v2321_v35  ;;  %v2322_v36 = vld [vmem:[%s3454_s7 + $0x8] sm:$0xff]  }
 0x4bb   : > { %1222 = vmax.xlane.f32.xlu1 %v1221_v38  ;;  %2137 = vmatprep.subr.bf16.mxu1 %v2722_v14 }
 0x4be   : > { %2138 = vmatpush3.bf16.msra.mxu1 %v2322_v36 }
 0x4bf   : > { %v1326_v39 = vpop.f32.mrb[12].mxu1  ;;  %2151 = vmatprep.subr.bf16.mxu1 %v2722_v14 }
 0x4c0   : > { %v2115_v40 = vpop.f32.mrb[13].mxu1  ;;  %v1327_v47 = vadd.f32 %v1997_v26, %v1326_v39 }
 0x4c1   : > { %v1329_v41 = vpop.f32.mrb[14].mxu1 }
 0x4c2   : > { %v2116_v42 = vpop.f32.mrb[15].mxu1  ;;  %v1332_v49 = vsel %vm1062_vm8, %v1327_v47, -inf }
 0x4c7   : > { %v1437_v43 = vpop.f32.mrb[16].mxu1 }
 0x4c8   : > { %v2127_v44 = vpop.f32.mrb[17].mxu1  ;;  %v1438_v48 = vadd.f32 %v1997_v26, %v1437_v43 }
 0x4c9   : > { %924 = vrot.lane.b32.xlu0 %v3199_v57, %s2724_s12  ;;  %v1440_v45 = vpop.f32.mrb[18].mxu1  ;;  %s3457_s12 = sld [smem:[#allocation42_spill]] }
 0x4ca   : > { %v2128_v46 = vpop.f32.mrb[19].mxu1  ;;  %v1443_v50 = vsel %vm1062_vm8, %v1438_v48, -inf }
 0x4cd   : > { %932 = vrot.lane.b32.xlu0 %v3199_v57, %s2725_s10  ;;  %s1794_s10 = sshll.u32 %s702_s4, 4  ;;  %s3323_s10 = int_to_ptr.vmem [resolvable:$true] %s1794_s10 }
 0x4ce   : > { %s2611_s23 = scalar_lea.vmem %s3323_s10, 128 }
 0x4cf   : > { %p2612_p7 = scmp.ne.s32.totalorder %s3323_s10, %s2611_s23 }
 0x4d1   : > { %p2613_p10 = pnand %p2612_p7, %p3461_p9 }
 0x4d3   : > { %p2614_p12 = pneg %p2613_p10 }
 0x4ec   : > { %1333 = vmax.xlane.f32.xlu0 %v1332_v49 }
 0x4f0   : > { %1444 = vmax.xlane.f32.xlu0 %v1443_v50 }
 0x506   : > { %940 = vrot.lane.b32.xlu0 %v3199_v57, %s2726_s14 }
 0x540   : > { %v1112_v51 = vpop.xlane.xlu0 %1111 }
 0x541   : > { %v1113_v52 = vsub.f32 %v1105_v28, %v1112_v51 }
 0x543   : > { %v1114_v53 = vmul.f32 1.442695, %v1113_v52 }
 0x544   : > { %v925_v54 = vpop.permute.xlu0 %924 }
 0x545   : > { %2337 = vpow2.f32 %v1114_v53  ;;  %928 = vst.msk [vmem:[#allocation3 + $0x4] sm:$0xf] %vm914_vm6, %v925_v54 }
 0x548   : > { %v933_v55 = vpop.permute.xlu0 %932  ;;  %v1223_v56 = vpop.xlane.xlu1 %1222 }
 0x549   : > { %936 = vst.msk [vmem:[#allocation3 + $0x8] sm:$0xf] %vm914_vm6, %v933_v55  ;;  %v1224_v58 = vsub.f32 %v1216_v34, %v1223_v56 }
 0x54b   : > { %v1225_v59 = vmul.f32 1.442695, %v1224_v58 }
 0x54c   : > { %v1232_v61 = vld [vmem:[#allocation3 + $0x4] sm:$0xf] }
 0x54d   : > { %2339 = vpow2.f32 %v1225_v59  ;;  %v1237_v57 = vsel %vm1066_vm7, %v1232_v61, 0 }
 0x54f   : > { %v2338_v60 = vpop.eup %2337 }
 0x550   : > { %v1119_v62 = vpack.c.bf16 %v2338_v60, %v2338_v60  ;;  %v1343_v1 = vld [vmem:[#allocation3 + $0x8] sm:$0xf]  ;;  %v1116_v20 = vsel %vm1062_vm8, %v2338_v60, 0.0 }
 0x551   : > { %v1348_v4 = vsel %vm1066_vm7, %v1343_v1, 0 }
 0x552   : > { %2096 = vmatmul.mubr.msk.bf16.vlgmr.msra.gmra.mrb[8].mxu0 %vm1062_vm8, %v1119_v62 }
 0x553   : > { %2106 = vmatpush3.bf16.msra.mxu0 %v1237_v57  ;;  %2107 = vmatprep.mubr.msk.bf16.mxu0 %vm2723_vm1, %v2722_v14  ;;  %v2006_v57 = vld [vmem:[#allocation15] ss:$0 sm:$0xff] }
 0x554   : > { %2117 = vmatprep.subr.bf16.mxu0 %v2722_v14 }
 0x557   : > { %v2340_v63 = vpop.eup %2339 }
 0x558   : > { %v1227_v2 = vsel %vm1062_vm8, %v2340_v63, 0.0  ;;  %v1230_v3 = vpack.c.bf16 %v2340_v63, %v2340_v63 }
 0x559   : > { %1228 = vadd.xlane.f32.xlu0 %v1227_v2 }
 0x55a   : > { %2108 = vmatmul.mubr.msk.bf16.vlgmr.msra.gmra.mrb[12].mxu0 %vm1062_vm8, %v1230_v3 }
 0x55b   : > { %2118 = vmatpush3.bf16.msra.mxu0 %v1348_v4  ;;  %2119 = vmatprep.mubr.msk.bf16.mxu0 %vm2723_vm1, %v2722_v14 }
 0x55c   : > { %2129 = vmatprep.subr.bf16.mxu0 %v2722_v14 }
 0x579   : > { %v1334_v5 = vpop.xlane.xlu0 %1333 }
 0x57a   : > { %v1335_v6 = vsub.f32 %v1327_v47, %v1334_v5 }
 0x57c   : > { %v1336_v7 = vmul.f32 1.442695, %v1335_v6 }
 0x57d   : > { %v1445_v8 = vpop.xlane.xlu0 %1444 }
 0x57e   : > { %2341 = vpow2.f32 %v1336_v7  ;;  %v1446_v9 = vsub.f32 %v1438_v48, %v1445_v8 }
 0x580   : > { %v1447_v10 = vmul.f32 1.442695, %v1446_v9 }
 0x581   : > { %v941_v11 = vpop.permute.xlu0 %940 }
 0x582   : > { %2343 = vpow2.f32 %v1447_v10  ;;  %944 = vst.msk [vmem:[#allocation3 + $0xc] sm:$0xf] %vm914_vm6, %v941_v11 }
 0x588   : > { %v2342_v12 = vpop.eup %2341 }
 0x589   : > { %v1338_v13 = vsel %vm1062_vm8, %v2342_v12, 0.0  ;;  %v1341_v15 = vpack.c.bf16 %v2342_v12, %v2342_v12  ;;  %v1454_v16 = vld [vmem:[#allocation3 + $0xc] sm:$0xf]  ;;  %v2323_v12 = vld [vmem:[%s3455_s0] sm:$0xff]  }
 0x58a   : > { %1339 = vadd.xlane.f32.xlu1 %v1338_v13  ;;  %v1459_v17 = vsel %vm1066_vm7, %v1454_v16, 0  ;;  %v2325_v13 = vld [vmem:[%s3457_s12] sm:$0xff]  }
 0x58b   : > { %2120 = vmatmul.mubr.msk.bf16.vlgmr.msra.gmra.mrb[16].mxu0 %vm1062_vm8, %v1341_v15  ;;  %v2326_v15 = vld [vmem:[%s3457_s12 + $0x8] sm:$0xff]  }
 0x58c   : > { %v2344_v18 = vpop.eup %2343  ;;  %2130 = vmatpush3.bf16.msra.mxu0 %v1459_v17  ;;  %2131 = vmatprep.mubr.msk.bf16.mxu0 %vm2723_vm1, %v2722_v14 }
 0x58d   : > { %v1449_v19 = vsel %vm1062_vm8, %v2344_v18, 0.0  ;;  %2143 = vmatprep.subr.bf16.mxu0 %v2722_v14  ;;  %v1452_v21 = vpack.c.bf16 %v2344_v18, %v2344_v18 }
 0x58e   : > { %1450 = vadd.xlane.f32.xlu1 %v1449_v19 }
 0x592   : > { %1117 = vadd.xlane.f32.xlu1 %v1116_v20 }
 0x593   : > { %2132 = vmatmul.mubr.msk.bf16.vlgmr.msra.gmra.mrb[20].mxu0 %vm1062_vm8, %v1452_v21 }
 0x594   : > { %2147 = vmatprep.mubr.msk.bf16.mxu0 %vm2723_vm1, %v2722_v14  ;;  %2144 = vmatpush3.bf16.msra.mxu0 %v2323_v12 }
 0x595   : > { %2145 = vmatprep.subr.bf16.mxu0 %v2722_v14 }
 0x5e6   : > { %v1229_v22 = vpop.xlane.xlu0 %1228 }
 0x5e7   : > { %2345 = vrcp.f32 %v1229_v22 }
 0x5f1   : > { %v2346_v27 = vpop.eup %2345 }
 0x617   : > { %v1340_v34 = vpop.xlane.xlu1 %1339 }
 0x618   : > { %2347 = vrcp.f32 %v1340_v34 }
 0x61b   : > { %v1451_v37 = vpop.xlane.xlu1 %1450 }
 0x61c   : > { %2349 = vrcp.f32 %v1451_v37 }
 0x61f   : > { %v1118_v52 = vpop.xlane.xlu1 %1117 }
 0x620   : > { %2351 = vrcp.f32 %v1118_v52 }
 0x622   : > { %v2348_v38 = vpop.eup %2347 }
 0x625   : > { %v1161_v23 = vpop.f32.mrb[8].mxu0 }
 0x626   : > { %v2097_v24 = vpop.f32.mrb[9].mxu0  ;;  %v2350_v45 = vpop.eup %2349 }
 0x627   : > { %v1164_v25 = vpop.f32.mrb[10].mxu0  ;;  %v2010_v24 = vld [vmem:[#allocation16] ss:$0 sm:$0xff] }
 0x628   : > { %v2098_v26 = vpop.f32.mrb[11].mxu0 }
 0x62a   : > { %v2352_v53 = vpop.eup %2351 }
 0x62b   : > { %v1168_v54 = vmul.f32 %v2352_v53, %v1161_v23 }
 0x62d   : > { %v1273_v28 = vpop.f32.mrb[12].mxu0  ;;  %v1169_v56 = vpack.c.bf16 %v1168_v54, %v1168_v54 }
 0x62e   : > { %v1280_v29 = vmul.f32 %v2346_v27, %v1273_v28  ;;  %v2109_v30 = vpop.f32.mrb[13].mxu0  ;;  %v2011_v27 = vld [vmem:[#allocation18] ss:$0 sm:$0xff] }
 0x62f   : > { %v1276_v31 = vpop.f32.mrb[14].mxu0 }
 0x630   : > { %v1281_v32 = vpack.c.bf16 %v1280_v29, %v1280_v29  ;;  %v2110_v33 = vpop.f32.mrb[15].mxu0  ;;  %v2327_v31 = vld [vmem:[%s3457_s12 + $0x10] sm:$0xff]  }
 0x632   : > { %1505 = vrot.lane.b32.xlu1 %v1281_v32, %s2727_s2  ;;  %v2328_v32 = vld [vmem:[%s3457_s12 + $0x18] sm:$0xff]  }
 0x65e   : > { %v1384_v39 = vpop.f32.mrb[16].mxu0 }
 0x65f   : > { %v1391_v40 = vmul.f32 %v2348_v38, %v1384_v39  ;;  %v2121_v41 = vpop.f32.mrb[17].mxu0 }
 0x660   : > { %v1387_v42 = vpop.f32.mrb[18].mxu0  ;;  %v2021_v41 = vld [vmem:[%s3459_s17] ss:$0 sm:$0xff] }
 0x661   : > { %v1392_v43 = vpack.c.bf16 %v1391_v40, %v1391_v40  ;;  %v2122_v44 = vpop.f32.mrb[19].mxu0 }
 0x663   : > { %1508 = vrot.lane.b32.xlu0 %v1392_v43, %s2728_s9  ;;  %s2615_s9 = sshll.u32 %s2730_s22, 4  ;;  %s2616_s9 = int_to_ptr.vmem [resolvable:$false] %s2615_s9 }
 0x664   : > { %p2618_p0 = scmp.lt.s32.totalorder %s3323_s10, %s2616_s9 }
 0x666   : > { %v1495_v46 = vpop.f32.mrb[20].mxu0 }
 0x667   : > { %v1502_v47 = vmul.f32 %v2350_v45, %v1495_v46  ;;  %v2133_v48 = vpop.f32.mrb[21].mxu0 }
 0x668   : > { %v1498_v49 = vpop.f32.mrb[22].mxu0 }
 0x669   : > { %v1503_v50 = vpack.c.bf16 %v1502_v47, %v1502_v47  ;;  %v2134_v51 = vpop.f32.mrb[23].mxu0 }
 0x66b   : > { %1511 = vrot.lane.b32.xlu1 %v1503_v50, %s2729_s6  ;;  %s3458_s6 = sld [smem:[#allocation41_spill]] }
 0x671   : > { %v2012_v33 = vld [vmem:[%s3458_s6] ss:$0 sm:$0xff]  ;;  %s2617_s6 = scalar_lea.vmem %s2616_s9, 256 }
 0x672   : > { %p2619_p6 = scmp.lt.s32.totalorder %s2617_s6, %s2611_s23 }
 0x674   : > { %p2620_p11 = por %p2619_p6, %p2618_p0 }
 0x676   : > { %p2621_p2 = pnand %p2620_p11, %p2614_p12 }
 0x6a4   : > { %v1506_v55 = vpop.permute.xlu1 %1505 }
 0x6a5   : > { %v1515_v59 = vsel %vm1062_vm8, %v1169_v56, %v1506_v55 }
 0x6d5   : > { %v1509_v58 = vpop.permute.xlu0 %1508 }
 0x6d6   : > { %v1518_v60 = vsel %vm1516_vm9, %v1515_v59, %v1509_v58 }
 0x6dd   : > { %v1512_v61 = vpop.permute.xlu1 %1511 }
 0x6de   : > { %v1521_v62 = vsel %vm1519_vm10, %v1518_v60, %v1512_v61 }
 0x6df   : > { %2140 = vmatmul.mubr.msk.bf16.vlgmr.msra.gmra.mrb[20].mxu1 %vm715_vm0, %v1521_v62 }
 0x6e0   : > { %2159 = vmatprep.mubr.msk.bf16.mxu1 %vm2723_vm1, %v2722_v14  ;;  %2152 = vmatpush3.bf16.msra.mxu1 %v2325_v13 }
 0x6e1   : > { %2153 = vmatprep.subr.bf16.mxu1 %v2722_v14 }
 0x6e4   : > { %2154 = vmatpush3.bf16.msra.mxu1 %v2326_v15 }
 0x6e5   : > { %2155 = vmatprep.subr.bf16.mxu1 %v2722_v14 }
 0x6e8   : > { %2156 = vmatpush3.bf16.msra.mxu1 %v2327_v31 }
 0x6e9   : > { %2157 = vmatprep.subr.bf16.mxu1 %v2722_v14 }
 0x6ec   : > { %2158 = vmatpush3.bf16.msra.mxu1 %v2328_v32 }
 0x7b2   : > { %v1581_v63 = vpop.f32.mrb[20].mxu1 }
 0x7b3   : > { %v1582_v1 = vadd.f32 %v2006_v57, %v1581_v63  ;;  %v2141_v2 = vpop.f32.mrb[21].mxu1 }
 0x7b4   : > { %v1584_v3 = vpop.f32.mrb[22].mxu1 }
 0x7b5   : > { %v3280_v4 = vadd.f32 %v1582_v1, %v3155_v0  ;;  %v2142_v5 = vpop.f32.mrb[23].mxu1  ;;  %v2324_v0 = vld [vmem:[%s3456_s15 + $0x8] sm:$0xff]  }
 0x7b6   : > { %2146 = vmatpush3.bf16.msra.mxu0 %v2324_v0 }
 0x7b7   : > { %v1590_v6 = vsel %vm715_vm0, %v3280_v4, 0.0 }
 0x7b8   : > { %1591 = vadd.xlane.f32.xlu1 %v1590_v6 }
 0x845   : > { %v1592_v7 = vpop.xlane.xlu1 %1591 }
 0x846   : > { %v1593_v8 = vmul.f32 0.03125, %v1592_v7 }
 0x848   : > { %v1594_v9 = vsub.f32 %v3280_v4, %v1593_v8 }
 0x84a   : > { %v1595_v10 = vmul.f32 %v1594_v9, %v1594_v9  ;;  %v1613_v25 = vmul.f32 %v2010_v24, %v1594_v9 }
 0x84c   : > { %v1596_v11 = vsel %vm715_vm0, %v1595_v10, 0.0 }
 0x84d   : > { %1597 = vadd.xlane.f32.xlu0 %v1596_v11 }
 0x8da   : > { %v1598_v16 = vpop.xlane.xlu0 %1597 }
 0x8db   : > { %v1599_v17 = vmul.f32 0.032258064, %v1598_v16 }
 0x8dd   : > { %2353 = vrsqrt.f32 %v1599_v17  ;;  %vm1602_vm11 = vcmp.eq.f32.partialorder %v1599_v17, inf  ;;  %v1605_v20 = vand.u32 2147483648, %v1599_v17  ;;  %vm1604_vm12 = vcmp.eq.f32.partialorder %v1599_v17, 0.0 }
 0x8e7   : > { %v2354_v18 = vpop.eup %2353 }
 0x8e8   : > { %v1601_v19 = vmul.f32 %v2354_v18, %v1599_v17 }
 0x8ea   : > { %v1603_v21 = vsel %vm1602_vm11, %v1599_v17, %v1601_v19 }
 0x8eb   : > { %v1606_v22 = vsel %vm1604_vm12, %v1605_v20, %v1603_v21 }
 0x8ec   : > { %v1614_v23 = vadd.f32 1e-06, %v1606_v22 }
 0x8ee   : > { %2355 = vrcp.f32 %v1614_v23 }
 0x8f8   : > { %v2356_v26 = vpop.eup %2355 }
 0x8f9   : > { %v1616_v28 = vmul.f32 %v2356_v26, %v1613_v25 }
 0x8fb   : > { %v1623_v29 = vadd.f32 %v2011_v27, %v1616_v28 }
 0x8fd   : > { %v1624_v30 = vpack.c.bf16 %v1623_v29, %v1623_v29 }
 0x8ff   : > { %2148 = vmatmul.mubr.msk.bf16.vlgmr.msra.gmra.mrb[24].mxu0 %vm715_vm0, %v1624_v30 }
 0x9d2   : > { %v1685_v34 = vpop.f32.mrb[24].mxu0 }
 0x9d3   : > { %v1686_v35 = vadd.f32 %v2012_v33, %v1685_v34  ;;  %v2149_v36 = vpop.f32.mrb[25].mxu0 }
 0x9d4   : > { %v1688_v37 = vpop.f32.mrb[26].mxu0 }
 0x9d5   : > { %v1691_v38 = vmax.f32 %v1686_v35, 0.0  ;;  %v2150_v39 = vpop.f32.mrb[27].mxu0 }
 0x9d7   : > { %v1692_v40 = vpack.c.bf16 %v1691_v38, %v1691_v38 }
 0x9d9   : > { %2160 = vmatmul.mubr.msk.bf16.vlgmr.msra.gmra.mrb[24].mxu1 %vm1725_vm13, %v1692_v40 }
 0xaac   : > { %v1763_v14 = vpop.f32.mrb[24].mxu1 }
 0xaad   : > { %v1769_v42 = vadd.f32 %v1763_v14, %v3280_v4  ;;  %v2161_v43 = vpop.f32.mrb[25].mxu1 }
 0xaae   : > { %v1766_v44 = vpop.f32.mrb[26].mxu1 }
 0xaaf   : > { %v1777_v45 = vadd.f32 %v2021_v41, %v1769_v42  ;;  %v2162_v46 = vpop.f32.mrb[27].mxu1 }
 0xab1   : > { %1778 = vst.msk [vmem:[%s702_s4] sm:$0xff] %vm715_vm0, %v1777_v45 }
 0xab2   : > { %2624 = shalt.err (!%p2621_p2)
}
 0xab3   : > { %s2625_s5 = scalar_lea.hbm %s3321_s21, 128  ;;  %s2629_s16 = scalar_lea.hbm %s3460_s1, 256 }
 0xab4   : > { %p2626_p8 = scmp.ne.s32.totalorder %s3321_s21, %s2625_s5  ;;  %p2630_p5 = scmp.lt.u32.totalorder %s3321_s21, %s3460_s1 }
 0xab5   : > { %p2631_p3 = scmp.lt.u32.totalorder %s2629_s16, %s2625_s5  ;;  %p2633_p7 = scmp.lt.u32.totalorder %s2625_s5, %s3321_s21 }
 0xab6   : > { %p2627_p4 = pnand %p2626_p8, %p3461_p9 }
 0xab7   : > { %p2632_p13 = por %p2631_p3, %p2630_p5 }
 0xab8   : > { %p2628_p1 = pneg %p2627_p4 }
 0xab9   : > { %p2634_p10 = por %p2633_p7, %p2632_p13 }
 0xabb   : > { %p2635_p12 = pnand %p2634_p10, %p2628_p1 }
 0xabd   : > { %2638 = shalt.err (!%p2635_p12)
}
 0xabe   : > { %2197 = dma.vmem_to_hbm [thread:$0]  (%p3461_p9), %s3323_s10, 128, %s3321_s21, %s1780_s30  }
 0xabf PF: > { %p2247_p0 = scmp.ge.s32.totalorder %s2709_s19, 2  ;;  %s1806_s4 = sand.u32 1, %s2689_s27  }
 0xac0   : > { %p3462_p6 = scmp.ne.s32.totalorder %s3439_s20, 0  ;;  %s1807_s14 = scalar_lea.sflag [#allocation6], %s1806_s4 }
 0xac2   : > { %p2228_p11 = pnand %p2247_p0, %p3462_p6 }
 0xac4   : > { %2684 = dma.done.wait (!%p2228_p11), %s1807_s14, 128  }
 0xac5   : > { %2686 = vsyncadd (!%p2228_p11), %s1807_s14, 4294967168  ;;  %s36_s19 = sadd.s32 1, %s2709_s19   ;;  %s3463_s18 = sld [smem:[#allocation28_spill]] }
 0xac6   : > { %p33_p2 = scmp.ge.s32.totalorder %s36_s19, 4   ;;  %s3464_s30 = sld [smem:[#allocation26_spill]] }
 0xac7   : > { %s3465_s0 = sld [smem:[#allocation27_spill]]  ;;  %s3466_s27 = smov %s2693_s28 }
 0xac8   : > { %s3467_s28 = smov %s2697_s29  ;;  %35 = sbr.rel (!%p33_p2) target bundleno = 26 (0x1a), region = 182 }
 0xacb   : > { %s3468_s29 = smov %s3463_s18 }
 0xacf   :  { %1812 = vsyncpa [#allocation5], 1 }
 0xad0   :  { %1814 = vsyncpa [#allocation5 + $0x1], 1 }
 0xad1   :  { %1815 = vsyncpa [#allocation8], 1 }
 0xad2   :  { %1816 = vsyncpa [#allocation11], 1 }
 0xad3   :  { %1817 = vsyncpa [#allocation14], 1 }
 0xad4   :  { %1818 = vsyncpa [#allocation17], 1 }
 0xad5   :  { %1819 = vsyncpa [#allocation6], 1 }
 0xad6   :  { %1821 = vsyncpa [#allocation6 + $0x1], 1 }

// kernel: tpu_custom_call.1
= control target key start
LH: loop header
LB: loop body
LE: loop exit
PB: predicated region body
PF: predicated region fallthrough
CT: control target
= control target key end

     0   :  { %s3392_s0 = inlined_call_operand.vmem [shape: f32[2,8,32], index: 0, kind: input, shape index: {}]   ;;  %s3393_s1 = inlined_call_operand.hbm [shape: f32[2,1,8], index: 1, kind: input, shape index: {}]   ;;  %s3394_s2 = inlined_call_operand.vmem [shape: f32[1,32], index: 2, kind: input, shape index: {}]   ;;  %s3395_s3 = inlined_call_operand.hbm [shape: f32[1,32], index: 3, kind: input, shape index: {}]   ;;  %s3396_s4 = inlined_call_operand.vmem [shape: bf16[32,32], index: 4, kind: input, shape index: {}]   ;;  %s3397_s5 = inlined_call_operand.hbm [shape: f32[1,32], index: 5, kind: input, shape index: {}]   ;;  %s3398_s6 = inlined_call_operand.vmem [shape: bf16[32,32], index: 6, kind: input, shape index: {}]   ;;  %s3399_s7 = inlined_call_operand.hbm [shape: f32[1,32], index: 7, kind: input, shape index: {}]   ;;  %s3400_s8 = inlined_call_operand.hbm [shape: bf16[32,32], index: 8, kind: input, shape index: {}]   ;;  %s3401_s9 = inlined_call_operand.hbm [shape: f32[1,32], index: 9, kind: input, shape index: {}]   ;;  %s3402_s10 = inlined_call_operand.vmem [shape: bf16[32,32], index: 10, kind: input, shape index: {}]   ;;  %s3403_s11 = inlined_call_operand.hbm [shape: f32[1,32], index: 11, kind: input, shape index: {}]   ;;  %s3404_s12 = inlined_call_operand.hbm [shape: f32[1,32], index: 12, kind: input, shape index: {}]   ;;  %s3405_s13 = inlined_call_operand.hbm [shape: f32[1,32], index: 13, kind: input, shape index: {}]   ;;  %s3406_s14 = inlined_call_operand.vmem [shape: bf16[1,32,64], index: 14, kind: input, shape index: {}]   ;;  %s3407_s15 = inlined_call_operand.vmem [shape: f32[1,1,64], index: 15, kind: input, shape index: {}]   ;;  %s3408_s16 = inlined_call_operand.vmem [shape: bf16[1,64,32], index: 16, kind: input, shape index: {}]   ;;  %s3409_s17 = inlined_call_operand.vmem [shape: f32[1,32], index: 17, kind: input, shape index: {}]   ;;  %s3410_s18 = inlined_call_operand.hbm [shape: f32[2,8,32], index: 18, kind: output, shape index: {}]  }
   0x1   :  { %3423 = sst [smem:[#allocation26_spill]] %s3392_s0 }
   0x2   :  { %3424 = sst [smem:[#allocation27_spill]] %s3393_s1 }
   0x3   :  { %3425 = sst [smem:[#allocation28_spill]] %s3394_s2 }
   0x4   :  { %3426 = sst [smem:[#allocation29_spill]] %s3395_s3 }
   0x5   :  { %3427 = sst [smem:[#allocation30_spill]] %s3396_s4 }
   0x6   :  { %3428 = sst [smem:[#allocation31_spill]] %s3397_s5 }
   0x7   :  { %3429 = sst [smem:[#allocation32_spill]] %s3398_s6 }
   0x8   :  { %3430 = sst [smem:[#allocation33_spill]] %s3399_s7 }
   0x9   :  { %3431 = sst [smem:[#allocation34_spill]] %s3402_s10 }
   0xa   :  { %3432 = sst [smem:[#allocation35_spill]] %s3406_s14 }
   0xb   :  { %3433 = sst [smem:[#allocation36_spill]] %s3407_s15 }
   0xc   :  { %3434 = sst [smem:[#allocation37_spill]] %s3408_s16 }
   0xd   :  { %3435 = sst [smem:[#allocation38_spill]] %s3409_s17 }
   0xe   :  { %3436 = sst [smem:[#allocation39_spill]] %s3410_s18 }
   0xf   :  { %23 = vsyncpa [#allocation5], 0 }
  0x10   :  { %25 = vsyncpa [#allocation5 + $0x1], 0 }
  0x11   :  { %26 = vsyncpa [#allocation8], 0 }
  0x12   :  { %27 = vsyncpa [#allocation11], 0 }
  0x13   :  { %28 = vsyncpa [#allocation14], 0 }
  0x14   :  { %29 = vsyncpa [#allocation17], 0 }
  0x15   :  { %30 = vsyncpa [#allocation6], 0 }
  0x16   :  { %32 = vsyncpa [#allocation6 + $0x1], 0  ;;  %s2845_s27 = smov 0   ;;  %s2847_s28 = smov 0  }
  0x17   :  { %s2849_s29 = smov 0   ;;  %s2851_s30 = smov 0  }
  0x18   :  { %s2853_s0 = smov 0   ;;  %s2855_s19 = smov 0  }
  0x19 LB: > { %s3412_s1 = sadd.s32 4294967295, %s2728_s19   ;;  %p1976_p0 = scmp.ge.s32.totalorder %s2728_s19, 1  ;;  %s2728_s19 = sphi %s2855_s19, %s38_s19   ;;  %s2724_s0 = sphi %s2853_s0, %s3471_s0   ;;  %s2720_s30 = sphi %s2851_s30, %s3470_s30   ;;  %s2716_s29 = sphi %s2849_s29, %s3469_s29   ;;  %s2712_s28 = sphi %s2847_s28, %s3468_s28   ;;  %s2708_s27 = sphi %s2845_s27, %s3467_s27  }
  0x1a   : > { %p2879_p1 = scmp.eq.s32.totalorder %s3412_s1, 0  ;;  %p471_p2 = scmp.lt.s32.totalorder %s2728_s19, 3 }
  0x1b   : > { %s2730_s22 = smov [#allocation7]   ;;  %s2731_s23 = smov [#allocation10]  }
  0x1c   : > { %s3437_s20 = scalar_select %p2879_p1, 1, 0 }
  0x1d   : > { %p2884_p3 = pnand %p1976_p0, %p471_p2  ;;  %s487_s2 = sshll.u32 %s2730_s22, 4  ;;  %s488_s2 = int_to_ptr.vmem [resolvable:$true] %s487_s2 }
  0x1e   : > { %s515_s24 = sshll.u32 %s2731_s23, 4  ;;  %s2732_s26 = smov [#allocation13]   ;;  %s2897_s24 = int_to_ptr.vmem [resolvable:$true] %s515_s24 }
  0x1f   : > { %s3438_s21 = scalar_select %p2884_p3, 1, 0 }
  0x20   : > { %p2217_p5 = pneg %p2884_p3  ;;  %s539_s1 = sshll.u32 %s2732_s26, 4  ;;  %s2899_s1 = int_to_ptr.vmem [resolvable:$true] %s539_s1 }
  0x21   : > { %s3440_s3 = sld [smem:[#allocation29_spill]] }
  0x22   : > { %p2893_p6 = pnand %p2217_p5, %p2879_p1 }
  0x24   : > { %p2909_p8 = pneg %p2893_p6 }
  0x27   : > { %s2376_s17 = scalar_lea.hbm %s3440_s3, 16 }
  0x28   : > { %p2377_p7 = scmp.ne.s32.totalorder %s3440_s3, %s2376_s17  ;;  %p2383_p11 = scmp.lt.u32.totalorder %s2376_s17, %s3440_s3 }
  0x2a   : > { %p2379_p9 = pnand %p2909_p8, %p2377_p7 }
  0x2c   : > { %p2380_p10 = pneg %p2379_p9 }
  0x2e   : > { %p2385_p12 = pnand %p2383_p11, %p2380_p10 }
  0x30   : > { %2388 = shalt.err (!%p2385_p12)
}
  0x31   : > { %s2389_s18 = scalar_lea.vmem %s488_s2, 16  ;;  %s2396_s15 = scalar_lea.vmem %s488_s2, 32 }
  0x32   : > { %p2390_p13 = scmp.ne.s32.totalorder %s488_s2, %s2389_s18  ;;  %p2397_p5 = scmp.lt.s32.totalorder %s488_s2, %s488_s2 }
  0x33   : > { %p2398_p4 = scmp.lt.s32.totalorder %s2396_s15, %s2389_s18 }
  0x34   : > { %p2392_p0 = pnand %p2390_p13, %p2909_p8 }
  0x35   : > { %p2399_p3 = por %p2398_p4, %p2397_p5 }
  0x36   : > { %p2393_p2 = pneg %p2392_p0 }
  0x38   : > { %p2400_p1 = pnand %p2399_p3, %p2393_p2 }
  0x3a   : > { %2403 = shalt.err (!%p2400_p1)
}
  0x3b   : > { %2220 = dma.hbm_to_vmem [thread:$0]  (!%p2893_p6), %s3440_s3, 16, %s488_s2, [#allocation8]  }
  0x3c   : > { %s3442_s7 = sld [smem:[#allocation33_spill]] }
  0x42   : > { %s2404_s26 = scalar_lea.hbm %s3442_s7, 16 }
  0x43   : > { %p2405_p7 = scmp.ne.s32.totalorder %s3442_s7, %s2404_s26  ;;  %p2411_p1 = scmp.lt.u32.totalorder %s2404_s26, %s3442_s7 }
  0x45   : > { %p2407_p9 = pnand %p2405_p7, %p2909_p8 }
  0x47   : > { %p2408_p4 = pneg %p2407_p9 }
  0x49   : > { %p2413_p3 = pnand %p2411_p1, %p2408_p4 }
  0x4b   : > { %2416 = shalt.err (!%p2413_p3)
}
  0x4c   : > { %s2417_s2 = scalar_lea.vmem %s2897_s24, 16  ;;  %s2424_s4 = scalar_lea.vmem %s2897_s24, 32 }
  0x4d   : > { %p2418_p10 = scmp.ne.s32.totalorder %s2897_s24, %s2417_s2  ;;  %p2425_p13 = scmp.lt.s32.totalorder %s2897_s24, %s2897_s24 }
  0x4e   : > { %p2426_p0 = scmp.lt.s32.totalorder %s2424_s4, %s2417_s2 }
  0x4f   : > { %p2420_p11 = pnand %p2418_p10, %p2909_p8 }
  0x50   : > { %p2427_p2 = por %p2426_p0, %p2425_p13 }
  0x51   : > { %p2421_p12 = pneg %p2420_p11 }
  0x53   : > { %p2428_p5 = pnand %p2427_p2, %p2421_p12 }
  0x55   : > { %2431 = shalt.err (!%p2428_p5)
}
  0x56   : > { %2226 = dma.hbm_to_vmem [thread:$0]  (!%p2893_p6), %s3442_s7, 16, %s2897_s24, [#allocation11]  }
  0x57   : > { %s2432_s17 = scalar_lea.hbm %s3401_s9, 16 }
  0x58   : > { %p2433_p7 = scmp.ne.s32.totalorder %s3401_s9, %s2432_s17  ;;  %p2439_p1 = scmp.lt.u32.totalorder %s2432_s17, %s3401_s9 }
  0x5a   : > { %p2435_p9 = pnand %p2433_p7, %p2909_p8 }
  0x5c   : > { %p2436_p4 = pneg %p2435_p9 }
  0x5e   : > { %p2441_p3 = pnand %p2439_p1, %p2436_p4 }
  0x60   : > { %2444 = shalt.err (!%p2441_p3)
}
  0x61   : > { %s2445_s24 = scalar_lea.vmem %s2899_s1, 16  ;;  %s2452_s4 = scalar_lea.vmem %s2899_s1, 32 }
  0x62   : > { %p2446_p10 = scmp.ne.s32.totalorder %s2899_s1, %s2445_s24  ;;  %p2453_p13 = scmp.lt.s32.totalorder %s2899_s1, %s2899_s1 }
  0x63   : > { %p2454_p0 = scmp.lt.s32.totalorder %s2452_s4, %s2445_s24 }
  0x64   : > { %p2448_p11 = pnand %p2446_p10, %p2909_p8 }
  0x65   : > { %p2455_p2 = por %p2454_p0, %p2453_p13 }
  0x66   : > { %p2449_p12 = pneg %p2448_p11 }
  0x68   : > { %p2456_p5 = pnand %p2455_p2, %p2449_p12 }
  0x6a   : > { %2459 = shalt.err (!%p2456_p5)
}
  0x6b   : > { %2232 = dma.hbm_to_vmem [thread:$0]  (!%p2893_p6), %s3401_s9, 16, %s2899_s1, [#allocation14]  }
  0x6c   : > { %s2733_s22 = smov [#allocation16]   ;;  %s2734_s17 = smov [#allocation9]  }
  0x6d   : > { %s564_s14 = sshll.u32 %s2733_s22, 4  ;;  %s501_s26 = sshll.u32 %s2734_s17, 4  ;;  %s565_s14 = int_to_ptr.vmem [resolvable:$true] %s564_s14  ;;  %s502_s26 = int_to_ptr.vmem [resolvable:$true] %s501_s26 }
  0x6e   : > { %s2460_s2 = scalar_lea.hbm %s3404_s12, 16 }
  0x6f   : > { %p2461_p7 = scmp.ne.s32.totalorder %s3404_s12, %s2460_s2  ;;  %p2467_p1 = scmp.lt.u32.totalorder %s2460_s2, %s3404_s12 }
  0x71   : > { %p2463_p9 = pnand %p2461_p7, %p2909_p8 }
  0x73   : > { %p2464_p4 = pneg %p2463_p9 }
  0x75   : > { %p2469_p3 = pnand %p2467_p1, %p2464_p4 }
  0x77   : > { %2472 = shalt.err (!%p2469_p3)
}
  0x78   : > { %s2473_s1 = scalar_lea.vmem %s565_s14, 16  ;;  %s2480_s16 = scalar_lea.vmem %s565_s14, 32 }
  0x79   : > { %p2474_p10 = scmp.ne.s32.totalorder %s565_s14, %s2473_s1  ;;  %p2481_p13 = scmp.lt.s32.totalorder %s565_s14, %s565_s14 }
  0x7a   : > { %p2482_p0 = scmp.lt.s32.totalorder %s2480_s16, %s2473_s1 }
  0x7b   : > { %p2476_p11 = pnand %p2474_p10, %p2909_p8 }
  0x7c   : > { %p2483_p2 = por %p2482_p0, %p2481_p13 }
  0x7d   : > { %p2477_p12 = pneg %p2476_p11 }
  0x7f   : > { %p2484_p5 = pnand %p2483_p2, %p2477_p12 }
  0x81   : > { %2487 = shalt.err (!%p2484_p5)
}
  0x82   : > { %2238 = dma.hbm_to_vmem [thread:$0]  (!%p2893_p6), %s3404_s12, 16, %s565_s14, [#allocation17]  }
  0x83   : > { %s3443_s5 = sld [smem:[#allocation31_spill]] }
  0x89   : > { %s2488_s15 = scalar_lea.hbm %s3443_s5, 16 }
  0x8a   : > { %p2489_p7 = scmp.ne.s32.totalorder %s3443_s5, %s2488_s15  ;;  %p2495_p1 = scmp.lt.u32.totalorder %s2488_s15, %s3443_s5 }
  0x8c   : > { %p2491_p9 = pnand %p2489_p7, %p2909_p8 }
  0x8e   : > { %p2492_p4 = pneg %p2491_p9 }
  0x90   : > { %p2497_p3 = pnand %p2495_p1, %p2492_p4 }
  0x92   : > { %2500 = shalt.err (!%p2497_p3)
}
  0x93   : > { %s2501_s1 = scalar_lea.vmem %s502_s26, 16  ;;  %s2508_s14 = scalar_lea.vmem %s502_s26, 32 }
  0x94   : > { %p2502_p10 = scmp.ne.s32.totalorder %s502_s26, %s2501_s1  ;;  %p2509_p13 = scmp.lt.s32.totalorder %s502_s26, %s502_s26 }
  0x95   : > { %p2510_p0 = scmp.lt.s32.totalorder %s2508_s14, %s2501_s1 }
  0x96   : > { %p2504_p11 = pnand %p2502_p10, %p2909_p8 }
  0x97   : > { %p2511_p2 = por %p2510_p0, %p2509_p13 }
  0x98   : > { %p2505_p12 = pneg %p2504_p11 }
  0x9a   : > { %p2512_p5 = pnand %p2511_p2, %p2505_p12 }
  0x9c   : > { %2515 = shalt.err (!%p2512_p5)
}
  0x9d   : > { %2223 = dma.hbm_to_vmem [thread:$0]  (!%p2893_p6), %s3443_s5, 16, %s502_s26, [#allocation8]  }
  0x9e   : > { %s2735_s17 = smov [#allocation12]   ;;  %s2516_s2 = scalar_lea.hbm %s3400_s8, 256 }
  0x9f   : > { %s525_s3 = sshll.u32 %s2735_s17, 4  ;;  %p2517_p7 = scmp.ne.s32.totalorder %s3400_s8, %s2516_s2  ;;  %s526_s3 = int_to_ptr.vmem [resolvable:$true] %s525_s3 }
  0xa0   : > { %p2523_p1 = scmp.lt.u32.totalorder %s2516_s2, %s3400_s8 }
  0xa1   : > { %p2519_p9 = pnand %p2517_p7, %p2909_p8 }
  0xa3   : > { %p2520_p4 = pneg %p2519_p9 }
  0xa5   : > { %p2525_p3 = pnand %p2523_p1, %p2520_p4 }
  0xa7   : > { %2528 = shalt.err (!%p2525_p3)
}
  0xa8   : > { %s2529_s26 = scalar_lea.vmem %s526_s3, 256  ;;  %p2537_p13 = scmp.lt.s32.totalorder %s526_s3, %s526_s3 }
  0xa9   : > { %p2530_p10 = scmp.ne.s32.totalorder %s526_s3, %s2529_s26  ;;  %p2538_p0 = scmp.lt.s32.totalorder %s2529_s26, %s2529_s26 }
  0xab   : > { %p2532_p11 = pnand %p2530_p10, %p2909_p8  ;;  %p2539_p2 = por %p2538_p0, %p2537_p13 }
  0xad   : > { %p2533_p12 = pneg %p2532_p11 }
  0xaf   : > { %p2540_p5 = pnand %p2539_p2, %p2533_p12 }
  0xb1   : > { %2543 = shalt.err (!%p2540_p5)
}
  0xb2   : > { %s2736_s14 = smov 64   ;;  %s2737_s16 = smov 4  }
  0xb3   : > { %2229 = dma.hbm_to_vmem [thread:$0]  (!%p2893_p6), %s3400_s8, 256, %s526_s3, [#allocation11], %s2736_s14, %s2736_s14, %s2737_s16  }
  0xb4   : > { %s2738_s18 = smov [#allocation15]   ;;  %s2739_s2 = smov [#allocation18]  }
  0xb5   : > { %s553_s15 = sshll.u32 %s2738_s18, 4  ;;  %s575_s24 = sshll.u32 %s2739_s2, 4  ;;  %s554_s15 = int_to_ptr.vmem [resolvable:$true] %s553_s15  ;;  %s3027_s24 = int_to_ptr.vmem [resolvable:$true] %s575_s24 }
  0xb6   : > { %s2544_s1 = scalar_lea.hbm %s3403_s11, 16 }
  0xb7   : > { %p2545_p7 = scmp.ne.s32.totalorder %s3403_s11, %s2544_s1  ;;  %p2551_p1 = scmp.lt.u32.totalorder %s2544_s1, %s3403_s11 }
  0xb9   : > { %p2547_p9 = pnand %p2545_p7, %p2909_p8 }
  0xbb   : > { %p2548_p4 = pneg %p2547_p9 }
  0xbd   : > { %p2553_p3 = pnand %p2551_p1, %p2548_p4 }
  0xbf   : > { %2556 = shalt.err (!%p2553_p3)
}
  0xc0   : > { %s2557_s14 = scalar_lea.vmem %s554_s15, 16  ;;  %s2564_s16 = scalar_lea.vmem %s554_s15, 32 }
  0xc1   : > { %p2558_p10 = scmp.ne.s32.totalorder %s554_s15, %s2557_s14  ;;  %p2565_p13 = scmp.lt.s32.totalorder %s554_s15, %s554_s15 }
  0xc2   : > { %p2566_p0 = scmp.lt.s32.totalorder %s2564_s16, %s2557_s14 }
  0xc3   : > { %p2560_p11 = pnand %p2558_p10, %p2909_p8 }
  0xc4   : > { %p2567_p2 = por %p2566_p0, %p2565_p13 }
  0xc5   : > { %p2561_p12 = pneg %p2560_p11 }
  0xc7   : > { %p2568_p5 = pnand %p2567_p2, %p2561_p12 }
  0xc9   : > { %2571 = shalt.err (!%p2568_p5)
}
  0xca   : > { %2235 = dma.hbm_to_vmem [thread:$0]  (!%p2893_p6), %s3403_s11, 16, %s554_s15, [#allocation14]  }
  0xcb   : > { %s2572_s4 = scalar_lea.hbm %s3405_s13, 16 }
  0xcc   : > { %p2573_p7 = scmp.ne.s32.totalorder %s3405_s13, %s2572_s4  ;;  %p2579_p1 = scmp.lt.u32.totalorder %s2572_s4, %s3405_s13 }
  0xce   : > { %p2575_p9 = pnand %p2573_p7, %p2909_p8 }
  0xd0   : > { %p2576_p4 = pneg %p2575_p9 }
  0xd2   : > { %p2581_p3 = pnand %p2579_p1, %p2576_p4 }
  0xd4   : > { %2584 = shalt.err (!%p2581_p3)
}
  0xd5   : > { %s2585_s15 = scalar_lea.vmem %s3027_s24, 16  ;;  %s2592_s3 = scalar_lea.vmem %s3027_s24, 32 }
  0xd6   : > { %p2586_p10 = scmp.ne.s32.totalorder %s3027_s24, %s2585_s15  ;;  %p2593_p13 = scmp.lt.s32.totalorder %s3027_s24, %s3027_s24 }
  0xd7   : > { %p2594_p0 = scmp.lt.s32.totalorder %s2592_s3, %s2585_s15 }
  0xd8   : > { %p2588_p11 = pnand %p2586_p10, %p2909_p8 }
  0xd9   : > { %p2595_p2 = por %p2594_p0, %p2593_p13 }
  0xda   : > { %p2589_p12 = pneg %p2588_p11 }
  0xdc   : > { %p2596_p5 = pnand %p2595_p2, %p2589_p12 }
  0xde   : > { %2599 = shalt.err (!%p2596_p5)
}
  0xdf   : > { %2241 = dma.hbm_to_vmem [thread:$0]  (!%p2893_p6), %s3405_s13, 16, %s3027_s24, [#allocation17]  }
  0xe0   : > { %s1975_s23 = sadd.s32 4294967294, %s2728_s19   ;;  %s50_s5 = sadd.s32 1, %s2724_s0 }
  0xe1   : > { %p52_p8 = scmp.ge.s32.totalorder %s50_s5, 2  ;;  %s83_s25 = sadd.s32 1, %s2716_s29 }
  0xe2   : > { %p90_p7 = scmp.ne.s32.totalorder %s2716_s29, %s2712_s28  ;;  %p91_p9 = scmp.eq.s32.totalorder %s2728_s19, 0 }
  0xe3   : > { %s3473_s5 = smov (%p52_p8, %s50_s5), 0  ;;  %p96_p1 = scmp.ne.s32.totalorder %s2712_s28, %s2708_s27 }
  0xe4   : > { %p3079_p4 = por %p91_p9, %p90_p7  ;;  %s80_s24 = ssub.s32 %s2724_s0, %s3473_s5 }
  0xe5   : > { %s3445_s18 = sadd.s32 4294967295, %s2728_s19   ;;  %p81_p3 = scmp.eq.s32.totalorder %s80_s24, 0 }
  0xe6   : > { %p458_p6 = scmp.eq.s32.totalorder %s3445_s18, 1  ;;  %p3446_p10 = scmp.ne.s32.totalorder %s3437_s20, 0 }
  0xe7   : > { %p464_p13 = scmp.eq.s32.totalorder %s1975_s23, 1  ;;  %p2258_p2 = scmp.lt.s32.totalorder %s2728_s19, 2 }
  0xe8   : > { %p3091_p11 = por %p3446_p10, %p96_p1  ;;  %p3095_p12 = por %p458_p6, %p90_p7 }
  0xe9   : > { %s3100_s10 = scalar_select %p81_p3, %s2716_s29, %s83_s25  }
  0xea   : > { %s3448_s4 = scalar_select %p3095_p12, 1, 0 }
  0xeb   : > { %p3102_p0 = por %p464_p13, %p96_p1  ;;  %s605_s26 = sand.u32 1, %s2716_s29  }
  0xec   : > { %s1986_s22 = sshll.u32 %s2724_s0, 4  ;;  %s3450_s14 = sld [smem:[#allocation27_spill]] }
  0xed   : > { %s3449_s1 = scalar_select %p3102_p0, 1, 0 }
  0xee   : > { %s608_s24 = scalar_lea.vmem [#allocation4], %s605_s26  ;;  %p3118_p5 = pnand %p2258_p2, %p3079_p4 }
  0xef   : > { %s615_s23 = sshll.u32 %s608_s24, 4  ;;  %s606_s18 = scalar_lea.sflag [#allocation5], %s605_s26  ;;  %s3114_s23 = int_to_ptr.vmem [resolvable:$true] %s615_s23 }
  0xf0   : > { %p2602_p7 = pneg %p3118_p5 }
  0xf2   : > { %s3112_s16 = scalar_lea.hbm %s3450_s14, %s1986_s22  ;;  %s2605_s3 = scalar_lea.hbm %s3450_s14, 32 }
  0xf3   : > { %s2600_s7 = scalar_lea.hbm %s3112_s16, 16  ;;  %p2606_p4 = scmp.lt.u32.totalorder %s3112_s16, %s3450_s14 }
  0xf4   : > { %p2601_p8 = scmp.ne.s32.totalorder %s3112_s16, %s2600_s7  ;;  %p2607_p6 = scmp.lt.u32.totalorder %s2605_s3, %s2600_s7 }
  0xf5   : > { %p2609_p10 = scmp.lt.u32.totalorder %s2600_s7, %s3112_s16 }
  0xf6   : > { %p2603_p9 = pnand %p2602_p7, %p2601_p8  ;;  %p2608_p3 = por %p2607_p6, %p2606_p4 }
  0xf8   : > { %p2604_p1 = pneg %p2603_p9  ;;  %p2610_p13 = por %p2609_p10, %p2608_p3 }
  0xfa   : > { %p2611_p2 = pnand %p2610_p13, %p2604_p1 }
  0xfc   : > { %2614 = shalt.err (!%p2611_p2)
}
  0xfd   : > { %s2615_s26 = scalar_lea.vmem %s3114_s23, 16  ;;  %s2740_s22 = smov [#allocation4]  }
  0xfe   : > { %p2616_p8 = scmp.ne.s32.totalorder %s3114_s23, %s2615_s26  ;;  %s2620_s15 = sshll.u32 %s2740_s22, 4  ;;  %s2621_s15 = int_to_ptr.vmem [resolvable:$false] %s2620_s15 }
  0xff   : > { %s2622_s17 = scalar_lea.vmem %s2621_s15, 32  ;;  %p2623_p12 = scmp.lt.s32.totalorder %s3114_s23, %s2621_s15 }
 0x100   : > { %p2618_p9 = pnand %p2616_p8, %p2602_p7  ;;  %p2624_p4 = scmp.lt.s32.totalorder %s2622_s17, %s2615_s26 }
 0x102   : > { %p2619_p0 = pneg %p2618_p9  ;;  %p2625_p6 = por %p2624_p4, %p2623_p12 }
 0x104   : > { %p2626_p3 = pnand %p2625_p6, %p2619_p0 }
 0x106   : > { %2629 = shalt.err (!%p2626_p3)
}
 0x107   : > { %2245 = dma.hbm_to_vmem [thread:$0]  (!%p3118_p5), %s3112_s16, 16, %s3114_s23, %s606_s18  }
 0x108   : > { %p3452_p1 = scmp.ne.s32.totalorder %s3438_s21, 0 }
 0x109   : > { %s3150_s7 = sand.u32 (!%p3452_p1), 1, %s2712_s28  }
 0x10a   : > { %624 = sbr.rel (%p3452_p1) target bundleno = 2739 (0xab3), region = 92  ;;  %s627_s3 = scalar_lea.sflag (!%p3452_p1), [#allocation5], %s3150_s7 }
 0x10b   : > { %s629_s24 = scalar_lea.vmem (!%p3452_p1), [#allocation4], %s3150_s7 }
 0x111   : > { %2683 = dma.done.wait (%p3091_p11), %s627_s3, 16  }
 0x112   : > { %2685 = vsyncadd (%p3091_p11), %s627_s3, 4294967280  ;;  %p3453_p12 = scmp.ne.s32.totalorder %s3437_s20, 0 }
 0x114   : > { %2687 = dma.done.wait (%p3453_p12), [#allocation8], 32  }
 0x115   : > { %2689 = vsyncadd (%p3453_p12), [#allocation8], 4294967264 }
 0x116   : > { %2691 = dma.done.wait (%p3453_p12), [#allocation11], 272  }
 0x117   : > { %2693 = vsyncadd (%p3453_p12), [#allocation11], 4294967024 }
 0x118   : > { %2695 = dma.done.wait (%p3453_p12), [#allocation14], 32  }
 0x119   : > { %2697 = vsyncadd (%p3453_p12), [#allocation14], 4294967264 }
 0x11a   : > { %2699 = dma.done.wait (%p3453_p12), [#allocation17], 32  }
 0x11b   : > { %2701 = vsyncadd (%p3453_p12), [#allocation17], 4294967264  ;;  %p717_p11 = scmp.lt.s32.totalorder %s2720_s30, 1  ;;  %s3454_s25 = sld [smem:[#allocation26_spill]]  ;;  %vm729_vm0 = vcmask 261120   ;;  %v2335_v13 = vld [vmem:[#allocation12] sm:$0xff]  }
 0x11c   : > { %s3455_s6 = sld [smem:[#allocation32_spill]]  ;;  %v2741_v14 = vmov 0.0   ;;  %v2337_v16 = vld [vmem:[#allocation12 + $0x8] sm:$0xff]   ;;  %vm2742_vm1 = vmmov 0   ;;  %v1999_v36 = vld [vmem:[#allocation7] ss:$0 sm:$0xff] }
 0x11d   : > { %s718_s21 = scalar_select %p717_p11, %s2720_s30, 1  ;;  %2081 = vmatprep.subr.bf16.mxu0 %v2741_v14  ;;  %2089 = vmatprep.subr.bf16.mxu1 %v2741_v14  ;;  %v2000_v47 = vld [vmem:[#allocation10] ss:$0 sm:$0xff]  ;;  %v2004_v48 = vld [vmem:[#allocation13] ss:$0 sm:$0xff]  ;;  %vm928_vm6 = vcmask 60416  }
 0x11e   : > { %2090 = vmatpush3.bf16.msra.mxu1 %v2335_v13  ;;  %2085 = vmatprep.mubr.msk.bf16.mxu0 %vm2742_vm1, %v2741_v14  ;;  %s3457_s23 = sld [smem:[#allocation30_spill]]  ;;  %v2011_v60 = vld [vmem:[#allocation9] ss:$0 sm:$0xff]  ;;  %vm1080_vm7 = vcmask 1043456   ;;  %s2743_s20 = smov 120   ;;  %vm1076_vm8 = vcmask 64512  }
 0x11f   : > { %s1997_s2 = sshll.u32 %s718_s21, 3  ;;  %2091 = vmatprep.subr.bf16.mxu1 %v2741_v14  ;;  %2093 = vmatprep.mubr.msk.bf16.mxu1 %vm2742_vm1, %v2741_v14  ;;  %s3456_s21 = sld [smem:[#allocation28_spill]]  ;;  %vm1530_vm9 = vcmask 130048   ;;  %vm1533_vm10 = vcmask 195584   ;;  %vm1739_vm13 = vcmask 523264  }
 0x120   : > { %s2744_s26 = smov 112   ;;  %s2745_s22 = smov 104  }
 0x121   : > { %s720_s18 = scalar_lea.vmem %s3454_s25, %s1997_s2  ;;  %s3458_s3 = sld [smem:[#allocation34_spill]] }
 0x122   : > { %v3179_v0 = vld [vmem:[%s720_s18] sm:$0xff]  ;;  %v2336_v15 = vld [vmem:[%s3455_s6 + $0x8] sm:$0xff]   ;;  %2092 = vmatpush3.bf16.msra.mxu1 %v2337_v16  ;;  %s2747_s16 = smov 16   ;;  %s2748_s25 = smov 24  }
 0x123   : > { %v730_v1 = vsel %vm729_vm0, %v3179_v0, 0.0  ;;  %v2334_v12 = vld [vmem:[%s3455_s6] sm:$0xff]   ;;  %2105 = vmatprep.subr.bf16.mxu1 %v2741_v14  ;;  %s3461_s17 = sld [smem:[#allocation36_spill]]  ;;  %s1996_s2 = sshll.u32 %s3150_s7, 3 }
 0x124   : > { %731 = vadd.xlane.f32.xlu0 %v730_v1  ;;  %2082 = vmatpush3.bf16.msra.mxu0 %v2334_v12  ;;  %v2338_v41 = vld [vmem:[%s3457_s23] sm:$0xff]   ;;  %v2339_v44 = vld [vmem:[%s3457_s23 + $0x8] sm:$0xff]   ;;  %s3462_s18 = sld [smem:[#allocation38_spill]]  ;;  %p3464_p5 = scmp.ne.s32.totalorder %s3448_s4, 0 }
 0x125   : > { %2083 = vmatprep.subr.bf16.mxu0 %v2741_v14  ;;  %v1998_v33 = vld [vmem:[%s3456_s21] ss:$0 sm:$0xff]  ;;  %s3460_s21 = sld [smem:[#allocation37_spill]] }
 0x128   : > { %966 = vadd.xlane.f32.xlu0 %v730_v1  ;;  %2084 = vmatpush3.bf16.msra.mxu0 %v2336_v15 }
 0x129   : > { %2097 = vmatprep.subr.bf16.mxu0 %v2741_v14 }
 0x1b1   : > { %v732_v2 = vpop.xlane.xlu0 %731 }
 0x1b2   : > { %v734_v3 = vmul.f32 0.03125, %v732_v2 }
 0x1b4   : > { %v735_v4 = vsub.f32 %v3179_v0, %v734_v3 }
 0x1b5   : > { %v967_v5 = vpop.xlane.xlu0 %966 }
 0x1b6   : > { %v969_v6 = vmul.f32 0.03125, %v967_v5  ;;  %v736_v7 = vmul.f32 %v735_v4, %v735_v4  ;;  %v754_v34 = vmul.f32 %v1998_v33, %v735_v4 }
 0x1b8   : > { %v970_v8 = vsub.f32 %v3179_v0, %v969_v6  ;;  %v737_v9 = vsel %vm729_vm0, %v736_v7, 0.0 }
 0x1b9   : > { %738 = vadd.xlane.f32.xlu1 %v737_v9 }
 0x1ba   : > { %v971_v10 = vmul.f32 %v970_v8, %v970_v8  ;;  %v989_v38 = vmul.f32 %v1998_v33, %v970_v8 }
 0x1bc   : > { %v972_v11 = vsel %vm729_vm0, %v971_v10, 0.0 }
 0x1bd   : > { %973 = vadd.xlane.f32.xlu1 %v972_v11 }
 0x246   : > { %v739_v17 = vpop.xlane.xlu1 %738 }
 0x247   : > { %v740_v18 = vmul.f32 0.032258064, %v739_v17 }
 0x249   : > { %2348 = vrsqrt.f32 %v740_v18  ;;  %vm743_vm2 = vcmp.eq.f32.partialorder %v740_v18, inf  ;;  %v746_v23 = vand.u32 2147483648, %v740_v18  ;;  %vm745_vm3 = vcmp.eq.f32.partialorder %v740_v18, 0.0 }
 0x24a   : > { %v974_v19 = vpop.xlane.xlu1 %973 }
 0x24b   : > { %v975_v20 = vmul.f32 0.032258064, %v974_v19 }
 0x24d   : > { %2350 = vrsqrt.f32 %v975_v20  ;;  %vm978_vm4 = vcmp.eq.f32.partialorder %v975_v20, inf  ;;  %v981_v27 = vand.u32 2147483648, %v975_v20  ;;  %vm980_vm5 = vcmp.eq.f32.partialorder %v975_v20, 0.0 }
 0x253   : > { %v2349_v21 = vpop.eup %2348 }
 0x254   : > { %v742_v22 = vmul.f32 %v2349_v21, %v740_v18 }
 0x256   : > { %v744_v24 = vsel %vm743_vm2, %v740_v18, %v742_v22 }
 0x257   : > { %v2351_v25 = vpop.eup %2350  ;;  %v747_v26 = vsel %vm745_vm3, %v746_v23, %v744_v24 }
 0x258   : > { %v755_v28 = vadd.f32 1e-06, %v747_v26  ;;  %v977_v29 = vmul.f32 %v2351_v25, %v975_v20  ;;  %v2015_v26 = vld [vmem:[%s629_s24] ss:$0 sm:$0xff]  ;;  %s2746_s24 = smov 8  }
 0x25a   : > { %v979_v30 = vsel %vm978_vm4, %v975_v20, %v977_v29  ;;  %2352 = vrcp.f32 %v755_v28 }
 0x25b   : > { %v982_v31 = vsel %vm980_vm5, %v981_v27, %v979_v30 }
 0x25c   : > { %v990_v32 = vadd.f32 1e-06, %v982_v31 }
 0x25e   : > { %2354 = vrcp.f32 %v990_v32 }
 0x264   : > { %v2353_v35 = vpop.eup %2352 }
 0x265   : > { %v757_v37 = vmul.f32 %v2353_v35, %v754_v34 }
 0x267   : > { %v764_v39 = vadd.f32 %v1999_v36, %v757_v37 }
 0x268   : > { %v2355_v40 = vpop.eup %2354 }
 0x269   : > { %v765_v42 = vpack.c.bf16 %v764_v39, %v764_v39  ;;  %v992_v43 = vmul.f32 %v2355_v40, %v989_v38 }
 0x26b   : > { %2086 = vmatmul.mubr.msk.bf16.vlgmr.msra.gmra.mrb[0].mxu0 %vm729_vm0, %v765_v42  ;;  %2094 = vmatmul.mubr.msk.bf16.vlgmr.msra.gmra.mrb[0].mxu1 %vm729_vm0, %v765_v42  ;;  %v999_v45 = vadd.f32 %v1999_v36, %v992_v43 }
 0x26c   : > { %2098 = vmatpush3.bf16.msra.mxu0 %v2338_v41  ;;  %2101 = vmatprep.mubr.msk.bf16.mxu0 %vm2742_vm1, %v2741_v14 }
 0x26d   : > { %2099 = vmatprep.subr.bf16.mxu0 %v2741_v14  ;;  %2107 = vmatprep.mubr.msk.bf16.mxu1 %vm2742_vm1, %v2741_v14  ;;  %v1000_v46 = vpack.c.bf16 %v999_v45, %v999_v45 }
 0x270   : > { %2100 = vmatpush3.bf16.msra.mxu0 %v2339_v44 }
 0x271   : > { %2111 = vmatprep.subr.bf16.mxu0 %v2741_v14 }
 0x273   : > { %2102 = vmatmul.mubr.msk.bf16.vlgmr.msra.gmra.mrb[4].mxu0 %vm729_vm0, %v1000_v46 }
 0x274   : > { %2113 = vmatprep.mubr.msk.bf16.mxu0 %vm2742_vm1, %v2741_v14 }
 0x33e   : > { %v826_v49 = vpop.f32.mrb[0].mxu0  ;;  %v889_v50 = vpop.f32.mrb[0].mxu1 }
 0x33f   : > { %v827_v51 = vadd.f32 %v2000_v47, %v826_v49  ;;  %v890_v52 = vadd.f32 %v2004_v48, %v889_v50  ;;  %v2087_v53 = vpop.f32.mrb[1].mxu0  ;;  %v2095_v54 = vpop.f32.mrb[1].mxu1 }
 0x340   : > { %v829_v55 = vpop.f32.mrb[2].mxu0  ;;  %v892_v56 = vpop.f32.mrb[2].mxu1 }
 0x341   : > { %v3223_v57 = vpack.c.bf16 %v890_v52, %v890_v52  ;;  %v2088_v58 = vpop.f32.mrb[3].mxu0  ;;  %v2096_v59 = vpop.f32.mrb[3].mxu1  ;;  %895 = vxpose.xlu1.b32.start.end [1/1] (short) (narrow) %v827_v51, 32 }
 0x343   : > { %931 = vst.msk [vmem:[#allocation3] sm:$0xf] %vm928_vm6, %v3223_v57 }
 0x346   : > { %v1061_v61 = vpop.f32.mrb[4].mxu0 }
 0x347   : > { %v1062_v62 = vadd.f32 %v2011_v60, %v1061_v61  ;;  %v2103_v63 = vpop.f32.mrb[5].mxu0 }
 0x348   : > { %v1064_v1 = vpop.f32.mrb[6].mxu0 }
 0x349   : > { %v1067_v2 = vpack.c.bf16 %v1062_v62, %v1062_v62  ;;  %v2104_v3 = vpop.f32.mrb[7].mxu0 }
 0x34a   : > { %v1134_v4 = vld [vmem:[#allocation3] sm:$0xf] }
 0x34b   : > { %1187 = vrot.lane.b32.xlu0 %v1067_v2, %s2743_s20  ;;  %v1139_v5 = vsel %vm1080_vm7, %v1134_v4, 0 }
 0x34c   : > { %2112 = vmatpush3.bf16.msra.mxu0 %v1139_v5 }
 0x34d   : > { %2123 = vmatprep.subr.bf16.mxu0 %v2741_v14 }
 0x34f   : > { %1298 = vrot.lane.b32.xlu0 %v1067_v2, %s2744_s26 }
 0x353   : > { %1409 = vrot.lane.b32.xlu0 %v1067_v2, %s2745_s22 }
 0x3bd   : > { %v1188_v21 = vpop.permute.xlu0 %1187 }
 0x3c1   : > { %v911_v6 = vpop.trf.xlu1  ;;  %v1299_v24 = vpop.permute.xlu0 %1298 }
 0x3c2   : > { %v927_v7 = vpack.c.bf16 %v911_v6, %v911_v6 }
 0x3c4   : > { %929 = vst.msk [vmem:[#allocation2] sm:$0xf] %vm928_vm6, %v927_v7 }
 0x3c5   : > { %v912_v8 = vpop.trf.xlu1  ;;  %v1410_v25 = vpop.permute.xlu0 %1409 }
 0x3c6   : > { %v932_v9 = vpack.c.bf16 %v912_v8, %v912_v8 }
 0x3c8   : > { %934 = vst.msk [vmem:[#allocation2 + $0x4] sm:$0xf] %vm928_vm6, %v932_v9 }
 0x3c9   : > { %v913_v10 = vpop.trf.xlu1 }
 0x3ca   : > { %v943_v11 = vpack.c.bf16 %v913_v10, %v913_v10 }
 0x3cb   : > { %v1069_v12 = vld [vmem:[#allocation2] sm:$0xf] }
 0x3cc   : > { %v1082_v13 = vsel %vm1080_vm7, %v1069_v12, 0  ;;  %945 = vst.msk [vmem:[#allocation2 + $0x8] sm:$0xf] %vm928_vm6, %v943_v11 }
 0x3cd   : > { %2106 = vmatpush3.bf16.msra.mxu1 %v1082_v13  ;;  %v914_v15 = vpop.trf.xlu1 }
 0x3ce   : > { %2117 = vmatprep.subr.bf16.mxu1 %v2741_v14  ;;  %v951_v16 = vpack.c.bf16 %v914_v15, %v914_v15 }
 0x3cf   : > { %v1185_v17 = vld [vmem:[#allocation2 + $0x4] sm:$0xf] }
 0x3d0   : > { %2108 = vmatmul.mubr.msk.bf16.vlgmr.msra.gmra.mrb[4].mxu1 %vm1076_vm8, %v1067_v2  ;;  %v1193_v18 = vsel %vm1080_vm7, %v1185_v17, 0  ;;  %953 = vst.msk [vmem:[#allocation2 + $0xc] sm:$0xf] %vm928_vm6, %v951_v16 }
 0x3d1   : > { %2118 = vmatpush3.bf16.msra.mxu1 %v1193_v18  ;;  %2119 = vmatprep.mubr.msk.bf16.mxu1 %vm2742_vm1, %v2741_v14 }
 0x3d2   : > { %2129 = vmatprep.subr.bf16.mxu1 %v2741_v14 }
 0x3d3   : > { %v1297_v19 = vld [vmem:[#allocation2 + $0x8] sm:$0xf] }
 0x3d4   : > { %v1304_v20 = vsel %vm1080_vm7, %v1297_v19, 0 }
 0x3d7   : > { %v1408_v22 = vld [vmem:[#allocation2 + $0xc] sm:$0xf] }
 0x3d8   : > { %2120 = vmatmul.mubr.msk.bf16.vlgmr.msra.gmra.mrb[8].mxu1 %vm1076_vm8, %v1188_v21  ;;  %v1415_v23 = vsel %vm1080_vm7, %v1408_v22, 0 }
 0x3d9   : > { %2130 = vmatpush3.bf16.msra.mxu1 %v1304_v20  ;;  %2131 = vmatprep.mubr.msk.bf16.mxu1 %vm2742_vm1, %v2741_v14 }
 0x3da   : > { %2141 = vmatprep.subr.bf16.mxu1 %v2741_v14 }
 0x3e0   : > { %2132 = vmatmul.mubr.msk.bf16.vlgmr.msra.gmra.mrb[12].mxu1 %vm1076_vm8, %v1299_v24 }
 0x3e1   : > { %2142 = vmatpush3.bf16.msra.mxu1 %v1415_v23  ;;  %2143 = vmatprep.mubr.msk.bf16.mxu1 %vm2742_vm1, %v2741_v14 }
 0x3e2   : > { %2153 = vmatprep.subr.bf16.mxu1 %v2741_v14 }
 0x3e8   : > { %2144 = vmatmul.mubr.msk.bf16.vlgmr.msra.gmra.mrb[16].mxu1 %vm1076_vm8, %v1410_v25 }
 0x3e9   : > { %2157 = vmatprep.mubr.msk.bf16.mxu1 %vm2742_vm1, %v2741_v14 }
 0x4a3   : > { %v1118_v27 = vpop.f32.mrb[4].mxu1 }
 0x4a4   : > { %v1119_v28 = vadd.f32 %v2015_v26, %v1118_v27  ;;  %v2109_v29 = vpop.f32.mrb[5].mxu1 }
 0x4a5   : > { %v1121_v30 = vpop.f32.mrb[6].mxu1 }
 0x4a6   : > { %v2110_v31 = vpop.f32.mrb[7].mxu1  ;;  %v1124_v32 = vsel %vm1076_vm8, %v1119_v28, -inf }
 0x4a7   : > { %1125 = vmax.xlane.f32.xlu0 %v1124_v32 }
 0x4ab   : > { %v1229_v33 = vpop.f32.mrb[8].mxu1 }
 0x4ac   : > { %v1230_v34 = vadd.f32 %v2015_v26, %v1229_v33  ;;  %v2121_v35 = vpop.f32.mrb[9].mxu1 }
 0x4ad   : > { %v1232_v36 = vpop.f32.mrb[10].mxu1  ;;  %v2340_v35 = vld [vmem:[%s3458_s3] sm:$0xff]  }
 0x4ae   : > { %v2122_v37 = vpop.f32.mrb[11].mxu1  ;;  %v1235_v38 = vsel %vm1076_vm8, %v1230_v34, -inf  ;;  %2154 = vmatpush3.bf16.msra.mxu1 %v2340_v35  ;;  %v2341_v36 = vld [vmem:[%s3458_s3 + $0x8] sm:$0xff]   ;;  %s3463_s3 = sld [smem:[#allocation39_spill]] }
 0x4af   : > { %1236 = vmax.xlane.f32.xlu1 %v1235_v38  ;;  %2155 = vmatprep.subr.bf16.mxu1 %v2741_v14 }
 0x4b2   : > { %2156 = vmatpush3.bf16.msra.mxu1 %v2341_v36 }
 0x4b3   : > { %v1340_v39 = vpop.f32.mrb[12].mxu1  ;;  %2169 = vmatprep.subr.bf16.mxu1 %v2741_v14 }
 0x4b4   : > { %v2133_v40 = vpop.f32.mrb[13].mxu1  ;;  %v1341_v47 = vadd.f32 %v2015_v26, %v1340_v39 }
 0x4b5   : > { %v1343_v41 = vpop.f32.mrb[14].mxu1 }
 0x4b6   : > { %v2134_v42 = vpop.f32.mrb[15].mxu1  ;;  %v1346_v49 = vsel %vm1076_vm8, %v1341_v47, -inf }
 0x4bb   : > { %v1451_v43 = vpop.f32.mrb[16].mxu1 }
 0x4bc   : > { %v2145_v44 = vpop.f32.mrb[17].mxu1  ;;  %v1452_v48 = vadd.f32 %v2015_v26, %v1451_v43 }
 0x4bd   : > { %938 = vrot.lane.b32.xlu0 %v3223_v57, %s2743_s20  ;;  %v1454_v45 = vpop.f32.mrb[18].mxu1  ;;  %s2041_s20 = sshll.u32 %s2720_s30, 7  ;;  %s1794_s30 = scalar_lea.sflag [#allocation6], %s3150_s7 }
 0x4be   : > { %v2146_v46 = vpop.f32.mrb[19].mxu1  ;;  %v1457_v50 = vsel %vm1076_vm8, %v1452_v48, -inf  ;;  %s3342_s6 = scalar_lea.hbm %s3463_s3, %s2041_s20 }
 0x4c1   : > { %946 = vrot.lane.b32.xlu0 %v3223_v57, %s2744_s26  ;;  %s3459_s26 = sld [smem:[#allocation35_spill]] }
 0x4e0   : > { %1347 = vmax.xlane.f32.xlu0 %v1346_v49 }
 0x4e4   : > { %1458 = vmax.xlane.f32.xlu0 %v1457_v50 }
 0x4fa   : > { %954 = vrot.lane.b32.xlu0 %v3223_v57, %s2745_s22  ;;  %s716_s22 = scalar_lea.vmem [#allocation19], %s1996_s2 }
 0x534   : > { %v1126_v51 = vpop.xlane.xlu0 %1125 }
 0x535   : > { %v1127_v52 = vsub.f32 %v1119_v28, %v1126_v51 }
 0x537   : > { %v1128_v53 = vmul.f32 1.442695, %v1127_v52 }
 0x538   : > { %v939_v54 = vpop.permute.xlu0 %938 }
 0x539   : > { %2356 = vpow2.f32 %v1128_v53  ;;  %942 = vst.msk [vmem:[#allocation3 + $0x4] sm:$0xf] %vm928_vm6, %v939_v54 }
 0x53c   : > { %v947_v55 = vpop.permute.xlu0 %946  ;;  %v1237_v56 = vpop.xlane.xlu1 %1236 }
 0x53d   : > { %950 = vst.msk [vmem:[#allocation3 + $0x8] sm:$0xf] %vm928_vm6, %v947_v55  ;;  %v1238_v58 = vsub.f32 %v1230_v34, %v1237_v56 }
 0x53f   : > { %v1239_v59 = vmul.f32 1.442695, %v1238_v58 }
 0x540   : > { %v1246_v61 = vld [vmem:[#allocation3 + $0x4] sm:$0xf] }
 0x541   : > { %2358 = vpow2.f32 %v1239_v59  ;;  %v1251_v57 = vsel %vm1080_vm7, %v1246_v61, 0 }
 0x543   : > { %v2357_v60 = vpop.eup %2356 }
 0x544   : > { %v1133_v62 = vpack.c.bf16 %v2357_v60, %v2357_v60  ;;  %v1357_v1 = vld [vmem:[#allocation3 + $0x8] sm:$0xf]  ;;  %v1130_v20 = vsel %vm1076_vm8, %v2357_v60, 0.0 }
 0x545   : > { %v1362_v4 = vsel %vm1080_vm7, %v1357_v1, 0 }
 0x546   : > { %2114 = vmatmul.mubr.msk.bf16.vlgmr.msra.gmra.mrb[8].mxu0 %vm1076_vm8, %v1133_v62 }
 0x547   : > { %2124 = vmatpush3.bf16.msra.mxu0 %v1251_v57  ;;  %2125 = vmatprep.mubr.msk.bf16.mxu0 %vm2742_vm1, %v2741_v14  ;;  %v2024_v57 = vld [vmem:[#allocation15] ss:$0 sm:$0xff] }
 0x548   : > { %2135 = vmatprep.subr.bf16.mxu0 %v2741_v14 }
 0x54b   : > { %v2359_v63 = vpop.eup %2358 }
 0x54c   : > { %v1241_v2 = vsel %vm1076_vm8, %v2359_v63, 0.0  ;;  %v1244_v3 = vpack.c.bf16 %v2359_v63, %v2359_v63 }
 0x54d   : > { %1242 = vadd.xlane.f32.xlu0 %v1241_v2 }
 0x54e   : > { %2126 = vmatmul.mubr.msk.bf16.vlgmr.msra.gmra.mrb[12].mxu0 %vm1076_vm8, %v1244_v3 }
 0x54f   : > { %2136 = vmatpush3.bf16.msra.mxu0 %v1362_v4  ;;  %2137 = vmatprep.mubr.msk.bf16.mxu0 %vm2742_vm1, %v2741_v14 }
 0x550   : > { %2147 = vmatprep.subr.bf16.mxu0 %v2741_v14 }
 0x56d   : > { %v1348_v5 = vpop.xlane.xlu0 %1347 }
 0x56e   : > { %v1349_v6 = vsub.f32 %v1341_v47, %v1348_v5 }
 0x570   : > { %v1350_v7 = vmul.f32 1.442695, %v1349_v6 }
 0x571   : > { %v1459_v8 = vpop.xlane.xlu0 %1458 }
 0x572   : > { %2360 = vpow2.f32 %v1350_v7  ;;  %v1460_v9 = vsub.f32 %v1452_v48, %v1459_v8 }
 0x574   : > { %v1461_v10 = vmul.f32 1.442695, %v1460_v9 }
 0x575   : > { %v955_v11 = vpop.permute.xlu0 %954 }
 0x576   : > { %2362 = vpow2.f32 %v1461_v10  ;;  %958 = vst.msk [vmem:[#allocation3 + $0xc] sm:$0xf] %vm928_vm6, %v955_v11 }
 0x57c   : > { %v2361_v12 = vpop.eup %2360 }
 0x57d   : > { %v1352_v13 = vsel %vm1076_vm8, %v2361_v12, 0.0  ;;  %v1355_v15 = vpack.c.bf16 %v2361_v12, %v2361_v12  ;;  %v1468_v16 = vld [vmem:[#allocation3 + $0xc] sm:$0xf]  ;;  %v2342_v12 = vld [vmem:[%s3459_s26] sm:$0xff]  }
 0x57e   : > { %1353 = vadd.xlane.f32.xlu1 %v1352_v13  ;;  %v1473_v17 = vsel %vm1080_vm7, %v1468_v16, 0  ;;  %v2344_v13 = vld [vmem:[%s3460_s21] sm:$0xff]  }
 0x57f   : > { %2138 = vmatmul.mubr.msk.bf16.vlgmr.msra.gmra.mrb[16].mxu0 %vm1076_vm8, %v1355_v15  ;;  %v2345_v15 = vld [vmem:[%s3460_s21 + $0x8] sm:$0xff]  }
 0x580   : > { %v2363_v18 = vpop.eup %2362  ;;  %2148 = vmatpush3.bf16.msra.mxu0 %v1473_v17  ;;  %2149 = vmatprep.mubr.msk.bf16.mxu0 %vm2742_vm1, %v2741_v14 }
 0x581   : > { %v1463_v19 = vsel %vm1076_vm8, %v2363_v18, 0.0  ;;  %2161 = vmatprep.subr.bf16.mxu0 %v2741_v14  ;;  %v1466_v21 = vpack.c.bf16 %v2363_v18, %v2363_v18 }
 0x582   : > { %1464 = vadd.xlane.f32.xlu1 %v1463_v19 }
 0x586   : > { %1131 = vadd.xlane.f32.xlu1 %v1130_v20 }
 0x587   : > { %2150 = vmatmul.mubr.msk.bf16.vlgmr.msra.gmra.mrb[20].mxu0 %vm1076_vm8, %v1466_v21 }
 0x588   : > { %2165 = vmatprep.mubr.msk.bf16.mxu0 %vm2742_vm1, %v2741_v14  ;;  %2162 = vmatpush3.bf16.msra.mxu0 %v2342_v12 }
 0x589   : > { %2163 = vmatprep.subr.bf16.mxu0 %v2741_v14 }
 0x5da   : > { %v1243_v22 = vpop.xlane.xlu0 %1242 }
 0x5db   : > { %2364 = vrcp.f32 %v1243_v22 }
 0x5e5   : > { %v2365_v27 = vpop.eup %2364 }
 0x60b   : > { %v1354_v34 = vpop.xlane.xlu1 %1353 }
 0x60c   : > { %2366 = vrcp.f32 %v1354_v34 }
 0x60f   : > { %v1465_v37 = vpop.xlane.xlu1 %1464 }
 0x610   : > { %2368 = vrcp.f32 %v1465_v37 }
 0x613   : > { %v1132_v52 = vpop.xlane.xlu1 %1131 }
 0x614   : > { %2370 = vrcp.f32 %v1132_v52 }
 0x616   : > { %v2367_v38 = vpop.eup %2366 }
 0x619   : > { %v1175_v23 = vpop.f32.mrb[8].mxu0 }
 0x61a   : > { %v2115_v24 = vpop.f32.mrb[9].mxu0  ;;  %v2369_v45 = vpop.eup %2368 }
 0x61b   : > { %v1178_v25 = vpop.f32.mrb[10].mxu0  ;;  %v2028_v24 = vld [vmem:[#allocation16] ss:$0 sm:$0xff] }
 0x61c   : > { %v2116_v26 = vpop.f32.mrb[11].mxu0 }
 0x61e   : > { %v2371_v53 = vpop.eup %2370 }
 0x61f   : > { %v1182_v54 = vmul.f32 %v2371_v53, %v1175_v23 }
 0x621   : > { %v1287_v28 = vpop.f32.mrb[12].mxu0  ;;  %v1183_v56 = vpack.c.bf16 %v1182_v54, %v1182_v54 }
 0x622   : > { %v1294_v29 = vmul.f32 %v2365_v27, %v1287_v28  ;;  %v2127_v30 = vpop.f32.mrb[13].mxu0  ;;  %v2029_v27 = vld [vmem:[#allocation18] ss:$0 sm:$0xff] }
 0x623   : > { %v1290_v31 = vpop.f32.mrb[14].mxu0 }
 0x624   : > { %v1295_v32 = vpack.c.bf16 %v1294_v29, %v1294_v29  ;;  %v2128_v33 = vpop.f32.mrb[15].mxu0  ;;  %v2346_v31 = vld [vmem:[%s3460_s21 + $0x10] sm:$0xff]  }
 0x625   : > { %v2030_v33 = vld [vmem:[%s3461_s17] ss:$0 sm:$0xff] }
 0x626   : > { %1519 = vrot.lane.b32.xlu1 %v1295_v32, %s2746_s24  ;;  %v2347_v32 = vld [vmem:[%s3460_s21 + $0x18] sm:$0xff]   ;;  %s1808_s24 = sshll.u32 %s716_s22, 4  ;;  %s3344_s24 = int_to_ptr.vmem [resolvable:$true] %s1808_s24 }
 0x627   : > { %s2630_s2 = scalar_lea.vmem %s3344_s24, 128 }
 0x628   : > { %p2631_p0 = scmp.ne.s32.totalorder %s3344_s24, %s2630_s2 }
 0x62a   : > { %p2632_p7 = pnand %p2631_p0, %p3464_p5 }
 0x62c   : > { %p2633_p10 = pneg %p2632_p7 }
 0x652   : > { %v1398_v39 = vpop.f32.mrb[16].mxu0 }
 0x653   : > { %v1405_v40 = vmul.f32 %v2367_v38, %v1398_v39  ;;  %v2139_v41 = vpop.f32.mrb[17].mxu0 }
 0x654   : > { %v1401_v42 = vpop.f32.mrb[18].mxu0  ;;  %v2039_v41 = vld [vmem:[%s3462_s18] ss:$0 sm:$0xff] }
 0x655   : > { %v1406_v43 = vpack.c.bf16 %v1405_v40, %v1405_v40  ;;  %v2140_v44 = vpop.f32.mrb[19].mxu0 }
 0x657   : > { %1522 = vrot.lane.b32.xlu0 %v1406_v43, %s2747_s16  ;;  %s2749_s16 = smov [#allocation19]  }
 0x65a   : > { %v1509_v46 = vpop.f32.mrb[20].mxu0 }
 0x65b   : > { %v1516_v47 = vmul.f32 %v2369_v45, %v1509_v46  ;;  %v2151_v48 = vpop.f32.mrb[21].mxu0 }
 0x65c   : > { %v1512_v49 = vpop.f32.mrb[22].mxu0 }
 0x65d   : > { %v1517_v50 = vpack.c.bf16 %v1516_v47, %v1516_v47  ;;  %v2152_v51 = vpop.f32.mrb[23].mxu0 }
 0x65f   : > { %1525 = vrot.lane.b32.xlu1 %v1517_v50, %s2748_s25  ;;  %s2634_s25 = sshll.u32 %s2749_s16, 4  ;;  %s2635_s25 = int_to_ptr.vmem [resolvable:$false] %s2634_s25 }
 0x660   : > { %s2636_s18 = scalar_lea.vmem %s2635_s25, 256  ;;  %p2637_p13 = scmp.lt.s32.totalorder %s3344_s24, %s2635_s25 }
 0x661   : > { %p2638_p2 = scmp.lt.s32.totalorder %s2636_s18, %s2630_s2 }
 0x663   : > { %p2639_p8 = por %p2638_p2, %p2637_p13 }
 0x665   : > { %p2640_p9 = pnand %p2639_p8, %p2633_p10 }
 0x698   : > { %v1520_v55 = vpop.permute.xlu1 %1519 }
 0x699   : > { %v1529_v59 = vsel %vm1076_vm8, %v1183_v56, %v1520_v55 }
 0x6c9   : > { %v1523_v58 = vpop.permute.xlu0 %1522 }
 0x6ca   : > { %v1532_v60 = vsel %vm1530_vm9, %v1529_v59, %v1523_v58 }
 0x6d1   : > { %v1526_v61 = vpop.permute.xlu1 %1525 }
 0x6d2   : > { %v1535_v62 = vsel %vm1533_vm10, %v1532_v60, %v1526_v61 }
 0x6d3   : > { %2158 = vmatmul.mubr.msk.bf16.vlgmr.msra.gmra.mrb[20].mxu1 %vm729_vm0, %v1535_v62 }
 0x6d4   : > { %2177 = vmatprep.mubr.msk.bf16.mxu1 %vm2742_vm1, %v2741_v14  ;;  %2170 = vmatpush3.bf16.msra.mxu1 %v2344_v13 }
 0x6d5   : > { %2171 = vmatprep.subr.bf16.mxu1 %v2741_v14 }
 0x6d8   : > { %2172 = vmatpush3.bf16.msra.mxu1 %v2345_v15 }
 0x6d9   : > { %2173 = vmatprep.subr.bf16.mxu1 %v2741_v14 }
 0x6dc   : > { %2174 = vmatpush3.bf16.msra.mxu1 %v2346_v31 }
 0x6dd   : > { %2175 = vmatprep.subr.bf16.mxu1 %v2741_v14 }
 0x6e0   : > { %2176 = vmatpush3.bf16.msra.mxu1 %v2347_v32 }
 0x7a6   : > { %v1595_v63 = vpop.f32.mrb[20].mxu1 }
 0x7a7   : > { %v1596_v1 = vadd.f32 %v2024_v57, %v1595_v63  ;;  %v2159_v2 = vpop.f32.mrb[21].mxu1 }
 0x7a8   : > { %v1598_v3 = vpop.f32.mrb[22].mxu1 }
 0x7a9   : > { %v1601_v4 = vadd.f32 %v1596_v1, %v3179_v0  ;;  %v2160_v5 = vpop.f32.mrb[23].mxu1  ;;  %v2343_v0 = vld [vmem:[%s3459_s26 + $0x8] sm:$0xff]  }
 0x7aa   : > { %2164 = vmatpush3.bf16.msra.mxu0 %v2343_v0 }
 0x7ab   : > { %v1604_v6 = vsel %vm729_vm0, %v1601_v4, 0.0 }
 0x7ac   : > { %1605 = vadd.xlane.f32.xlu1 %v1604_v6 }
 0x839   : > { %v1606_v7 = vpop.xlane.xlu1 %1605 }
 0x83a   : > { %v1607_v8 = vmul.f32 0.03125, %v1606_v7 }
 0x83c   : > { %v1608_v9 = vsub.f32 %v1601_v4, %v1607_v8 }
 0x83e   : > { %v1609_v10 = vmul.f32 %v1608_v9, %v1608_v9  ;;  %v1627_v25 = vmul.f32 %v2028_v24, %v1608_v9 }
 0x840   : > { %v1610_v11 = vsel %vm729_vm0, %v1609_v10, 0.0 }
 0x841   : > { %1611 = vadd.xlane.f32.xlu0 %v1610_v11 }
 0x8ce   : > { %v1612_v16 = vpop.xlane.xlu0 %1611 }
 0x8cf   : > { %v1613_v17 = vmul.f32 0.032258064, %v1612_v16 }
 0x8d1   : > { %2372 = vrsqrt.f32 %v1613_v17  ;;  %vm1616_vm11 = vcmp.eq.f32.partialorder %v1613_v17, inf  ;;  %v1619_v20 = vand.u32 2147483648, %v1613_v17  ;;  %vm1618_vm12 = vcmp.eq.f32.partialorder %v1613_v17, 0.0 }
 0x8db   : > { %v2373_v18 = vpop.eup %2372 }
 0x8dc   : > { %v1615_v19 = vmul.f32 %v2373_v18, %v1613_v17 }
 0x8de   : > { %v1617_v21 = vsel %vm1616_vm11, %v1613_v17, %v1615_v19 }
 0x8df   : > { %v1620_v22 = vsel %vm1618_vm12, %v1619_v20, %v1617_v21 }
 0x8e0   : > { %v1628_v23 = vadd.f32 1e-06, %v1620_v22 }
 0x8e2   : > { %2374 = vrcp.f32 %v1628_v23 }
 0x8ec   : > { %v2375_v26 = vpop.eup %2374 }
 0x8ed   : > { %v1630_v28 = vmul.f32 %v2375_v26, %v1627_v25 }
 0x8ef   : > { %v1637_v29 = vadd.f32 %v2029_v27, %v1630_v28 }
 0x8f1   : > { %v1638_v30 = vpack.c.bf16 %v1637_v29, %v1637_v29 }
 0x8f3   : > { %2166 = vmatmul.mubr.msk.bf16.vlgmr.msra.gmra.mrb[24].mxu0 %vm729_vm0, %v1638_v30 }
 0x9c6   : > { %v1699_v34 = vpop.f32.mrb[24].mxu0 }
 0x9c7   : > { %v1700_v35 = vadd.f32 %v2030_v33, %v1699_v34  ;;  %v2167_v36 = vpop.f32.mrb[25].mxu0 }
 0x9c8   : > { %v1702_v37 = vpop.f32.mrb[26].mxu0 }
 0x9c9   : > { %v1705_v38 = vmax.f32 %v1700_v35, 0.0  ;;  %v2168_v39 = vpop.f32.mrb[27].mxu0 }
 0x9cb   : > { %v1706_v40 = vpack.c.bf16 %v1705_v38, %v1705_v38 }
 0x9cd   : > { %2178 = vmatmul.mubr.msk.bf16.vlgmr.msra.gmra.mrb[24].mxu1 %vm1739_vm13, %v1706_v40 }
 0xaa0   : > { %v1777_v14 = vpop.f32.mrb[24].mxu1 }
 0xaa1   : > { %v1783_v42 = vadd.f32 %v1777_v14, %v1601_v4  ;;  %v2179_v43 = vpop.f32.mrb[25].mxu1 }
 0xaa2   : > { %v1780_v44 = vpop.f32.mrb[26].mxu1 }
 0xaa3   : > { %v1791_v45 = vadd.f32 %v2039_v41, %v1783_v42  ;;  %v2180_v46 = vpop.f32.mrb[27].mxu1 }
 0xaa5   : > { %1792 = vst.msk [vmem:[%s716_s22] sm:$0xff] %vm729_vm0, %v1791_v45 }
 0xaa6   : > { %2643 = shalt.err (!%p2640_p9)
}
 0xaa7   : > { %s2644_s7 = scalar_lea.hbm %s3342_s6, 128  ;;  %s2648_s15 = scalar_lea.hbm %s3463_s3, 256 }
 0xaa8   : > { %p2645_p4 = scmp.ne.s32.totalorder %s3342_s6, %s2644_s7  ;;  %p2649_p1 = scmp.lt.u32.totalorder %s3342_s6, %s3463_s3 }
 0xaa9   : > { %p2650_p12 = scmp.lt.u32.totalorder %s2648_s15, %s2644_s7  ;;  %p2652_p0 = scmp.lt.u32.totalorder %s2644_s7, %s3342_s6 }
 0xaaa   : > { %p2646_p6 = pnand %p2645_p4, %p3464_p5 }
 0xaab   : > { %p2651_p11 = por %p2650_p12, %p2649_p1 }
 0xaac   : > { %p2647_p3 = pneg %p2646_p6 }
 0xaad   : > { %p2653_p7 = por %p2652_p0, %p2651_p11 }
 0xaaf   : > { %p2654_p10 = pnand %p2653_p7, %p2647_p3 }
 0xab1   : > { %2657 = shalt.err (!%p2654_p10)
}
 0xab2   : > { %2215 = dma.vmem_to_hbm [thread:$0]  (%p3464_p5), %s3344_s24, 128, %s3342_s6, %s1794_s30  }
 0xab3 PF: > { %s1820_s2 = sand.u32 1, %s2708_s27   ;;  %p3465_p13 = scmp.ne.s32.totalorder %s3449_s1, 0 }
 0xab4   : > { %p3466_p2 = scmp.ge.s32.totalorder %s2728_s19, 2  ;;  %s1821_s25 = scalar_lea.sflag [#allocation6], %s1820_s2 }
 0xab6   : > { %p2247_p8 = pnand %p3466_p2, %p3465_p13 }
 0xab8   : > { %2703 = dma.done.wait (!%p2247_p8), %s1821_s25, 128  }
 0xab9   : > { %2705 = vsyncadd (!%p2247_p8), %s1821_s25, 4294967168  ;;  %s38_s19 = sadd.s32 1, %s2728_s19   ;;  %s3467_s27 = smov %s2712_s28 }
 0xaba   : > { %p35_p9 = scmp.ge.s32.totalorder %s38_s19, 4   ;;  %s3468_s28 = smov %s2716_s29 }
 0xabb   : > { %s3469_s29 = smov %s3100_s10  ;;  %s3470_s30 = smov %s2724_s0 }
 0xabc   : > { %s3471_s0 = smov %s3473_s5  ;;  %37 = sbr.rel (!%p35_p9) target bundleno = 25 (0x19), region = 189 }
 0xac3   :  { %1826 = vsyncpa [#allocation5], 1 }
 0xac4   :  { %1828 = vsyncpa [#allocation5 + $0x1], 1 }
 0xac5   :  { %1829 = vsyncpa [#allocation8], 1 }
 0xac6   :  { %1830 = vsyncpa [#allocation11], 1 }
 0xac7   :  { %1831 = vsyncpa [#allocation14], 1 }
 0xac8   :  { %1832 = vsyncpa [#allocation17], 1 }
 0xac9   :  { %1833 = vsyncpa [#allocation6], 1 }
 0xaca   :  { %1835 = vsyncpa [#allocation6 + $0x1], 1 }

</bundles_post_ra>
